<compile_context>
chip_gen: v6e
topology: v6e:2x2x1
jax: 0.10.0
libtpu: 0.0.40
codegen_flags: <defaults>
</compile_context>

<pallas_src>
import functools

import numpy as np

import jax
import jax.numpy as jnp
from jax.experimental import pallas as pl
from jax.experimental.pallas import tpu as pltpu

EPS = 1e-5
_TAPS = tuple((dy, dx) for dy in range(3) for dx in range(3))


# ---------------------------------------------------------------------------
# In-kernel building blocks (operate on channel-major, batch-stacked (C, B*P))
# ---------------------------------------------------------------------------
def _bn_lane_stacked(x, g_ref, b_ref, slope):
    """BatchNorm2d, training-mode batch statistics, on a (C, B*H*W) tile.

    The lane axis is batch x spatial, so the per-channel reduction is a single
    lane reduction.  Optionally fused LeakyReLU(slope).
    """
    n_inv = 1.0 / x.shape[1]
    mean = jnp.sum(x, axis=1, keepdims=True) * n_inv
    var = jnp.sum(x * x, axis=1, keepdims=True) * n_inv - mean * mean  # biased
    scale = g_ref[...] * jax.lax.rsqrt(var + EPS)                      # (C, 1)
    shift = b_ref[...] - mean * scale                                  # (C, 1)
    y = x * scale + shift
    if slope is not None:
        y = jnp.maximum(y, slope * y)                                  # LReLU
    return y


def _conv3x3(x, u_ref, m_ref, w_ref, patches_ref, *, cin, width, ncols,
             bias_ref=None):
    """[optional nearest-2x upsample] + 3x3 'same' conv on a (Cin, B*H*W) tile.

    * upsample: one constant 0/1 matmul (block-diagonal over the batch).
    * taps: 9 static cyclic lane rolls (XLU) * constant zero-pad masks,
      written into the shared bf16 im2col scratch (rows t*cin .. t*cin+cin).
    * conv: ONE bf16 MXU matmul with K = 9*Cin, f32 accumulation.
    """
    if u_ref is not None:
        x = jnp.dot(x, u_ref[...], preferred_element_type=jnp.float32)

    masks = m_ref[...]                                   # (9, 1, ncols), f32
    for t, (dy, dx) in enumerate(_TAPS):
        off = (dy - 1) * width + (dx - 1)
        shifted = pltpu.roll(x, (-off) % ncols, axis=1) if off else x
        patches_ref[pl.ds(t * cin, cin), pl.ds(0, ncols)] = (
            shifted * masks[t]).astype(patches_ref.dtype)

    patches = patches_ref[pl.ds(0, 9 * cin), pl.ds(0, ncols)]   # bf16
    y = jnp.dot(w_ref[...], patches, preferred_element_type=jnp.float32)
    if bias_ref is not None:
        y = y + bias_ref[...]
    return y


def _generator_kernel(x0_ref, g0_ref, be0_ref,
                      u1_ref, ma_ref, w1_ref, g1_ref, be1_ref,
                      u2_ref, mb_ref, w2_ref, g2_ref, be2_ref,
                      w3_ref, b3_ref, out_ref, patches_ref,
                      *, c0, ngf, batch, init_size):
    wa = 2 * init_size                 # spatial width after first upsample
    wb = 4 * init_size                 # spatial width after second upsample
    na = batch * wa * wa               # stacked lane count, stage A
    nb = batch * wb * wb               # stacked lane count, stage B

    x = _bn_lane_stacked(x0_ref[...], g0_ref, be0_ref, None)             # BN0
    x = _conv3x3(x, u1_ref, ma_ref, w1_ref, patches_ref,
                 cin=c0, width=wa, ncols=na)                             # Up+Conv1
    x = _bn_lane_stacked(x, g1_ref, be1_ref, 0.2)                        # BN1+LReLU
    x = _conv3x3(x, u2_ref, mb_ref, w2_ref, patches_ref,
                 cin=c0, width=wb, ncols=nb)                             # Up+Conv2
    x = _bn_lane_stacked(x, g2_ref, be2_ref, 0.2)                        # BN2+LReLU
    x = _conv3x3(x, None, mb_ref, w3_ref, patches_ref,
                 cin=ngf, width=wb, ncols=nb, bias_ref=b3_ref)           # Conv3+b

    # Full (nc_pad, B*H*W) tile: unmasked, lane-dense stores.  Padded channel
    # rows (zero weights/bias -> sigmoid=0.5) are sliced off in the wrapper.
    out_ref[...] = jax.nn.sigmoid(x)


# ---------------------------------------------------------------------------
# Constant tables (numpy, built once at prepare time)
# ---------------------------------------------------------------------------
def _upsample_matrix(h, w):
    """0/1 matrix U with (x_small @ U) == nearest-2x upsample (flattened)."""
    ho, wo = 2 * h, 2 * w
    u = np.zeros((h * w, ho * wo), np.float32)
    for yo in range(ho):
        for xo in range(wo):
            u[(yo // 2) * w + (xo // 2), yo * wo + xo] = 1.0
    return u


def _tap_masks(h, w):
    """masks[t, 0, y*w+x] = 1 iff 3x3 tap t reads inside the image (zero pad)."""
    m = np.zeros((9, 1, h * w), np.float32)
    for t, (dy, dx) in enumerate(_TAPS):
        for y in range(h):
            for x in range(w):
                if 0 <= y + dy - 1 < h and 0 <= x + dx - 1 < w:
                    m[t, 0, y * w + x] = 1.0
    return m


# ---------------------------------------------------------------------------
# Parameters (PyTorch layout) and one-time re-layout into kernel operands
# ---------------------------------------------------------------------------
def init_generator_params(key, nz, ngf, img_size, nc):
    s = img_size // 4
    c0 = 2 * ngf
    d1 = c0 * s * s
    k = jax.random.split(key, 12)
    w = 0.05
    return {
        "l1_w": jax.random.normal(k[0], (d1, nz), jnp.float32) * w,   # (out, in)
        "l1_b": 0.1 * jax.random.normal(k[1], (d1,), jnp.float32),
        "bn0_g": 1.0 + 0.1 * jax.random.normal(k[2], (c0,), jnp.float32),
        "bn0_b": 0.1 * jax.random.normal(k[3], (c0,), jnp.float32),
        "conv1_w": jax.random.normal(k[4], (c0, c0, 3, 3), jnp.float32) * w,
        "bn1_g": 1.0 + 0.1 * jax.random.normal(k[5], (c0,), jnp.float32),
        "bn1_b": 0.1 * jax.random.normal(k[6], (c0,), jnp.float32),
        "conv2_w": jax.random.normal(k[7], (ngf, c0, 3, 3), jnp.float32) * w,
        "bn2_g": 1.0 + 0.1 * jax.random.normal(k[8], (ngf,), jnp.float32),
        "bn2_b": 0.1 * jax.random.normal(k[9], (ngf,), jnp.float32),
        "conv3_w": jax.random.normal(k[10], (nc, ngf, 3, 3), jnp.float32) * w,
        "conv3_b": 0.1 * jax.random.normal(k[11], (nc,), jnp.float32),
    }


def prepare_generator(params, *, nz, ngf, img_size, nc, batch):
    """One-time weight re-layout + constants; returns a jitted forward(z)->NCHW."""
    del nz  # implied by l1_w
    s = img_size // 4                   # init_size
    c0 = 2 * ngf
    p0 = s * s
    pa = 4 * p0                         # (2s)^2
    pb = 16 * p0                        # (4s)^2 == img_size^2
    hw = img_size * img_size
    nc_pad = max(8, ((nc + 7) // 8) * 8)

    # Conv weights: torch (Cout, Cin, 3, 3) -> (Cout, 9*Cin) im2col layout, bf16.
    def conv_wt(w):
        co, ci = w.shape[0], w.shape[1]
        return jnp.asarray(w).transpose(0, 2, 3, 1).reshape(co, 9 * ci)

    w1t = conv_wt(params["conv1_w"]).astype(jnp.bfloat16)
    w2t = conv_wt(params["conv2_w"]).astype(jnp.bfloat16)
    w3t = conv_wt(params["conv3_w"])
    w3t = jnp.concatenate(
        [w3t, jnp.zeros((nc_pad - nc, w3t.shape[1]), jnp.float32)],
        axis=0).astype(jnp.bfloat16)
    b3 = jnp.concatenate(
        [params["conv3_b"],
         jnp.zeros((nc_pad - nc,), jnp.float32)]).reshape(nc_pad, 1)

    col = lambda v: v.reshape(-1, 1)

    # Block-diagonal (over batch) upsample matrices; batch-tiled tap masks.
    eye = np.eye(batch, dtype=np.float32)
    u1 = jnp.asarray(np.kron(eye, _upsample_matrix(s, s)))          # (B*p0, B*pa)
    u2 = jnp.asarray(np.kron(eye, _upsample_matrix(2 * s, 2 * s)))  # (B*pa, B*pb)
    ma = jnp.asarray(np.tile(_tap_masks(2 * s, 2 * s), (1, 1, batch)))
    mb = jnp.asarray(np.tile(_tap_masks(4 * s, 4 * s), (1, 1, batch)))

    operands = (col(params["bn0_g"]), col(params["bn0_b"]),
                u1, ma, w1t, col(params["bn1_g"]), col(params["bn1_b"]),
                u2, mb, w2t, col(params["bn2_g"]), col(params["bn2_b"]),
                w3t, b3)

    kernel = functools.partial(_generator_kernel, c0=c0, ngf=ngf,
                               batch=batch, init_size=s)
    vmem = pl.BlockSpec(memory_space=pltpu.MemorySpace.VMEM)
    fused = pl.pallas_call(
        kernel,
        out_shape=jax.ShapeDtypeStruct((nc_pad, batch * hw), jnp.float32),
        in_specs=[vmem] * (1 + len(operands)),
        out_specs=vmem,
        scratch_shapes=[pltpu.VMEM((9 * c0, batch * pb), jnp.bfloat16)],
        compiler_params=pltpu.CompilerParams(
            vmem_limit_bytes=48 * 1024 * 1024),
    )

    lw = params["l1_w"]      # (c0*p0, nz)
    lb = params["l1_b"]      # (c0*p0,)

    def forward(z):
        # Linear (tiny GEMM, XLA) + relayout into the channel-major,
        # batch-stacked lane layout expected by the fused kernel.
        x0 = z @ lw.T + lb                                   # (B, c0*p0)
        x0 = x0.reshape(batch, c0, p0).transpose(1, 0, 2).reshape(c0, batch * p0)
        out = fused(x0, *operands)                           # (nc_pad, B*H*W)
        img = out.reshape(nc_pad, batch, img_size, img_size)[:nc]
        return img.transpose(1, 0, 2, 3)                     # (B, nc, H, W)

    return jax.jit(forward)


# ---------------------------------------------------------------------------
# Plain-JAX reference (independent transcription of the PyTorch module, NCHW)
# ---------------------------------------------------------------------------
def reference_forward(params, z, *, ngf, img_size, nc):
    s = img_size // 4
    c0 = 2 * ngf

    def bn(x, g, b):
        mean = x.mean(axis=(0, 2, 3), keepdims=True)
        var = ((x - mean) ** 2).mean(axis=(0, 2, 3), keepdims=True)
        return ((x - mean) * jax.lax.rsqrt(var + EPS) * g.reshape(1, -1, 1, 1)
                + b.reshape(1, -1, 1, 1))

    def up2(x):
        return jnp.repeat(jnp.repeat(x, 2, axis=2), 2, axis=3)

    def conv(x, w, b=None):
        bsz, _, h, wd = x.shape
        xp = jnp.pad(x, ((0, 0), (0, 0), (1, 1), (1, 1)))
        acc = jnp.zeros((bsz, w.shape[0], h, wd), jnp.float32)
        for dy in range(3):
            for dx in range(3):
                acc = acc + jnp.einsum("bchw,oc->bohw",
                                       xp[:, :, dy:dy + h, dx:dx + wd],
                                       w[:, :, dy, dx], precision="highest")
        if b is not None:
            acc = acc + b.reshape(1, -1, 1, 1)
        return acc

    lrelu = lambda x: jnp.where(x >= 0, x, 0.2 * x)

    out = jnp.dot(z, params["l1_w"].T, precision="highest") + params["l1_b"]
    x = out.reshape(z.shape[0], c0, s, s)
    x = bn(x, params["bn0_g"], params["bn0_b"])
    x = conv(up2(x), params["conv1_w"])
    x = lrelu(bn(x, params["bn1_g"], params["bn1_b"]))
    x = conv(up2(x), params["conv2_w"])
    x = lrelu(bn(x, params["bn2_g"], params["bn2_b"]))
    x = conv(x, params["conv3_w"], params["conv3_b"])
    return jax.nn.sigmoid(x)


if __name__ == "__main__":
    # small shapes consistent with the module: nz=32, ngf=16, img_size=16, nc=3, B=2
    nz, ngf, img_size, nc, batch = 32, 16, 16, 3, 2
    key = jax.random.PRNGKey(0)
    kp, kz = jax.random.split(key)
    params = init_generator_params(kp, nz, ngf, img_size, nc)
    z = jax.random.normal(kz, (batch, nz), jnp.float32)

    forward = prepare_generator(params, nz=nz, ngf=ngf, img_size=img_size,
                                nc=nc, batch=batch)
    img = jax.block_until_ready(forward(z))

    assert img.shape == (batch, nc, img_size, img_size), img.shape
    assert bool(jnp.all(jnp.isfinite(img)))

    ref = reference_forward(params, z, ngf=ngf, img_size=img_size, nc=nc)
    max_err = float(jnp.max(jnp.abs(img - ref)))
    # Conv matmuls run in bf16 (f32 accumulation) per the perf review; the
    # f32 reference tolerance is relaxed accordingly.
    assert max_err < 3e-2, f"kernel vs reference max abs err = {max_err}"
    print("KERNEL_OK")
</pallas_src>

<mosaic_0001>
module attributes {stable_mosaic.version = 11 : i64} {
  func.func @_generator_kernel(%arg0: memref<32x32xf32, #tpu.memory_space<vmem>>, %arg1: memref<32x1xf32, #tpu.memory_space<vmem>>, %arg2: memref<32x1xf32, #tpu.memory_space<vmem>>, %arg3: memref<32x128xf32, #tpu.memory_space<vmem>>, %arg4: memref<9x1x128xf32, #tpu.memory_space<vmem>>, %arg5: memref<32x288xbf16, #tpu.memory_space<vmem>>, %arg6: memref<32x1xf32, #tpu.memory_space<vmem>>, %arg7: memref<32x1xf32, #tpu.memory_space<vmem>>, %arg8: memref<128x512xf32, #tpu.memory_space<vmem>>, %arg9: memref<9x1x512xf32, #tpu.memory_space<vmem>>, %arg10: memref<16x288xbf16, #tpu.memory_space<vmem>>, %arg11: memref<16x1xf32, #tpu.memory_space<vmem>>, %arg12: memref<16x1xf32, #tpu.memory_space<vmem>>, %arg13: memref<8x144xbf16, #tpu.memory_space<vmem>>, %arg14: memref<8x1xf32, #tpu.memory_space<vmem>>, %arg15: memref<8x512xf32, #tpu.memory_space<vmem>>, %arg16: memref<288x512xbf16, #tpu.memory_space<vmem>>) attributes {dimension_semantics = [], scalar_prefetch = 0 : i64, scratch_operands = 1 : i64, tpu.core_type = #tpu.core_type<tc>} {
    %c0 = arith.constant 0 : index
    %c0_0 = arith.constant 0 : index
    %0 = vector.load %arg0[%c0, %c0_0] : memref<32x32xf32, #tpu.memory_space<vmem>>, vector<32x32xf32>
    %cst = arith.constant dense<0.000000e+00> : vector<32xf32>
    %1 = vector.multi_reduction <add>, %0, %cst [1] : vector<32x32xf32> to vector<32xf32>
    %2 = vector.shape_cast %1 : vector<32xf32> to vector<32x1xf32>
    %cst_1 = arith.constant 3.125000e-02 : f32
    %3 = vector.broadcast %cst_1 : f32 to vector<32x1xf32>
    %4 = arith.mulf %2, %3 : vector<32x1xf32>
    %5 = arith.mulf %0, %0 : vector<32x32xf32>
    %cst_2 = arith.constant dense<0.000000e+00> : vector<32xf32>
    %6 = vector.multi_reduction <add>, %5, %cst_2 [1] : vector<32x32xf32> to vector<32xf32>
    %7 = vector.shape_cast %6 : vector<32xf32> to vector<32x1xf32>
    %cst_3 = arith.constant 3.125000e-02 : f32
    %8 = vector.broadcast %cst_3 : f32 to vector<32x1xf32>
    %9 = arith.mulf %7, %8 : vector<32x1xf32>
    %10 = arith.mulf %4, %4 : vector<32x1xf32>
    %11 = arith.subf %9, %10 : vector<32x1xf32>
    %c0_4 = arith.constant 0 : index
    %c0_5 = arith.constant 0 : index
    %12 = vector.load %arg1[%c0_4, %c0_5] : memref<32x1xf32, #tpu.memory_space<vmem>>, vector<32x1xf32>
    %cst_6 = arith.constant 9.99999974E-6 : f32
    %13 = vector.broadcast %cst_6 : f32 to vector<32x1xf32>
    %14 = arith.addf %11, %13 : vector<32x1xf32>
    %15 = math.rsqrt %14 : vector<32x1xf32>
    %16 = arith.mulf %12, %15 : vector<32x1xf32>
    %c0_7 = arith.constant 0 : index
    %c0_8 = arith.constant 0 : index
    %17 = vector.load %arg2[%c0_7, %c0_8] : memref<32x1xf32, #tpu.memory_space<vmem>>, vector<32x1xf32>
    %18 = arith.mulf %4, %16 : vector<32x1xf32>
    %19 = arith.subf %17, %18 : vector<32x1xf32>
    %20 = vector.broadcast %16 : vector<32x1xf32> to vector<32x32xf32>
    %21 = arith.mulf %0, %20 : vector<32x32xf32>
    %22 = vector.broadcast %19 : vector<32x1xf32> to vector<32x32xf32>
    %23 = arith.addf %21, %22 : vector<32x32xf32>
    %c0_9 = arith.constant 0 : index
    %c0_10 = arith.constant 0 : index
    %24 = vector.load %arg3[%c0_9, %c0_10] : memref<32x128xf32, #tpu.memory_space<vmem>>, vector<32x128xf32>
    %cst_11 = arith.constant dense<0.000000e+00> : vector<32x128xf32>
    %25 = tpu.matmul %23, %24, %cst_11 {dimension_numbers = #tpu.dot_dimension_numbers<[1], [0], [0], [1], [0, 0, 1, 1], [], []>} : vector<32x32xf32>, vector<32x128xf32>, vector<32x128xf32> -> vector<32x128xf32>
    %c0_12 = arith.constant 0 : index
    %c0_13 = arith.constant 0 : index
    %c0_14 = arith.constant 0 : index
    %26 = vector.load %arg4[%c0_12, %c0_13, %c0_14] : memref<9x1x128xf32, #tpu.memory_space<vmem>>, vector<9x1x128xf32>
    %c9_i32 = arith.constant 9 : i32
    %27 = tpu.dynamic_rotate %25 by %c9_i32 dim 1 : vector<32x128xf32>, i32 -> vector<32x128xf32>
    %28 = vector.extract_strided_slice %26 {offsets = [0, 0, 0], sizes = [1, 1, 128], strides = [1, 1, 1]} : vector<9x1x128xf32> to vector<1x1x128xf32>
    %29 = vector.shape_cast %28 : vector<1x1x128xf32> to vector<1x128xf32>
    %30 = vector.broadcast %29 : vector<1x128xf32> to vector<32x128xf32>
    %31 = arith.mulf %27, %30 : vector<32x128xf32>
    %32 = arith.truncf %31 : vector<32x128xf32> to vector<32x128xbf16>
    %c0_15 = arith.constant 0 : index
    %c0_16 = arith.constant 0 : index
    %33 = vector.load %arg16[%c0_15, %c0_16] : memref<288x512xbf16, #tpu.memory_space<vmem>>, vector<32x128xbf16>
    tpu.vector_store %arg16[%c0_15, %c0_16], %32 {strides = array<i32>} : memref<288x512xbf16, #tpu.memory_space<vmem>>, vector<32x128xbf16>,
    %c8_i32 = arith.constant 8 : i32
    %34 = tpu.dynamic_rotate %25 by %c8_i32 dim 1 : vector<32x128xf32>, i32 -> vector<32x128xf32>
    %35 = vector.extract_strided_slice %26 {offsets = [1, 0, 0], sizes = [1, 1, 128], strides = [1, 1, 1]} : vector<9x1x128xf32> to vector<1x1x128xf32>
    %36 = vector.shape_cast %35 : vector<1x1x128xf32> to vector<1x128xf32>
    %37 = vector.broadcast %36 : vector<1x128xf32> to vector<32x128xf32>
    %38 = arith.mulf %34, %37 : vector<32x128xf32>
    %39 = arith.truncf %38 : vector<32x128xf32> to vector<32x128xbf16>
    %c32 = arith.constant 32 : index
    %c0_17 = arith.constant 0 : index
    %40 = vector.load %arg16[%c32, %c0_17] : memref<288x512xbf16, #tpu.memory_space<vmem>>, vector<32x128xbf16>
    tpu.vector_store %arg16[%c32, %c0_17], %39 {strides = array<i32>} : memref<288x512xbf16, #tpu.memory_space<vmem>>, vector<32x128xbf16>,
    %c7_i32 = arith.constant 7 : i32
    %41 = tpu.dynamic_rotate %25 by %c7_i32 dim 1 : vector<32x128xf32>, i32 -> vector<32x128xf32>
    %42 = vector.extract_strided_slice %26 {offsets = [2, 0, 0], sizes = [1, 1, 128], strides = [1, 1, 1]} : vector<9x1x128xf32> to vector<1x1x128xf32>
    %43 = vector.shape_cast %42 : vector<1x1x128xf32> to vector<1x128xf32>
    %44 = vector.broadcast %43 : vector<1x128xf32> to vector<32x128xf32>
    %45 = arith.mulf %41, %44 : vector<32x128xf32>
    %46 = arith.truncf %45 : vector<32x128xf32> to vector<32x128xbf16>
    %c64 = arith.constant 64 : index
    %c0_18 = arith.constant 0 : index
    %47 = vector.load %arg16[%c64, %c0_18] : memref<288x512xbf16, #tpu.memory_space<vmem>>, vector<32x128xbf16>
    tpu.vector_store %arg16[%c64, %c0_18], %46 {strides = array<i32>} : memref<288x512xbf16, #tpu.memory_space<vmem>>, vector<32x128xbf16>,
    %c1_i32 = arith.constant 1 : i32
    %48 = tpu.dynamic_rotate %25 by %c1_i32 dim 1 : vector<32x128xf32>, i32 -> vector<32x128xf32>
    %49 = vector.extract_strided_slice %26 {offsets = [3, 0, 0], sizes = [1, 1, 128], strides = [1, 1, 1]} : vector<9x1x128xf32> to vector<1x1x128xf32>
    %50 = vector.shape_cast %49 : vector<1x1x128xf32> to vector<1x128xf32>
    %51 = vector.broadcast %50 : vector<1x128xf32> to vector<32x128xf32>
    %52 = arith.mulf %48, %51 : vector<32x128xf32>
    %53 = arith.truncf %52 : vector<32x128xf32> to vector<32x128xbf16>
    %c96 = arith.constant 96 : index
    %c0_19 = arith.constant 0 : index
    %54 = vector.load %arg16[%c96, %c0_19] : memref<288x512xbf16, #tpu.memory_space<vmem>>, vector<32x128xbf16>
    tpu.vector_store %arg16[%c96, %c0_19], %53 {strides = array<i32>} : memref<288x512xbf16, #tpu.memory_space<vmem>>, vector<32x128xbf16>,
    %55 = vector.extract_strided_slice %26 {offsets = [4, 0, 0], sizes = [1, 1, 128], strides = [1, 1, 1]} : vector<9x1x128xf32> to vector<1x1x128xf32>
    %56 = vector.shape_cast %55 : vector<1x1x128xf32> to vector<1x128xf32>
    %57 = vector.broadcast %56 : vector<1x128xf32> to vector<32x128xf32>
    %58 = arith.mulf %25, %57 : vector<32x128xf32>
    %59 = arith.truncf %58 : vector<32x128xf32> to vector<32x128xbf16>
    %c128 = arith.constant 128 : index
    %c0_20 = arith.constant 0 : index
    %60 = vector.load %arg16[%c128, %c0_20] : memref<288x512xbf16, #tpu.memory_space<vmem>>, vector<32x128xbf16>
    tpu.vector_store %arg16[%c128, %c0_20], %59 {strides = array<i32>} : memref<288x512xbf16, #tpu.memory_space<vmem>>, vector<32x128xbf16>,
    %c127_i32 = arith.constant 127 : i32
    %61 = tpu.dynamic_rotate %25 by %c127_i32 dim 1 : vector<32x128xf32>, i32 -> vector<32x128xf32>
    %62 = vector.extract_strided_slice %26 {offsets = [5, 0, 0], sizes = [1, 1, 128], strides = [1, 1, 1]} : vector<9x1x128xf32> to vector<1x1x128xf32>
    %63 = vector.shape_cast %62 : vector<1x1x128xf32> to vector<1x128xf32>
    %64 = vector.broadcast %63 : vector<1x128xf32> to vector<32x128xf32>
    %65 = arith.mulf %61, %64 : vector<32x128xf32>
    %66 = arith.truncf %65 : vector<32x128xf32> to vector<32x128xbf16>
    %c160 = arith.constant 160 : index
    %c0_21 = arith.constant 0 : index
    %67 = vector.load %arg16[%c160, %c0_21] : memref<288x512xbf16, #tpu.memory_space<vmem>>, vector<32x128xbf16>
    tpu.vector_store %arg16[%c160, %c0_21], %66 {strides = array<i32>} : memref<288x512xbf16, #tpu.memory_space<vmem>>, vector<32x128xbf16>,
    %c121_i32 = arith.constant 121 : i32
    %68 = tpu.dynamic_rotate %25 by %c121_i32 dim 1 : vector<32x128xf32>, i32 -> vector<32x128xf32>
    %69 = vector.extract_strided_slice %26 {offsets = [6, 0, 0], sizes = [1, 1, 128], strides = [1, 1, 1]} : vector<9x1x128xf32> to vector<1x1x128xf32>
    %70 = vector.shape_cast %69 : vector<1x1x128xf32> to vector<1x128xf32>
    %71 = vector.broadcast %70 : vector<1x128xf32> to vector<32x128xf32>
    %72 = arith.mulf %68, %71 : vector<32x128xf32>
    %73 = arith.truncf %72 : vector<32x128xf32> to vector<32x128xbf16>
    %c192 = arith.constant 192 : index
    %c0_22 = arith.constant 0 : index
    %74 = vector.load %arg16[%c192, %c0_22] : memref<288x512xbf16, #tpu.memory_space<vmem>>, vector<32x128xbf16>
    tpu.vector_store %arg16[%c192, %c0_22], %73 {strides = array<i32>} : memref<288x512xbf16, #tpu.memory_space<vmem>>, vector<32x128xbf16>,
    %c120_i32 = arith.constant 120 : i32
    %75 = tpu.dynamic_rotate %25 by %c120_i32 dim 1 : vector<32x128xf32>, i32 -> vector<32x128xf32>
    %76 = vector.extract_strided_slice %26 {offsets = [7, 0, 0], sizes = [1, 1, 128], strides = [1, 1, 1]} : vector<9x1x128xf32> to vector<1x1x128xf32>
    %77 = vector.shape_cast %76 : vector<1x1x128xf32> to vector<1x128xf32>
    %78 = vector.broadcast %77 : vector<1x128xf32> to vector<32x128xf32>
    %79 = arith.mulf %75, %78 : vector<32x128xf32>
    %80 = arith.truncf %79 : vector<32x128xf32> to vector<32x128xbf16>
    %c224 = arith.constant 224 : index
    %c0_23 = arith.constant 0 : index
    %81 = vector.load %arg16[%c224, %c0_23] : memref<288x512xbf16, #tpu.memory_space<vmem>>, vector<32x128xbf16>
    tpu.vector_store %arg16[%c224, %c0_23], %80 {strides = array<i32>} : memref<288x512xbf16, #tpu.memory_space<vmem>>, vector<32x128xbf16>,
    %c119_i32 = arith.constant 119 : i32
    %82 = tpu.dynamic_rotate %25 by %c119_i32 dim 1 : vector<32x128xf32>, i32 -> vector<32x128xf32>
    %83 = vector.extract_strided_slice %26 {offsets = [8, 0, 0], sizes = [1, 1, 128], strides = [1, 1, 1]} : vector<9x1x128xf32> to vector<1x1x128xf32>
    %84 = vector.shape_cast %83 : vector<1x1x128xf32> to vector<1x128xf32>
    %85 = vector.broadcast %84 : vector<1x128xf32> to vector<32x128xf32>
    %86 = arith.mulf %82, %85 : vector<32x128xf32>
    %87 = arith.truncf %86 : vector<32x128xf32> to vector<32x128xbf16>
    %c256 = arith.constant 256 : index
    %c0_24 = arith.constant 0 : index
    %88 = vector.load %arg16[%c256, %c0_24] : memref<288x512xbf16, #tpu.memory_space<vmem>>, vector<32x128xbf16>
    tpu.vector_store %arg16[%c256, %c0_24], %87 {strides = array<i32>} : memref<288x512xbf16, #tpu.memory_space<vmem>>, vector<32x128xbf16>,
    %c0_25 = arith.constant 0 : index
    %c0_26 = arith.constant 0 : index
    %89 = vector.load %arg16[%c0_25, %c0_26] : memref<288x512xbf16, #tpu.memory_space<vmem>>, vector<288x128xbf16>
    %c0_27 = arith.constant 0 : index
    %c0_28 = arith.constant 0 : index
    %90 = vector.load %arg5[%c0_27, %c0_28] : memref<32x288xbf16, #tpu.memory_space<vmem>>, vector<32x288xbf16>
    %cst_29 = arith.constant dense<0.000000e+00> : vector<32x128xf32>
    %91 = tpu.matmul %90, %89, %cst_29 {dimension_numbers = #tpu.dot_dimension_numbers<[1], [0], [0], [1], [0, 0, 1, 1], [], []>} : vector<32x288xbf16>, vector<288x128xbf16>, vector<32x128xf32> -> vector<32x128xf32>
    %cst_30 = arith.constant dense<0.000000e+00> : vector<32xf32>
    %92 = vector.multi_reduction <add>, %91, %cst_30 [1] : vector<32x128xf32> to vector<32xf32>
    %93 = vector.shape_cast %92 : vector<32xf32> to vector<32x1xf32>
    %cst_31 = arith.constant 7.812500e-03 : f32
    %94 = vector.broadcast %cst_31 : f32 to vector<32x1xf32>
    %95 = arith.mulf %93, %94 : vector<32x1xf32>
    %96 = arith.mulf %91, %91 : vector<32x128xf32>
    %cst_32 = arith.constant dense<0.000000e+00> : vector<32xf32>
    %97 = vector.multi_reduction <add>, %96, %cst_32 [1] : vector<32x128xf32> to vector<32xf32>
    %98 = vector.shape_cast %97 : vector<32xf32> to vector<32x1xf32>
    %cst_33 = arith.constant 7.812500e-03 : f32
    %99 = vector.broadcast %cst_33 : f32 to vector<32x1xf32>
    %100 = arith.mulf %98, %99 : vector<32x1xf32>
    %101 = arith.mulf %95, %95 : vector<32x1xf32>
    %102 = arith.subf %100, %101 : vector<32x1xf32>
    %c0_34 = arith.constant 0 : index
    %c0_35 = arith.constant 0 : index
    %103 = vector.load %arg6[%c0_34, %c0_35] : memref<32x1xf32, #tpu.memory_space<vmem>>, vector<32x1xf32>
    %cst_36 = arith.constant 9.99999974E-6 : f32
    %104 = vector.broadcast %cst_36 : f32 to vector<32x1xf32>
    %105 = arith.addf %102, %104 : vector<32x1xf32>
    %106 = math.rsqrt %105 : vector<32x1xf32>
    %107 = arith.mulf %103, %106 : vector<32x1xf32>
    %c0_37 = arith.constant 0 : index
    %c0_38 = arith.constant 0 : index
    %108 = vector.load %arg7[%c0_37, %c0_38] : memref<32x1xf32, #tpu.memory_space<vmem>>, vector<32x1xf32>
    %109 = arith.mulf %95, %107 : vector<32x1xf32>
    %110 = arith.subf %108, %109 : vector<32x1xf32>
    %111 = vector.broadcast %107 : vector<32x1xf32> to vector<32x128xf32>
    %112 = arith.mulf %91, %111 : vector<32x128xf32>
    %113 = vector.broadcast %110 : vector<32x1xf32> to vector<32x128xf32>
    %114 = arith.addf %112, %113 : vector<32x128xf32>
    %cst_39 = arith.constant 2.000000e-01 : f32
    %115 = vector.broadcast %cst_39 : f32 to vector<32x128xf32>
    %116 = arith.mulf %115, %114 : vector<32x128xf32>
    %117 = arith.maximumf %114, %116 : vector<32x128xf32>
    %c0_40 = arith.constant 0 : index
    %c0_41 = arith.constant 0 : index
    %118 = vector.load %arg8[%c0_40, %c0_41] : memref<128x512xf32, #tpu.memory_space<vmem>>, vector<128x512xf32>
    %cst_42 = arith.constant dense<0.000000e+00> : vector<32x512xf32>
    %119 = tpu.matmul %117, %118, %cst_42 {dimension_numbers = #tpu.dot_dimension_numbers<[1], [0], [0], [1], [0, 0, 1, 1], [], []>} : vector<32x128xf32>, vector<128x512xf32>, vector<32x512xf32> -> vector<32x512xf32>
    %c0_43 = arith.constant 0 : index
    %c0_44 = arith.constant 0 : index
    %c0_45 = arith.constant 0 : index
    %120 = vector.load %arg9[%c0_43, %c0_44, %c0_45] : memref<9x1x512xf32, #tpu.memory_space<vmem>>, vector<9x1x512xf32>
    %c17_i32 = arith.constant 17 : i32
    %121 = tpu.dynamic_rotate %119 by %c17_i32 dim 1 : vector<32x512xf32>, i32 -> vector<32x512xf32>
    %122 = vector.extract_strided_slice %120 {offsets = [0, 0, 0], sizes = [1, 1, 512], strides = [1, 1, 1]} : vector<9x1x512xf32> to vector<1x1x512xf32>
    %123 = vector.shape_cast %122 : vector<1x1x512xf32> to vector<1x512xf32>
    %124 = vector.broadcast %123 : vector<1x512xf32> to vector<32x512xf32>
    %125 = arith.mulf %121, %124 : vector<32x512xf32>
    %126 = arith.truncf %125 : vector<32x512xf32> to vector<32x512xbf16>
    %c0_46 = arith.constant 0 : index
    %c0_47 = arith.constant 0 : index
    %127 = vector.load %arg16[%c0_46, %c0_47] : memref<288x512xbf16, #tpu.memory_space<vmem>>, vector<32x512xbf16>
    tpu.vector_store %arg16[%c0_46, %c0_47], %126 {strides = array<i32>} : memref<288x512xbf16, #tpu.memory_space<vmem>>, vector<32x512xbf16>,
    %c16_i32 = arith.constant 16 : i32
    %128 = tpu.dynamic_rotate %119 by %c16_i32 dim 1 : vector<32x512xf32>, i32 -> vector<32x512xf32>
    %129 = vector.extract_strided_slice %120 {offsets = [1, 0, 0], sizes = [1, 1, 512], strides = [1, 1, 1]} : vector<9x1x512xf32> to vector<1x1x512xf32>
    %130 = vector.shape_cast %129 : vector<1x1x512xf32> to vector<1x512xf32>
    %131 = vector.broadcast %130 : vector<1x512xf32> to vector<32x512xf32>
    %132 = arith.mulf %128, %131 : vector<32x512xf32>
    %133 = arith.truncf %132 : vector<32x512xf32> to vector<32x512xbf16>
    %c32_48 = arith.constant 32 : index
    %c0_49 = arith.constant 0 : index
    %134 = vector.load %arg16[%c32_48, %c0_49] : memref<288x512xbf16, #tpu.memory_space<vmem>>, vector<32x512xbf16>
    tpu.vector_store %arg16[%c32_48, %c0_49], %133 {strides = array<i32>} : memref<288x512xbf16, #tpu.memory_space<vmem>>, vector<32x512xbf16>,
    %c15_i32 = arith.constant 15 : i32
    %135 = tpu.dynamic_rotate %119 by %c15_i32 dim 1 : vector<32x512xf32>, i32 -> vector<32x512xf32>
    %136 = vector.extract_strided_slice %120 {offsets = [2, 0, 0], sizes = [1, 1, 512], strides = [1, 1, 1]} : vector<9x1x512xf32> to vector<1x1x512xf32>
    %137 = vector.shape_cast %136 : vector<1x1x512xf32> to vector<1x512xf32>
    %138 = vector.broadcast %137 : vector<1x512xf32> to vector<32x512xf32>
    %139 = arith.mulf %135, %138 : vector<32x512xf32>
    %140 = arith.truncf %139 : vector<32x512xf32> to vector<32x512xbf16>
    %c64_50 = arith.constant 64 : index
    %c0_51 = arith.constant 0 : index
    %141 = vector.load %arg16[%c64_50, %c0_51] : memref<288x512xbf16, #tpu.memory_space<vmem>>, vector<32x512xbf16>
    tpu.vector_store %arg16[%c64_50, %c0_51], %140 {strides = array<i32>} : memref<288x512xbf16, #tpu.memory_space<vmem>>, vector<32x512xbf16>,
    %c1_i32_52 = arith.constant 1 : i32
    %142 = tpu.dynamic_rotate %119 by %c1_i32_52 dim 1 : vector<32x512xf32>, i32 -> vector<32x512xf32>
    %143 = vector.extract_strided_slice %120 {offsets = [3, 0, 0], sizes = [1, 1, 512], strides = [1, 1, 1]} : vector<9x1x512xf32> to vector<1x1x512xf32>
    %144 = vector.shape_cast %143 : vector<1x1x512xf32> to vector<1x512xf32>
    %145 = vector.broadcast %144 : vector<1x512xf32> to vector<32x512xf32>
    %146 = arith.mulf %142, %145 : vector<32x512xf32>
    %147 = arith.truncf %146 : vector<32x512xf32> to vector<32x512xbf16>
    %c96_53 = arith.constant 96 : index
    %c0_54 = arith.constant 0 : index
    %148 = vector.load %arg16[%c96_53, %c0_54] : memref<288x512xbf16, #tpu.memory_space<vmem>>, vector<32x512xbf16>
    tpu.vector_store %arg16[%c96_53, %c0_54], %147 {strides = array<i32>} : memref<288x512xbf16, #tpu.memory_space<vmem>>, vector<32x512xbf16>,
    %149 = vector.extract_strided_slice %120 {offsets = [4, 0, 0], sizes = [1, 1, 512], strides = [1, 1, 1]} : vector<9x1x512xf32> to vector<1x1x512xf32>
    %150 = vector.shape_cast %149 : vector<1x1x512xf32> to vector<1x512xf32>
    %151 = vector.broadcast %150 : vector<1x512xf32> to vector<32x512xf32>
    %152 = arith.mulf %119, %151 : vector<32x512xf32>
    %153 = arith.truncf %152 : vector<32x512xf32> to vector<32x512xbf16>
    %c128_55 = arith.constant 128 : index
    %c0_56 = arith.constant 0 : index
    %154 = vector.load %arg16[%c128_55, %c0_56] : memref<288x512xbf16, #tpu.memory_space<vmem>>, vector<32x512xbf16>
    tpu.vector_store %arg16[%c128_55, %c0_56], %153 {strides = array<i32>} : memref<288x512xbf16, #tpu.memory_space<vmem>>, vector<32x512xbf16>,
    %c511_i32 = arith.constant 511 : i32
    %155 = tpu.dynamic_rotate %119 by %c511_i32 dim 1 : vector<32x512xf32>, i32 -> vector<32x512xf32>
    %156 = vector.extract_strided_slice %120 {offsets = [5, 0, 0], sizes = [1, 1, 512], strides = [1, 1, 1]} : vector<9x1x512xf32> to vector<1x1x512xf32>
    %157 = vector.shape_cast %156 : vector<1x1x512xf32> to vector<1x512xf32>
    %158 = vector.broadcast %157 : vector<1x512xf32> to vector<32x512xf32>
    %159 = arith.mulf %155, %158 : vector<32x512xf32>
    %160 = arith.truncf %159 : vector<32x512xf32> to vector<32x512xbf16>
    %c160_57 = arith.constant 160 : index
    %c0_58 = arith.constant 0 : index
    %161 = vector.load %arg16[%c160_57, %c0_58] : memref<288x512xbf16, #tpu.memory_space<vmem>>, vector<32x512xbf16>
    tpu.vector_store %arg16[%c160_57, %c0_58], %160 {strides = array<i32>} : memref<288x512xbf16, #tpu.memory_space<vmem>>, vector<32x512xbf16>,
    %c497_i32 = arith.constant 497 : i32
    %162 = tpu.dynamic_rotate %119 by %c497_i32 dim 1 : vector<32x512xf32>, i32 -> vector<32x512xf32>
    %163 = vector.extract_strided_slice %120 {offsets = [6, 0, 0], sizes = [1, 1, 512], strides = [1, 1, 1]} : vector<9x1x512xf32> to vector<1x1x512xf32>
    %164 = vector.shape_cast %163 : vector<1x1x512xf32> to vector<1x512xf32>
    %165 = vector.broadcast %164 : vector<1x512xf32> to vector<32x512xf32>
    %166 = arith.mulf %162, %165 : vector<32x512xf32>
    %167 = arith.truncf %166 : vector<32x512xf32> to vector<32x512xbf16>
    %c192_59 = arith.constant 192 : index
    %c0_60 = arith.constant 0 : index
    %168 = vector.load %arg16[%c192_59, %c0_60] : memref<288x512xbf16, #tpu.memory_space<vmem>>, vector<32x512xbf16>
    tpu.vector_store %arg16[%c192_59, %c0_60], %167 {strides = array<i32>} : memref<288x512xbf16, #tpu.memory_space<vmem>>, vector<32x512xbf16>,
    %c496_i32 = arith.constant 496 : i32
    %169 = tpu.dynamic_rotate %119 by %c496_i32 dim 1 : vector<32x512xf32>, i32 -> vector<32x512xf32>
    %170 = vector.extract_strided_slice %120 {offsets = [7, 0, 0], sizes = [1, 1, 512], strides = [1, 1, 1]} : vector<9x1x512xf32> to vector<1x1x512xf32>
    %171 = vector.shape_cast %170 : vector<1x1x512xf32> to vector<1x512xf32>
    %172 = vector.broadcast %171 : vector<1x512xf32> to vector<32x512xf32>
    %173 = arith.mulf %169, %172 : vector<32x512xf32>
    %174 = arith.truncf %173 : vector<32x512xf32> to vector<32x512xbf16>
    %c224_61 = arith.constant 224 : index
    %c0_62 = arith.constant 0 : index
    %175 = vector.load %arg16[%c224_61, %c0_62] : memref<288x512xbf16, #tpu.memory_space<vmem>>, vector<32x512xbf16>
    tpu.vector_store %arg16[%c224_61, %c0_62], %174 {strides = array<i32>} : memref<288x512xbf16, #tpu.memory_space<vmem>>, vector<32x512xbf16>,
    %c495_i32 = arith.constant 495 : i32
    %176 = tpu.dynamic_rotate %119 by %c495_i32 dim 1 : vector<32x512xf32>, i32 -> vector<32x512xf32>
    %177 = vector.extract_strided_slice %120 {offsets = [8, 0, 0], sizes = [1, 1, 512], strides = [1, 1, 1]} : vector<9x1x512xf32> to vector<1x1x512xf32>
    %178 = vector.shape_cast %177 : vector<1x1x512xf32> to vector<1x512xf32>
    %179 = vector.broadcast %178 : vector<1x512xf32> to vector<32x512xf32>
    %180 = arith.mulf %176, %179 : vector<32x512xf32>
    %181 = arith.truncf %180 : vector<32x512xf32> to vector<32x512xbf16>
    %c256_63 = arith.constant 256 : index
    %c0_64 = arith.constant 0 : index
    %182 = vector.load %arg16[%c256_63, %c0_64] : memref<288x512xbf16, #tpu.memory_space<vmem>>, vector<32x512xbf16>
    tpu.vector_store %arg16[%c256_63, %c0_64], %181 {strides = array<i32>} : memref<288x512xbf16, #tpu.memory_space<vmem>>, vector<32x512xbf16>,
    %c0_65 = arith.constant 0 : index
    %c0_66 = arith.constant 0 : index
    %183 = vector.load %arg16[%c0_65, %c0_66] : memref<288x512xbf16, #tpu.memory_space<vmem>>, vector<288x512xbf16>
    %c0_67 = arith.constant 0 : index
    %c0_68 = arith.constant 0 : index
    %184 = vector.load %arg10[%c0_67, %c0_68] : memref<16x288xbf16, #tpu.memory_space<vmem>>, vector<16x288xbf16>
    %cst_69 = arith.constant dense<0.000000e+00> : vector<16x512xf32>
    %185 = tpu.matmul %184, %183, %cst_69 {dimension_numbers = #tpu.dot_dimension_numbers<[1], [0], [0], [1], [0, 0, 1, 1], [], []>} : vector<16x288xbf16>, vector<288x512xbf16>, vector<16x512xf32> -> vector<16x512xf32>
    %cst_70 = arith.constant dense<0.000000e+00> : vector<16xf32>
    %186 = vector.multi_reduction <add>, %185, %cst_70 [1] : vector<16x512xf32> to vector<16xf32>
    %187 = vector.shape_cast %186 : vector<16xf32> to vector<16x1xf32>
    %cst_71 = arith.constant 0.001953125 : f32
    %188 = vector.broadcast %cst_71 : f32 to vector<16x1xf32>
    %189 = arith.mulf %187, %188 : vector<16x1xf32>
    %190 = arith.mulf %185, %185 : vector<16x512xf32>
    %cst_72 = arith.constant dense<0.000000e+00> : vector<16xf32>
    %191 = vector.multi_reduction <add>, %190, %cst_72 [1] : vector<16x512xf32> to vector<16xf32>
    %192 = vector.shape_cast %191 : vector<16xf32> to vector<16x1xf32>
    %cst_73 = arith.constant 0.001953125 : f32
    %193 = vector.broadcast %cst_73 : f32 to vector<16x1xf32>
    %194 = arith.mulf %192, %193 : vector<16x1xf32>
    %195 = arith.mulf %189, %189 : vector<16x1xf32>
    %196 = arith.subf %194, %195 : vector<16x1xf32>
    %c0_74 = arith.constant 0 : index
    %c0_75 = arith.constant 0 : index
    %197 = vector.load %arg11[%c0_74, %c0_75] : memref<16x1xf32, #tpu.memory_space<vmem>>, vector<16x1xf32>
    %cst_76 = arith.constant 9.99999974E-6 : f32
    %198 = vector.broadcast %cst_76 : f32 to vector<16x1xf32>
    %199 = arith.addf %196, %198 : vector<16x1xf32>
    %200 = math.rsqrt %199 : vector<16x1xf32>
    %201 = arith.mulf %197, %200 : vector<16x1xf32>
    %c0_77 = arith.constant 0 : index
    %c0_78 = arith.constant 0 : index
    %202 = vector.load %arg12[%c0_77, %c0_78] : memref<16x1xf32, #tpu.memory_space<vmem>>, vector<16x1xf32>
    %203 = arith.mulf %189, %201 : vector<16x1xf32>
    %204 = arith.subf %202, %203 : vector<16x1xf32>
    %205 = vector.broadcast %201 : vector<16x1xf32> to vector<16x512xf32>
    %206 = arith.mulf %185, %205 : vector<16x512xf32>
    %207 = vector.broadcast %204 : vector<16x1xf32> to vector<16x512xf32>
    %208 = arith.addf %206, %207 : vector<16x512xf32>
    %cst_79 = arith.constant 2.000000e-01 : f32
    %209 = vector.broadcast %cst_79 : f32 to vector<16x512xf32>
    %210 = arith.mulf %209, %208 : vector<16x512xf32>
    %211 = arith.maximumf %208, %210 : vector<16x512xf32>
    %c0_80 = arith.constant 0 : index
    %c0_81 = arith.constant 0 : index
    %c0_82 = arith.constant 0 : index
    %212 = vector.load %arg9[%c0_80, %c0_81, %c0_82] : memref<9x1x512xf32, #tpu.memory_space<vmem>>, vector<9x1x512xf32>
    %c17_i32_83 = arith.constant 17 : i32
    %213 = tpu.dynamic_rotate %211 by %c17_i32_83 dim 1 : vector<16x512xf32>, i32 -> vector<16x512xf32>
    %214 = vector.extract_strided_slice %212 {offsets = [0, 0, 0], sizes = [1, 1, 512], strides = [1, 1, 1]} : vector<9x1x512xf32> to vector<1x1x512xf32>
    %215 = vector.shape_cast %214 : vector<1x1x512xf32> to vector<1x512xf32>
    %216 = vector.broadcast %215 : vector<1x512xf32> to vector<16x512xf32>
    %217 = arith.mulf %213, %216 : vector<16x512xf32>
    %218 = arith.truncf %217 : vector<16x512xf32> to vector<16x512xbf16>
    %c0_84 = arith.constant 0 : index
    %c0_85 = arith.constant 0 : index
    %219 = vector.load %arg16[%c0_84, %c0_85] : memref<288x512xbf16, #tpu.memory_space<vmem>>, vector<16x512xbf16>
    tpu.vector_store %arg16[%c0_84, %c0_85], %218 {strides = array<i32>} : memref<288x512xbf16, #tpu.memory_space<vmem>>, vector<16x512xbf16>,
    %c16_i32_86 = arith.constant 16 : i32
    %220 = tpu.dynamic_rotate %211 by %c16_i32_86 dim 1 : vector<16x512xf32>, i32 -> vector<16x512xf32>
    %221 = vector.extract_strided_slice %212 {offsets = [1, 0, 0], sizes = [1, 1, 512], strides = [1, 1, 1]} : vector<9x1x512xf32> to vector<1x1x512xf32>
    %222 = vector.shape_cast %221 : vector<1x1x512xf32> to vector<1x512xf32>
    %223 = vector.broadcast %222 : vector<1x512xf32> to vector<16x512xf32>
    %224 = arith.mulf %220, %223 : vector<16x512xf32>
    %225 = arith.truncf %224 : vector<16x512xf32> to vector<16x512xbf16>
    %c16 = arith.constant 16 : index
    %c0_87 = arith.constant 0 : index
    %226 = vector.load %arg16[%c16, %c0_87] : memref<288x512xbf16, #tpu.memory_space<vmem>>, vector<16x512xbf16>
    tpu.vector_store %arg16[%c16, %c0_87], %225 {strides = array<i32>} : memref<288x512xbf16, #tpu.memory_space<vmem>>, vector<16x512xbf16>,
    %c15_i32_88 = arith.constant 15 : i32
    %227 = tpu.dynamic_rotate %211 by %c15_i32_88 dim 1 : vector<16x512xf32>, i32 -> vector<16x512xf32>
    %228 = vector.extract_strided_slice %212 {offsets = [2, 0, 0], sizes = [1, 1, 512], strides = [1, 1, 1]} : vector<9x1x512xf32> to vector<1x1x512xf32>
    %229 = vector.shape_cast %228 : vector<1x1x512xf32> to vector<1x512xf32>
    %230 = vector.broadcast %229 : vector<1x512xf32> to vector<16x512xf32>
    %231 = arith.mulf %227, %230 : vector<16x512xf32>
    %232 = arith.truncf %231 : vector<16x512xf32> to vector<16x512xbf16>
    %c32_89 = arith.constant 32 : index
    %c0_90 = arith.constant 0 : index
    %233 = vector.load %arg16[%c32_89, %c0_90] : memref<288x512xbf16, #tpu.memory_space<vmem>>, vector<16x512xbf16>
    tpu.vector_store %arg16[%c32_89, %c0_90], %232 {strides = array<i32>} : memref<288x512xbf16, #tpu.memory_space<vmem>>, vector<16x512xbf16>,
    %c1_i32_91 = arith.constant 1 : i32
    %234 = tpu.dynamic_rotate %211 by %c1_i32_91 dim 1 : vector<16x512xf32>, i32 -> vector<16x512xf32>
    %235 = vector.extract_strided_slice %212 {offsets = [3, 0, 0], sizes = [1, 1, 512], strides = [1, 1, 1]} : vector<9x1x512xf32> to vector<1x1x512xf32>
    %236 = vector.shape_cast %235 : vector<1x1x512xf32> to vector<1x512xf32>
    %237 = vector.broadcast %236 : vector<1x512xf32> to vector<16x512xf32>
    %238 = arith.mulf %234, %237 : vector<16x512xf32>
    %239 = arith.truncf %238 : vector<16x512xf32> to vector<16x512xbf16>
    %c48 = arith.constant 48 : index
    %c0_92 = arith.constant 0 : index
    %240 = vector.load %arg16[%c48, %c0_92] : memref<288x512xbf16, #tpu.memory_space<vmem>>, vector<16x512xbf16>
    tpu.vector_store %arg16[%c48, %c0_92], %239 {strides = array<i32>} : memref<288x512xbf16, #tpu.memory_space<vmem>>, vector<16x512xbf16>,
    %241 = vector.extract_strided_slice %212 {offsets = [4, 0, 0], sizes = [1, 1, 512], strides = [1, 1, 1]} : vector<9x1x512xf32> to vector<1x1x512xf32>
    %242 = vector.shape_cast %241 : vector<1x1x512xf32> to vector<1x512xf32>
    %243 = vector.broadcast %242 : vector<1x512xf32> to vector<16x512xf32>
    %244 = arith.mulf %211, %243 : vector<16x512xf32>
    %245 = arith.truncf %244 : vector<16x512xf32> to vector<16x512xbf16>
    %c64_93 = arith.constant 64 : index
    %c0_94 = arith.constant 0 : index
    %246 = vector.load %arg16[%c64_93, %c0_94] : memref<288x512xbf16, #tpu.memory_space<vmem>>, vector<16x512xbf16>
    tpu.vector_store %arg16[%c64_93, %c0_94], %245 {strides = array<i32>} : memref<288x512xbf16, #tpu.memory_space<vmem>>, vector<16x512xbf16>,
    %c511_i32_95 = arith.constant 511 : i32
    %247 = tpu.dynamic_rotate %211 by %c511_i32_95 dim 1 : vector<16x512xf32>, i32 -> vector<16x512xf32>
    %248 = vector.extract_strided_slice %212 {offsets = [5, 0, 0], sizes = [1, 1, 512], strides = [1, 1, 1]} : vector<9x1x512xf32> to vector<1x1x512xf32>
    %249 = vector.shape_cast %248 : vector<1x1x512xf32> to vector<1x512xf32>
    %250 = vector.broadcast %249 : vector<1x512xf32> to vector<16x512xf32>
    %251 = arith.mulf %247, %250 : vector<16x512xf32>
    %252 = arith.truncf %251 : vector<16x512xf32> to vector<16x512xbf16>
    %c80 = arith.constant 80 : index
    %c0_96 = arith.constant 0 : index
    %253 = vector.load %arg16[%c80, %c0_96] : memref<288x512xbf16, #tpu.memory_space<vmem>>, vector<16x512xbf16>
    tpu.vector_store %arg16[%c80, %c0_96], %252 {strides = array<i32>} : memref<288x512xbf16, #tpu.memory_space<vmem>>, vector<16x512xbf16>,
    %c497_i32_97 = arith.constant 497 : i32
    %254 = tpu.dynamic_rotate %211 by %c497_i32_97 dim 1 : vector<16x512xf32>, i32 -> vector<16x512xf32>
    %255 = vector.extract_strided_slice %212 {offsets = [6, 0, 0], sizes = [1, 1, 512], strides = [1, 1, 1]} : vector<9x1x512xf32> to vector<1x1x512xf32>
    %256 = vector.shape_cast %255 : vector<1x1x512xf32> to vector<1x512xf32>
    %257 = vector.broadcast %256 : vector<1x512xf32> to vector<16x512xf32>
    %258 = arith.mulf %254, %257 : vector<16x512xf32>
    %259 = arith.truncf %258 : vector<16x512xf32> to vector<16x512xbf16>
    %c96_98 = arith.constant 96 : index
    %c0_99 = arith.constant 0 : index
    %260 = vector.load %arg16[%c96_98, %c0_99] : memref<288x512xbf16, #tpu.memory_space<vmem>>, vector<16x512xbf16>
    tpu.vector_store %arg16[%c96_98, %c0_99], %259 {strides = array<i32>} : memref<288x512xbf16, #tpu.memory_space<vmem>>, vector<16x512xbf16>,
    %c496_i32_100 = arith.constant 496 : i32
    %261 = tpu.dynamic_rotate %211 by %c496_i32_100 dim 1 : vector<16x512xf32>, i32 -> vector<16x512xf32>
    %262 = vector.extract_strided_slice %212 {offsets = [7, 0, 0], sizes = [1, 1, 512], strides = [1, 1, 1]} : vector<9x1x512xf32> to vector<1x1x512xf32>
    %263 = vector.shape_cast %262 : vector<1x1x512xf32> to vector<1x512xf32>
    %264 = vector.broadcast %263 : vector<1x512xf32> to vector<16x512xf32>
    %265 = arith.mulf %261, %264 : vector<16x512xf32>
    %266 = arith.truncf %265 : vector<16x512xf32> to vector<16x512xbf16>
    %c112 = arith.constant 112 : index
    %c0_101 = arith.constant 0 : index
    %267 = vector.load %arg16[%c112, %c0_101] : memref<288x512xbf16, #tpu.memory_space<vmem>>, vector<16x512xbf16>
    tpu.vector_store %arg16[%c112, %c0_101], %266 {strides = array<i32>} : memref<288x512xbf16, #tpu.memory_space<vmem>>, vector<16x512xbf16>,
    %c495_i32_102 = arith.constant 495 : i32
    %268 = tpu.dynamic_rotate %211 by %c495_i32_102 dim 1 : vector<16x512xf32>, i32 -> vector<16x512xf32>
    %269 = vector.extract_strided_slice %212 {offsets = [8, 0, 0], sizes = [1, 1, 512], strides = [1, 1, 1]} : vector<9x1x512xf32> to vector<1x1x512xf32>
    %270 = vector.shape_cast %269 : vector<1x1x512xf32> to vector<1x512xf32>
    %271 = vector.broadcast %270 : vector<1x512xf32> to vector<16x512xf32>
    %272 = arith.mulf %268, %271 : vector<16x512xf32>
    %273 = arith.truncf %272 : vector<16x512xf32> to vector<16x512xbf16>
    %c128_103 = arith.constant 128 : index
    %c0_104 = arith.constant 0 : index
    %274 = vector.load %arg16[%c128_103, %c0_104] : memref<288x512xbf16, #tpu.memory_space<vmem>>, vector<16x512xbf16>
    tpu.vector_store %arg16[%c128_103, %c0_104], %273 {strides = array<i32>} : memref<288x512xbf16, #tpu.memory_space<vmem>>, vector<16x512xbf16>,
    %c0_105 = arith.constant 0 : index
    %c0_106 = arith.constant 0 : index
    %275 = vector.load %arg16[%c0_105, %c0_106] : memref<288x512xbf16, #tpu.memory_space<vmem>>, vector<144x512xbf16>
    %c0_107 = arith.constant 0 : index
    %c0_108 = arith.constant 0 : index
    %276 = vector.load %arg13[%c0_107, %c0_108] : memref<8x144xbf16, #tpu.memory_space<vmem>>, vector<8x144xbf16>
    %cst_109 = arith.constant dense<0.000000e+00> : vector<8x512xf32>
    %277 = tpu.matmul %276, %275, %cst_109 {dimension_numbers = #tpu.dot_dimension_numbers<[1], [0], [0], [1], [0, 0, 1, 1], [], []>} : vector<8x144xbf16>, vector<144x512xbf16>, vector<8x512xf32> -> vector<8x512xf32>
    %c0_110 = arith.constant 0 : index
    %c0_111 = arith.constant 0 : index
    %278 = vector.load %arg14[%c0_110, %c0_111] : memref<8x1xf32, #tpu.memory_space<vmem>>, vector<8x1xf32>
    %279 = vector.broadcast %278 : vector<8x1xf32> to vector<8x512xf32>
    %280 = arith.addf %277, %279 : vector<8x512xf32>
    %281 = arith.negf %280 : vector<8x512xf32>
    %282 = math.exp %281 : vector<8x512xf32>
    %cst_112 = arith.constant 1.000000e+00 : f32
    %283 = vector.broadcast %cst_112 : f32 to vector<8x512xf32>
    %284 = arith.addf %283, %282 : vector<8x512xf32>
    %285 = arith.divf %283, %284 : vector<8x512xf32>
    %c0_113 = arith.constant 0 : index
    %c0_114 = arith.constant 0 : index
    %286 = vector.load %arg15[%c0_113, %c0_114] : memref<8x512xf32, #tpu.memory_space<vmem>>, vector<8x512xf32>
    tpu.vector_store %arg15[%c0_113, %c0_114], %285 {strides = array<i32>} : memref<8x512xf32, #tpu.memory_space<vmem>>, vector<8x512xf32>,
    return
  }
}

</mosaic_0001>

<bundles_post_ra>
// kernel: forward.1
= control target key start
LH: loop header
LB: loop body
LE: loop exit
PB: predicated region body
PF: predicated region fallthrough
CT: control target
= control target key end

     0   :  { %20 = vsyncpa [#allocation4], 0  ;;  %s5031_s18 = smov [#allocation3]   ;;  %s7299_s0 = inlined_call_operand.vmem [shape: f32[32,32], index: 0, kind: input, shape index: {}]   ;;  %s7300_s1 = inlined_call_operand.vmem [shape: f32[32,1], index: 1, kind: input, shape index: {}]   ;;  %s7301_s2 = inlined_call_operand.vmem [shape: f32[32,1], index: 2, kind: input, shape index: {}]   ;;  %s7302_s3 = inlined_call_operand.vmem [shape: f32[32,128], index: 3, kind: input, shape index: {}]   ;;  %s7303_s4 = inlined_call_operand.vmem [shape: f32[9,1,128], index: 4, kind: input, shape index: {}]   ;;  %s7304_s5 = inlined_call_operand.vmem [shape: bf16[32,288], index: 5, kind: input, shape index: {}]   ;;  %s7305_s6 = inlined_call_operand.vmem [shape: f32[32,1], index: 6, kind: input, shape index: {}]   ;;  %s7306_s7 = inlined_call_operand.vmem [shape: f32[32,1], index: 7, kind: input, shape index: {}]   ;;  %s7307_s8 = inlined_call_operand.hbm [shape: f32[128,512], index: 8, kind: input, shape index: {}]   ;;  %s7308_s9 = inlined_call_operand.vmem [shape: f32[9,1,512], index: 9, kind: input, shape index: {}]   ;;  %s7309_s10 = inlined_call_operand.vmem [shape: bf16[16,288], index: 10, kind: input, shape index: {}]   ;;  %s7310_s11 = inlined_call_operand.vmem [shape: f32[16,1], index: 11, kind: input, shape index: {}]   ;;  %s7311_s12 = inlined_call_operand.vmem [shape: f32[16,1], index: 12, kind: input, shape index: {}]   ;;  %s7312_s13 = inlined_call_operand.vmem [shape: bf16[8,144], index: 13, kind: input, shape index: {}]   ;;  %s7313_s14 = inlined_call_operand.vmem [shape: f32[8,1], index: 14, kind: input, shape index: {}]   ;;  %s7314_s15 = inlined_call_operand.vmem [shape: f32[8,512], index: 15, kind: output, shape index: {}]  }
   0x1   :  { %s42_s19 = sshll.u32 %s5031_s18, 4  ;;  %s43_s19 = int_to_ptr.vmem [resolvable:$true] %s42_s19 }
   0x2   :  { %s5017_s20 = scalar_lea.vmem %s43_s19, 8192  ;;  %p5022_p1 = scmp.lt.s32.totalorder %s43_s19, %s43_s19 }
   0x3   :  { %p5018_p0 = scmp.ne.s32.totalorder %s43_s19, %s5017_s20  ;;  %p5023_p2 = scmp.lt.s32.totalorder %s5017_s20, %s5017_s20 }
   0x5   :  { %p5024_p3 = por %p5023_p2, %p5022_p1 }
   0x7   :  { %p5025_p4 = pnand %p5024_p3, %p5018_p0 }
   0x9   :  { %5028 = shalt.err (!%p5025_p4)
}
   0xa   :  { %s5032_s21 = smov 512   ;;  %s5033_s22 = smov 32  }
   0xb   :  { %48 = dma.hbm_to_vmem [thread:$0]  %s7307_s8, 8192, %s43_s19, [#allocation4], %s5032_s21, %s5032_s21, %s5033_s22  }
   0xc   :  { %5029 = dma.done.wait [#allocation4], 8192  }
   0xd   :  { %5030 = vsyncadd [#allocation4], 4294959104  ;;  %vm69_vm0 = vcmask 261120   ;;  %v5136_v0 = vld [vmem:[%s7299_s0 + $0x18] sm:$0xff]  ;;  %v5141_v1 = vld [vmem:[%s7299_s0] sm:$0xff]  ;;  %v7315_v16 = vmov 0  }
   0xe   :  { %v5146_v2 = vld [vmem:[%s7299_s0 + $0x8] sm:$0xff]  ;;  %v79_v3 = vsel %vm69_vm0, %v5136_v0, 0.0  ;;  %v70_v4 = vsel %vm69_vm0, %v5141_v1, 0.0  ;;  %v86_v5 = vmul.f32 %v5141_v1, %v5141_v1  ;;  %v5162_v9 = vld [vmem:[%s7299_s0 + $0x10] sm:$0xff]  ;;  %v89_v12 = vmul.f32 %v5136_v0, %v5136_v0  ;;  %4841 = vset.pattern.permute.xlu0 %v7315_v16  ;;  %4842 = vset.pattern.permute.xlu1 %v7315_v16  ;;  %v114_v45 = vld [vmem:[%s7300_s1] sm:$0xff]  ;;  %s5035_s22 = smov 120  }
   0xf   :  { %80 = vadd.xlane.f32.xlu1 %v79_v3  ;;  %71 = vadd.xlane.f32.xlu0 %v70_v4  ;;  %v73_v6 = vsel %vm69_vm0, %v5146_v2, 0.0  ;;  %v87_v8 = vmul.f32 %v5146_v2, %v5146_v2  ;;  %v76_v11 = vsel %vm69_vm0, %v5162_v9, 0.0  ;;  %v88_v13 = vmul.f32 %v5162_v9, %v5162_v9  ;;  %v115_v48 = vld [vmem:[%s7300_s1 + $0x8] sm:$0xff]  ;;  %v116_v51 = vld [vmem:[%s7300_s1 + $0x10] sm:$0xff]  ;;  %v117_v55 = vld [vmem:[%s7300_s1 + $0x18] sm:$0xff]  ;;  %s5036_s23 = smov 1  }
  0x10   :  { %v90_v7 = vsel %vm69_vm0, %v86_v5, 0.0  ;;  %v99_v14 = vsel %vm69_vm0, %v89_v12, 0.0  ;;  %v193_v56 = vld [vmem:[%s7302_s3 + $0x18] sm:$0xff]  ;;  %v130_v59 = vld [vmem:[%s7301_s2] sm:$0xff]  ;;  %v192_v60 = vld [vmem:[%s7302_s3 + $0x10] sm:$0xff]  ;;  %s5037_s24 = smov 121  }
  0x11   :  { %v93_v10 = vsel %vm69_vm0, %v87_v8, 0.0  ;;  %v96_v15 = vsel %vm69_vm0, %v88_v13, 0.0  ;;  %4800 = vmatprep.subr.mxu0 %v193_v56  ;;  %v191_v61 = vld [vmem:[%s7302_s3 + $0x8] sm:$0xff]  ;;  %v190_v4 = vld [vmem:[%s7302_s3] sm:$0xff]  ;;  %s5038_s25 = smov 7   ;;  %s5039_s26 = smov 127  }
  0x12   :  { %4801 = vmatpush3.msra.mxu0 %v193_v56  ;;  %v131_v3 = vld [vmem:[%s7301_s2 + $0x8] sm:$0xff]  ;;  %s5040_s27 = smov 8   ;;  %s5041_s28 = smov 9   ;;  %vm4193_vm9 = vcmask 130048  }
  0x13   :  { %91 = vadd.xlane.f32.xlu1 %v90_v7  ;;  %74 = vadd.xlane.f32.xlu0 %v73_v6  ;;  %v132_v7 = vld [vmem:[%s7301_s2 + $0x10] sm:$0xff]  ;;  %s5042_s29 = smov 119   ;;  %s5044_s17 = smov 15  }
  0x14   :  { %4802 = vmatprep.subr.mxu0 %v192_v60  ;;  %s5045_s18 = smov 16   ;;  %s5046_s19 = smov 17  }
  0x15   :  { %4803 = vmatpush3.msra.mxu0 %v192_v60  ;;  %s5047_s20 = smov 112   ;;  %s5049_s21 = smov 111  }
  0x16   :  { %4804 = vmatprep.subr.mxu0 %v191_v61 }
  0x17   :  { %94 = vadd.xlane.f32.xlu1 %v93_v10  ;;  %77 = vadd.xlane.f32.xlu0 %v76_v11  ;;  %v133_v11 = vld [vmem:[%s7301_s2 + $0x18] sm:$0xff] }
  0x18   :  { %4805 = vmatpush3.msra.mxu0 %v191_v61 }
  0x19   :  { %4806 = vmatprep.subr.mxu0 %v190_v4 }
  0x1a   :  { %4807 = vmatpush3.msra.mxu0 %v190_v4 }
  0x1b   :  { %100 = vadd.xlane.f32.xlu1 %v99_v14  ;;  %97 = vadd.xlane.f32.xlu0 %v96_v15 }
  0x98   :  { %v81_v17 = vpop.xlane.xlu1 %80  ;;  %v72_v18 = vpop.xlane.xlu0 %71 }
  0x99   :  { %v82_v19 = vmul.f32 0.03125, %v72_v18  ;;  %v85_v26 = vmul.f32 0.03125, %v81_v17 }
  0x9b   :  { %v106_v22 = vmul.f32 %v82_v19, %v82_v19  ;;  %v109_v34 = vmul.f32 %v85_v26, %v85_v26 }
  0x9c   :  { %v92_v20 = vpop.xlane.xlu1 %91  ;;  %v75_v21 = vpop.xlane.xlu0 %74 }
  0x9d   :  { %v102_v23 = vmul.f32 0.03125, %v92_v20  ;;  %v83_v24 = vmul.f32 0.03125, %v75_v21 }
  0x9f   :  { %v110_v25 = vsub.f32 %v102_v23, %v106_v22  ;;  %v107_v30 = vmul.f32 %v83_v24, %v83_v24 }
  0xa0   :  { %v95_v27 = vpop.xlane.xlu1 %94  ;;  %v78_v28 = vpop.xlane.xlu0 %77 }
  0xa1   :  { %v118_v29 = vadd.f32 1e-05, %v110_v25  ;;  %v103_v31 = vmul.f32 0.03125, %v95_v27  ;;  %v84_v32 = vmul.f32 0.03125, %v78_v28 }
  0xa3   :  { %4873 = vrsqrt.f32 %v118_v29  ;;  %v111_v33 = vsub.f32 %v103_v31, %v107_v30  ;;  %v108_v38 = vmul.f32 %v84_v32, %v84_v32 }
  0xa4   :  { %v101_v35 = vpop.xlane.xlu1 %100  ;;  %v98_v36 = vpop.xlane.xlu0 %97 }
  0xa5   :  { %v119_v37 = vadd.f32 1e-05, %v111_v33  ;;  %v105_v39 = vmul.f32 0.03125, %v101_v35  ;;  %v104_v40 = vmul.f32 0.03125, %v98_v36 }
  0xa7   :  { %4875 = vrsqrt.f32 %v119_v37  ;;  %v113_v41 = vsub.f32 %v105_v39, %v109_v34  ;;  %v112_v42 = vsub.f32 %v104_v40, %v108_v38  ;;  %v4857_v39 = vld [vmem:[%s7304_s5 + $0x4] ss:$12 sps:$4 sm:$0xff]   ;;  %v4859_v40 = vld [vmem:[%s7304_s5 + $0x8] ss:$12 sps:$4 sm:$0xff]  }
  0xa8   :  { %854 = vmatprep.mubr.bf16.mxu1 %v4857_v39 }
  0xa9   :  { %v120_v43 = vadd.f32 1e-05, %v112_v42  ;;  %v121_v44 = vadd.f32 1e-05, %v113_v41  ;;  %v4351_v41 = vld [vmem:[%s7303_s4 + $0x7] ss:$0 sm:$0xff] }
  0xab   :  { %4877 = vrsqrt.f32 %v120_v43 }
  0xac   :  { %4879 = vrsqrt.f32 %v121_v44 }
  0xb0   :  { %v4874_v46 = vpop.eup %4873 }
  0xb1   :  { %v126_v47 = vmul.f32 %v4874_v46, %v114_v45  ;;  %v4331_v45 = vld [vmem:[%s7303_s4 + $0x3] ss:$0 sm:$0xff] }
  0xb3   :  { %144 = vperm.xlu0 %4841, %v126_v47   ;;  %v134_v58 = vmul.f32 %v126_v47, %v82_v19 }
  0xb4   :  { %v4876_v49 = vpop.eup %4875 }
  0xb5   :  { %v127_v50 = vmul.f32 %v4876_v49, %v115_v48  ;;  %v138_v62 = vsub.f32 %v130_v59, %v134_v58  ;;  %v5253_v59 = vld [vmem:[%s7303_s4 + $0x2] ss:$0 sm:$0xff] }
  0xb7   :  { %149 = vperm.xlu1 %4842, %v127_v50   ;;  %v135_v63 = vmul.f32 %v127_v50, %v83_v24 }
  0xb8   :  { %v4878_v52 = vpop.eup %4877 }
  0xb9   :  { %v128_v53 = vmul.f32 %v4878_v52, %v116_v51  ;;  %v4880_v54 = vpop.eup %4879  ;;  %v139_v5 = vsub.f32 %v131_v3, %v135_v63  ;;  %v4346_v52 = vld [vmem:[%s7303_s4 + $0x6] ss:$0 sm:$0xff] }
  0xba   :  { %v129_v57 = vmul.f32 %v4880_v54, %v117_v55 }
  0xbb   :  { %154 = vperm.xlu1 %4842, %v128_v53   ;;  %v136_v6 = vmul.f32 %v128_v53, %v84_v32 }
  0xbc   :  { %v137_v10 = vmul.f32 %v129_v57, %v85_v26 }
  0xbd   :  { %v140_v8 = vsub.f32 %v132_v7, %v136_v6 }
  0xbe   :  { %v141_v12 = vsub.f32 %v133_v11, %v137_v10 }
  0xbf   :  { %159 = vperm.xlu1 %4842, %v129_v57  }
  0xc3   :  { %168 = vperm.xlu1 %4842, %v138_v62  }
  0xc7   :  { %173 = vperm.xlu1 %4842, %v139_v5   ;;  %v5259_v5 = vld [vmem:[%s7303_s4 + $0x5] ss:$0 sm:$0xff] }
  0xcb   :  { %178 = vperm.xlu1 %4842, %v140_v8  }
  0xcf   :  { %183 = vperm.xlu1 %4842, %v141_v12  }
 0x12e   :  { %v145_v15 = vpop.permute.xlu0 %144 }
 0x12f   :  { %v162_v18 = vmul.f32 %v145_v15, %v5141_v1 }
 0x132   :  { %v150_v13 = vpop.permute.xlu1 %149 }
 0x133   :  { %v163_v21 = vmul.f32 %v150_v13, %v5146_v2  ;;  %v4336_v2 = vld [vmem:[%s7303_s4 + $0x4] ss:$0 sm:$0xff]  ;;  %v5266_v13 = vld [vmem:[%s7303_s4 + $0x1] ss:$0 sm:$0xff] }
 0x136   :  { %v155_v14 = vpop.permute.xlu1 %154 }
 0x137   :  { %v164_v24 = vmul.f32 %v155_v14, %v5162_v9 }
 0x13a   :  { %v160_v17 = vpop.permute.xlu1 %159 }
 0x13b   :  { %v165_v27 = vmul.f32 %v160_v17, %v5136_v0 }
 0x13e   :  { %v169_v19 = vpop.permute.xlu1 %168 }
 0x13f   :  { %v186_v20 = vadd.f32 %v169_v19, %v162_v18 }
 0x141   :  { %4808 = vmatprep.mubr.msk.f32.mxu0 %vm69_vm0, %v186_v20 }
 0x142   :  { %v174_v22 = vpop.permute.xlu1 %173 }
 0x143   :  { %v187_v23 = vadd.f32 %v174_v22, %v163_v21 }
 0x145   :  { %4809 = vmatmul.mubr.msk.f32.vlgmr.msra.gmra.mxu0 %vm69_vm0, %v187_v23 }
 0x146   :  { %v179_v25 = vpop.permute.xlu1 %178 }
 0x147   :  { %v188_v26 = vadd.f32 %v179_v25, %v164_v24 }
 0x149   :  { %4811 = vmatprep.mubr.msk.f32.mxu0 %vm69_vm0, %v188_v26 }
 0x14a   :  { %v184_v28 = vpop.permute.xlu1 %183 }
 0x14b   :  { %v189_v1 = vadd.f32 %v184_v28, %v165_v27 }
 0x14d   :  { %4812 = vmatmul.mubr.msk.f32.gmra.mxu0 %vm69_vm0, %v189_v1 }
 0x14e   :  { %4818 = vmatprep.mubr.msk.bf16.mxu0 %vm69_vm0, %v4859_v40 }
 0x205   :  { %v4810_v29 = vpop.f32.mrf.mxu0 }
 0x206   :  { %v459_v30 = vmul.f32 %v4810_v29, %v4336_v2  ;;  %560 = vrot.lane.b32.xlu0 %v4810_v29, %s5035_s22 }
 0x207   :  { %v272_v9 = vpop.f32.mrf.mxu0 }
 0x208   :  { %v4633_v31 = vpack.c.bf16 %v459_v30, %v459_v30  ;;  %v458_v32 = vmul.f32 %v4336_v2, %v272_v9  ;;  %558 = vrot.lane.b32.xlu1 %v272_v9, %s5035_s22 }
 0x20a   :  { %479 = vst [vmem:[#allocation2 + $0xe8] sm:$0xf] %v4633_v31  ;;  %v4632_v0 = vpack.c.bf16 %v458_v32, %v458_v32  ;;  %416 = vrot.lane.b32.xlu0 %v4810_v29, %s5036_s23 }
 0x20c   :  { %478 = vst [vmem:[#allocation2 + $0xc8] sm:$0xf] %v4632_v0  ;;  %414 = vrot.lane.b32.xlu1 %v272_v9, %s5036_s23 }
 0x20d   :  { %v4813_v33 = vpop.f32.mrf.mxu0 }
 0x20e   :  { %v461_v34 = vmul.f32 %v4813_v33, %v4336_v2  ;;  %522 = vrot.lane.b32.xlu0 %v4810_v29, %s5037_s24 }
 0x20f   :  { %v282_v35 = vpop.f32.mrf.mxu0 }
 0x210   :  { %v4635_v36 = vpack.c.bf16 %v461_v34, %v461_v34  ;;  %v460_v37 = vmul.f32 %v4336_v2, %v282_v35  ;;  %520 = vrot.lane.b32.xlu1 %v272_v9, %s5037_s24 }
 0x212   :  { %481 = vst [vmem:[#allocation2 + $0x148] sm:$0xf] %v4635_v36  ;;  %v4634_v38 = vpack.c.bf16 %v460_v37, %v460_v37  ;;  %378 = vrot.lane.b32.xlu0 %v4810_v29, %s5038_s25 }
 0x214   :  { %480 = vst [vmem:[#allocation2 + $0x48] sm:$0xf] %v4634_v38  ;;  %376 = vrot.lane.b32.xlu1 %v272_v9, %s5038_s25 }
 0x216   :  { %484 = vrot.lane.b32.xlu0 %v4810_v29, %s5039_s26 }
 0x218   :  { %482 = vrot.lane.b32.xlu1 %v272_v9, %s5039_s26 }
 0x21a   :  { %340 = vrot.lane.b32.xlu0 %v4810_v29, %s5040_s27 }
 0x21c   :  { %338 = vrot.lane.b32.xlu1 %v272_v9, %s5040_s27 }
 0x21e   :  { %564 = vrot.lane.b32.xlu0 %v4813_v33, %s5035_s22 }
 0x220   :  { %562 = vrot.lane.b32.xlu1 %v282_v35, %s5035_s22 }
 0x222   :  { %420 = vrot.lane.b32.xlu0 %v4813_v33, %s5036_s23 }
 0x224   :  { %418 = vrot.lane.b32.xlu1 %v282_v35, %s5036_s23 }
 0x226   :  { %526 = vrot.lane.b32.xlu0 %v4813_v33, %s5037_s24 }
 0x228   :  { %524 = vrot.lane.b32.xlu1 %v282_v35, %s5037_s24 }
 0x22a   :  { %382 = vrot.lane.b32.xlu0 %v4813_v33, %s5038_s25 }
 0x22c   :  { %380 = vrot.lane.b32.xlu1 %v282_v35, %s5038_s25 }
 0x22e   :  { %488 = vrot.lane.b32.xlu0 %v4813_v33, %s5039_s26 }
 0x230   :  { %486 = vrot.lane.b32.xlu1 %v282_v35, %s5039_s26 }
 0x232   :  { %344 = vrot.lane.b32.xlu0 %v4813_v33, %s5040_s27 }
 0x234   :  { %342 = vrot.lane.b32.xlu1 %v282_v35, %s5040_s27 }
 0x236   :  { %306 = vrot.lane.b32.xlu0 %v4813_v33, %s5041_s28 }
 0x238   :  { %300 = vrot.lane.b32.xlu1 %v272_v9, %s5041_s28 }
 0x23a   :  { %602 = vrot.lane.b32.xlu0 %v4813_v33, %s5042_s29 }
 0x23c   :  { %304 = vrot.lane.b32.xlu1 %v282_v35, %s5041_s28 }
 0x23e   :  { %302 = vrot.lane.b32.xlu0 %v4810_v29, %s5041_s28 }
 0x240   :  { %600 = vrot.lane.b32.xlu1 %v282_v35, %s5042_s29 }
 0x242   :  { %598 = vrot.lane.b32.xlu0 %v4810_v29, %s5042_s29 }
 0x244   :  { %596 = vrot.lane.b32.xlu1 %v272_v9, %s5042_s29 }
 0x278   :  { %v561_v42 = vpop.permute.xlu0 %560 }
 0x279   :  { %v573_v43 = vmul.f32 %v4351_v41, %v561_v42 }
 0x27a   :  { %v559_v44 = vpop.permute.xlu1 %558 }
 0x27b   :  { %v4645_v46 = vpack.c.bf16 %v573_v43, %v573_v43  ;;  %v572_v47 = vmul.f32 %v4351_v41, %v559_v44 }
 0x27c   :  { %v417_v48 = vpop.permute.xlu0 %416 }
 0x27d   :  { %593 = vst [vmem:[#allocation2 + $0x208] sm:$0xf] %v4645_v46  ;;  %v4644_v49 = vpack.c.bf16 %v572_v47, %v572_v47  ;;  %v429_v50 = vmul.f32 %v4331_v45, %v417_v48 }
 0x27e   :  { %v415_v51 = vpop.permute.xlu1 %414 }
 0x27f   :  { %592 = vst [vmem:[#allocation2 + $0x118] sm:$0xf] %v4644_v49  ;;  %v4629_v53 = vpack.c.bf16 %v429_v50, %v429_v50  ;;  %v428_v54 = vmul.f32 %v4331_v45, %v415_v51 }
 0x280   :  { %v523_v55 = vpop.permute.xlu0 %522 }
 0x281   :  { %449 = vst [vmem:[#allocation2 + $0x220] sm:$0xf] %v4629_v53  ;;  %v4628_v56 = vpack.c.bf16 %v428_v54, %v428_v54  ;;  %v535_v57 = vmul.f32 %v4346_v52, %v523_v55 }
 0x282   :  { %v521_v58 = vpop.permute.xlu1 %520 }
 0x283   :  { %448 = vst [vmem:[#allocation2 + $0x210] sm:$0xf] %v4628_v56  ;;  %v4641_v60 = vpack.c.bf16 %v535_v57, %v535_v57  ;;  %v534_v61 = vmul.f32 %v4346_v52, %v521_v58  ;;  %v4316_v57 = vld [vmem:[%s7303_s4] ss:$0 sm:$0xff] }
 0x284   :  { %v379_v62 = vpop.permute.xlu0 %378 }
 0x285   :  { %555 = vst [vmem:[#allocation2] sm:$0xf] %v4641_v60  ;;  %v4640_v63 = vpack.c.bf16 %v534_v61, %v534_v61  ;;  %v391_v3 = vmul.f32 %v5253_v59, %v379_v62 }
 0x286   :  { %v377_v4 = vpop.permute.xlu1 %376  ;;  %v4844_v53 = vld [vmem:[#allocation2 + $0x118] ss:$240 sps:$4 sm:$0xff]  }
 0x287   :  { %554 = vst [vmem:[#allocation2 + $0x110] sm:$0xf] %v4640_v63  ;;  %v4625_v6 = vpack.c.bf16 %v391_v3, %v391_v3  ;;  %v390_v7 = vmul.f32 %v5253_v59, %v377_v4 }
 0x288   :  { %v485_v8 = vpop.permute.xlu0 %484 }
 0x289   :  { %411 = vst [vmem:[#allocation2 + $0x30] sm:$0xf] %v4625_v6  ;;  %v4624_v10 = vpack.c.bf16 %v390_v7, %v390_v7  ;;  %v497_v11 = vmul.f32 %v5259_v5, %v485_v8  ;;  %v4356_v6 = vld [vmem:[%s7303_s4 + $0x8] ss:$0 sm:$0xff] }
 0x28a   :  { %v483_v12 = vpop.permute.xlu1 %482 }
 0x28b   :  { %410 = vst [vmem:[#allocation2 + $0x1b0] sm:$0xf] %v4624_v10  ;;  %v4637_v14 = vpack.c.bf16 %v497_v11, %v497_v11  ;;  %v496_v15 = vmul.f32 %v5259_v5, %v483_v12 }
 0x28c   :  { %v341_v17 = vpop.permute.xlu0 %340 }
 0x28d   :  { %517 = vst [vmem:[#allocation2 + $0x38] sm:$0xf] %v4637_v14  ;;  %v4636_v18 = vpack.c.bf16 %v496_v15, %v496_v15  ;;  %v353_v19 = vmul.f32 %v5266_v13, %v341_v17 }
 0x28e   :  { %v339_v20 = vpop.permute.xlu1 %338  ;;  %v4848_v11 = vld [vmem:[#allocation2 + $0x110] ss:$-272 sps:$4 sm:$0xff]  }
 0x28f   :  { %516 = vst [vmem:[#allocation2 + $0x1a0] sm:$0xf] %v4636_v18  ;;  %v4621_v21 = vpack.c.bf16 %v353_v19, %v353_v19  ;;  %v352_v22 = vmul.f32 %v5266_v13, %v339_v20 }
 0x290   :  { %v565_v23 = vpop.permute.xlu0 %564  ;;  %v643_v17 = vld [vmem:[#allocation2 + $0x30] sm:$0xf] }
 0x291   :  { %373 = vst [vmem:[#allocation2 + $0x1e0] sm:$0xf] %v4621_v21  ;;  %v4620_v24 = vpack.c.bf16 %v352_v22, %v352_v22  ;;  %v575_v25 = vmul.f32 %v4351_v41, %v565_v23 }
 0x292   :  { %v563_v26 = vpop.permute.xlu1 %562  ;;  %v642_v12 = vld [vmem:[#allocation2 + $0x1b0] sm:$0xf] }
 0x293   :  { %372 = vst [vmem:[#allocation2 + $0x1d0] sm:$0xf] %v4620_v24  ;;  %v4647_v27 = vpack.c.bf16 %v575_v25, %v575_v25  ;;  %v574_v28 = vmul.f32 %v4351_v41, %v563_v26  ;;  %v4371_v19 = vcombine.low %v642_v12, %v643_v17  ;;  %v1103_v17 = vld [vmem:[#allocation3 + $0x1f8] sm:$0xff] }
 0x294   :  { %v421_v1 = vpop.permute.xlu0 %420 }
 0x295   :  { %595 = vst [vmem:[#allocation2 + $0x158] sm:$0xf] %v4647_v27  ;;  %v4646_v2 = vpack.c.bf16 %v574_v28, %v574_v28  ;;  %v431_v29 = vmul.f32 %v4331_v45, %v421_v1 }
 0x296   :  { %v419_v30 = vpop.permute.xlu1 %418 }
 0x297   :  { %594 = vst [vmem:[#allocation2 + $0x198] sm:$0xf] %v4646_v2  ;;  %v4631_v9 = vpack.c.bf16 %v431_v29, %v431_v29  ;;  %v430_v31 = vmul.f32 %v4331_v45, %v419_v30  ;;  %v4851_v2 = vld [vmem:[#allocation2 + $0x1a0] ss:$-360 sps:$4 sm:$0xff]   ;;  %v652_v30 = vld [vmem:[#allocation2 + $0x48] sm:$0xf] }
 0x298   :  { %v527_v32 = vpop.permute.xlu0 %526 }
 0x299   :  { %451 = vst [vmem:[#allocation2 + $0x170] sm:$0xf] %v4631_v9  ;;  %v4630_v0 = vpack.c.bf16 %v430_v31, %v430_v31  ;;  %v537_v33 = vmul.f32 %v4346_v52, %v527_v32 }
 0x29a   :  { %v525_v34 = vpop.permute.xlu1 %524 }
 0x29b   :  { %450 = vst [vmem:[#allocation2 + $0x1b8] sm:$0xf] %v4630_v0  ;;  %v4643_v35 = vpack.c.bf16 %v537_v33, %v537_v33  ;;  %v536_v36 = vmul.f32 %v4346_v52, %v525_v34  ;;  %v4852_v0 = vld [vmem:[#allocation2 + $0x1d0] ss:$16 sps:$4 sm:$0xff]   ;;  %v653_v33 = vld [vmem:[#allocation2 + $0x148] sm:$0xf] }
 0x29c   :  { %v383_v37 = vpop.permute.xlu0 %382  ;;  %v665_v42 = vld [vmem:[#allocation2 + $0x158] sm:$0xf] }
 0x29d   :  { %557 = vst [vmem:[#allocation2 + $0x70] sm:$0xf] %v4643_v35  ;;  %v4642_v38 = vpack.c.bf16 %v536_v36, %v536_v36  ;;  %v393_v39 = vmul.f32 %v5253_v59, %v383_v37  ;;  %v4376_v36 = vcombine.low %v652_v30, %v653_v33  ;;  %v650_v37 = vld [vmem:[#allocation2 + $0xc8] sm:$0xf]  ;;  %v1083_v33 = vld [vmem:[#allocation3 + $0x158] sm:$0xff] }
 0x29e   :  { %v381_v40 = vpop.permute.xlu1 %380  ;;  %v664_v41 = vld [vmem:[#allocation2 + $0x198] sm:$0xf]  ;;  %v1085_v30 = vld [vmem:[#allocation3 + $0x168] sm:$0xff] }
 0x29f   :  { %556 = vst [vmem:[#allocation2 + $0xd8] sm:$0xf] %v4642_v38  ;;  %v4627_v43 = vpack.c.bf16 %v393_v39, %v393_v39  ;;  %v392_v44 = vmul.f32 %v5253_v59, %v381_v40  ;;  %v4382_v45 = vcombine.low %v664_v41, %v665_v42  ;;  %v4845_v59 = vld [vmem:[#allocation2 + $0x210] ss:$16 sps:$4 sm:$0xff]   ;;  %v651_v40 = vld [vmem:[#allocation2 + $0xe8] sm:$0xf] }
 0x2a0   :  { %v489_v46 = vpop.permute.xlu0 %488  ;;  %v4375_v41 = vcombine.low %v650_v37, %v651_v40  ;;  %v1079_v37 = vld [vmem:[#allocation3 + $0x138] sm:$0xff]  ;;  %v1073_v40 = vld [vmem:[#allocation3 + $0x108] sm:$0xff] }
 0x2a1   :  { %413 = vst [vmem:[#allocation2 + $0x78] sm:$0xf] %v4627_v43  ;;  %v4626_v47 = vpack.c.bf16 %v392_v44, %v392_v44  ;;  %v499_v48 = vmul.f32 %v5259_v5, %v489_v46  ;;  %4768 = vmatprep.subr.bf16.mxu1 %v4382_v45  ;;  %v4855_v46 = vld [vmem:[%s7304_s5] ss:$12 sps:$4 sm:$0xff]  }
 0x2a2   :  { %v487_v49 = vpop.permute.xlu1 %486  ;;  %v4843_v50 = vld [vmem:[#allocation2 + $0x1b8] ss:$-72 sps:$4 sm:$0xff]  }
 0x2a3   :  { %412 = vst [vmem:[#allocation2 + $0x160] sm:$0xf] %v4626_v47  ;;  %v4639_v51 = vpack.c.bf16 %v499_v48, %v499_v48  ;;  %v498_v52 = vmul.f32 %v5259_v5, %v487_v49  ;;  %4769 = vmatpush3.bf16.msra.mxu1 %v4843_v50  ;;  %v4861_v47 = vld [vmem:[%s7304_s5 + $0x1c] ss:$12 sps:$4 sm:$0xff]   ;;  %v4860_v49 = vld [vmem:[%s7304_s5 + $0x20] ss:$12 sps:$4 sm:$0xff]  }
 0x2a4   :  { %v345_v54 = vpop.permute.xlu0 %344  ;;  %4770 = vmatprep.subr.bf16.mxu1 %v4844_v53  ;;  %v4863_v50 = vld [vmem:[%s7304_s5 + $0x18] ss:$12 sps:$4 sm:$0xff]   ;;  %s5048_s5 = smov 113  }
 0x2a5   :  { %519 = vst [vmem:[#allocation2 + $0x138] sm:$0xf] %v4639_v51  ;;  %v4638_v55 = vpack.c.bf16 %v498_v52, %v498_v52  ;;  %v355_v56 = vmul.f32 %v5266_v13, %v345_v54 }
 0x2a6   :  { %v343_v58 = vpop.permute.xlu1 %342  ;;  %v4846_v60 = vld [vmem:[#allocation2 + $0xd8] ss:$-104 sps:$4 sm:$0xff]  }
 0x2a7   :  { %518 = vst [vmem:[#allocation2 + $0xc0] sm:$0xf] %v4638_v55  ;;  %v4623_v61 = vpack.c.bf16 %v355_v56, %v355_v56  ;;  %v354_v62 = vmul.f32 %v5266_v13, %v343_v58  ;;  %4771 = vmatpush3.bf16.msra.mxu1 %v4845_v59 }
 0x2a8   :  { %v307_v63 = vpop.permute.xlu0 %306  ;;  %4772 = vmatprep.subr.bf16.mxu1 %v4846_v60 }
 0x2a9   :  { %375 = vst [vmem:[#allocation2 + $0x8] sm:$0xf] %v4623_v61  ;;  %v4622_v3 = vpack.c.bf16 %v354_v62, %v354_v62  ;;  %v317_v4 = vmul.f32 %v4316_v57, %v307_v63 }
 0x2aa   :  { %v301_v5 = vpop.permute.xlu1 %300  ;;  %v4847_v7 = vld [vmem:[#allocation2 + $0x160] ss:$-232 sps:$4 sm:$0xff]  }
 0x2ab   :  { %374 = vst [vmem:[#allocation2 + $0xe0] sm:$0xf] %v4622_v3  ;;  %v4619_v8 = vpack.c.bf16 %v317_v4, %v317_v4  ;;  %v314_v10 = vmul.f32 %v4316_v57, %v301_v5  ;;  %4773 = vmatpush3.bf16.msra.mxu1 %v4847_v7 }
 0x2ac   :  { %v603_v14 = vpop.permute.xlu0 %602  ;;  %4774 = vmatprep.subr.bf16.mxu1 %v4848_v11 }
 0x2ad   :  { %337 = vst [vmem:[#allocation2 + $0x50] sm:$0xf] %v4619_v8  ;;  %v4616_v13 = vpack.c.bf16 %v314_v10, %v314_v10  ;;  %v613_v15 = vmul.f32 %v4356_v6, %v603_v14 }
 0x2ae   :  { %v305_v18 = vpop.permute.xlu1 %304  ;;  %v4849_v20 = vld [vmem:[#allocation2 + $0xc0] ss:$120 sps:$4 sm:$0xff]  }
 0x2af   :  { %334 = vst [vmem:[#allocation2 + $0x190] sm:$0xf] %v4616_v13  ;;  %v4651_v21 = vpack.c.bf16 %v613_v15, %v613_v15  ;;  %v316_v22 = vmul.f32 %v4316_v57, %v305_v18  ;;  %4775 = vmatpush3.bf16.msra.mxu1 %v4371_v19  ;;  %v1101_v15 = vld [vmem:[#allocation3 + $0x1e8] sm:$0xff]  ;;  %v1100_v18 = vld [vmem:[#allocation3 + $0x1e0] sm:$0xff]  ;;  %v1102_v19 = vld [vmem:[#allocation3 + $0x1f0] sm:$0xff] }
 0x2b0   :  { %v303_v23 = vpop.permute.xlu0 %302  ;;  %4776 = vmatprep.subr.bf16.mxu1 %v4849_v20  ;;  %v1097_v20 = vld [vmem:[#allocation3 + $0x1c8] sm:$0xff] }
 0x2b1   :  { %633 = vst [vmem:[#allocation2 + $0xa8] sm:$0xf] %v4651_v21  ;;  %v4618_v24 = vpack.c.bf16 %v316_v22, %v316_v22  ;;  %v315_v25 = vmul.f32 %v4316_v57, %v303_v23  ;;  %v1099_v21 = vld [vmem:[#allocation3 + $0x1d8] sm:$0xff]  ;;  %v1096_v22 = vld [vmem:[#allocation3 + $0x1c0] sm:$0xff]  ;;  %v1098_v23 = vld [vmem:[#allocation3 + $0x1d0] sm:$0xff] }
 0x2b2   :  { %v601_v26 = vpop.permute.xlu1 %600  ;;  %v4850_v27 = vld [vmem:[#allocation2 + $0xe0] ss:$-216 sps:$4 sm:$0xff]  }
 0x2b3   :  { %336 = vst [vmem:[#allocation2 + $0x80] sm:$0xf] %v4618_v24  ;;  %v4617_v28 = vpack.c.bf16 %v315_v25, %v315_v25  ;;  %v612_v1 = vmul.f32 %v4356_v6, %v601_v26  ;;  %4777 = vmatpush3.bf16.msra.mxu1 %v4850_v27  ;;  %v1093_v24 = vld [vmem:[#allocation3 + $0x1a8] sm:$0xff]  ;;  %v1095_v25 = vld [vmem:[#allocation3 + $0x1b8] sm:$0xff]  ;;  %v1092_v26 = vld [vmem:[#allocation3 + $0x1a0] sm:$0xff] }
 0x2b4   :  { %v599_v29 = vpop.permute.xlu0 %598  ;;  %4778 = vmatprep.subr.bf16.mxu1 %v4851_v2  ;;  %v1094_v27 = vld [vmem:[#allocation3 + $0x1b0] sm:$0xff]  ;;  %v1088_v2 = vld [vmem:[#allocation3 + $0x180] sm:$0xff] }
 0x2b5   :  { %335 = vst [vmem:[#allocation2 + $0x10] sm:$0xf] %v4617_v28  ;;  %v4650_v9 = vpack.c.bf16 %v612_v1, %v612_v1  ;;  %v611_v31 = vmul.f32 %v4356_v6, %v599_v29  ;;  %v1089_v28 = vld [vmem:[#allocation3 + $0x188] sm:$0xff]  ;;  %v1091_v1 = vld [vmem:[#allocation3 + $0x198] sm:$0xff]  ;;  %v1090_v29 = vld [vmem:[#allocation3 + $0x190] sm:$0xff] }
 0x2b6   :  { %v597_v32 = vpop.permute.xlu1 %596  ;;  %v634_v42 = vld [vmem:[#allocation2 + $0x190] sm:$0xf] }
 0x2b7   :  { %632 = vst [vmem:[#allocation2 + $0xf0] sm:$0xf] %v4650_v9  ;;  %v4649_v34 = vpack.c.bf16 %v611_v31, %v611_v31  ;;  %v610_v35 = vmul.f32 %v4356_v6, %v597_v32  ;;  %4779 = vmatpush3.bf16.msra.mxu1 %v4852_v0  ;;  %v1087_v9 = vld [vmem:[#allocation3 + $0x178] sm:$0xff]  ;;  %v1084_v31 = vld [vmem:[#allocation3 + $0x160] sm:$0xff]  ;;  %v1086_v32 = vld [vmem:[#allocation3 + $0x170] sm:$0xff] }
 0x2b8   :  { %4780 = vmatprep.subr.bf16.mxu1 %v4376_v36  ;;  %v1081_v0 = vld [vmem:[#allocation3 + $0x148] sm:$0xff] }
 0x2b9   :  { %631 = vst [vmem:[#allocation2 + $0x1f0] sm:$0xf] %v4649_v34  ;;  %v4648_v38 = vpack.c.bf16 %v610_v35, %v610_v35  ;;  %v1080_v34 = vld [vmem:[#allocation3 + $0x140] sm:$0xff]  ;;  %v1082_v35 = vld [vmem:[#allocation3 + $0x150] sm:$0xff]  ;;  %v1077_v36 = vld [vmem:[#allocation3 + $0x128] sm:$0xff] }
 0x2ba   :  { %v4853_v39 = vld [vmem:[#allocation2 + $0x80] ss:$-48 sps:$4 sm:$0xff]  }
 0x2bb   :  { %630 = vst [vmem:[#allocation2 + $0x100] sm:$0xf] %v4648_v38  ;;  %4781 = vmatpush3.bf16.msra.mxu1 %v4853_v39  ;;  %v1076_v38 = vld [vmem:[#allocation3 + $0x120] sm:$0xff]  ;;  %v1078_v39 = vld [vmem:[#allocation3 + $0x130] sm:$0xff] }
 0x2bc   :  { %v635_v43 = vld [vmem:[#allocation2 + $0x10] sm:$0xf]  ;;  %4782 = vmatprep.subr.bf16.mxu1 %v4375_v41  ;;  %v1075_v41 = vld [vmem:[#allocation3 + $0x118] sm:$0xff] }
 0x2bd   :  { %v4367_v44 = vcombine.low %v634_v42, %v635_v43  ;;  %v1072_v42 = vld [vmem:[#allocation3 + $0x100] sm:$0xff]  ;;  %v1074_v43 = vld [vmem:[#allocation3 + $0x110] sm:$0xff] }
 0x2be   :  { %v4854_v45 = vld [vmem:[#allocation2 + $0xf0] ss:$-72 sps:$4 sm:$0xff]  }
 0x2bf   :  { %4783 = vmatpush3.bf16.msra.mxu1 %v4367_v44  ;;  %4814 = vmatprep.subr.bf16.mxu0 %v4854_v45  ;;  %v1069_v44 = vld [vmem:[#allocation3 + $0xe8] sm:$0xff] }
 0x2c0   :  { %4815 = vmatpush3.bf16.msra.mxu0 %v4854_v45  ;;  %1193 = vmatprep.subr.mxu1 %v1103_v17  ;;  %v1071_v45 = vld [vmem:[#allocation3 + $0xf8] sm:$0xff] }
 0x2c2   :  { %v4858_v48 = vld [vmem:[#allocation2 + $0x100] ss:$240 sps:$4 sm:$0xff]   ;;  %855 = vmatmul.mubr.bf16.vlgmr.msra.gmra.mxu1 %v4855_v46 }
 0x2c3   :  { %4816 = vmatprep.subr.bf16.mxu0 %v4858_v48  ;;  %862 = vmatprep.mubr.bf16.mxu1 %v4861_v47  ;;  %v1068_v46 = vld [vmem:[#allocation3 + $0xe0] sm:$0xff]  ;;  %v1070_v47 = vld [vmem:[#allocation3 + $0xf0] sm:$0xff] }
 0x2c4   :  { %4817 = vmatpush3.bf16.msra.mxu0 %v4858_v48  ;;  %1194 = vmatpush1.msra.mxu1 %v1102_v19  ;;  %v1065_v48 = vld [vmem:[#allocation3 + $0xc8] sm:$0xff] }
 0x2c5   :  { %1104 = vmatprep.subr.mxu0 %v1101_v15  ;;  %1195 = vmatprep.subr.mxu1 %v1099_v21 }
 0x2c6   :  { %1196 = vmatpush1.msra.mxu1 %v1098_v23 }
 0x2c7   :  { %4819 = vmatmul.mubr.msk.bf16.vlgmr.msra.gmra.mxu0 %vm69_vm0, %v4860_v49  ;;  %1197 = vmatprep.subr.mxu1 %v1095_v25  ;;  %v1067_v49 = vld [vmem:[#allocation3 + $0xd8] sm:$0xff] }
 0x2c8   :  { %1105 = vmatpush1.msra.mxu0 %v1100_v18  ;;  %1198 = vmatpush1.msra.mxu1 %v1094_v27 }
 0x2c9   :  { %1106 = vmatprep.subr.mxu0 %v1097_v20  ;;  %1199 = vmatprep.subr.mxu1 %v1091_v1  ;;  %v1057_v1 = vld [vmem:[#allocation3 + $0x88] sm:$0xff] }
 0x2ca   :  { %863 = vmatmul.mubr.bf16.gmra.mxu1 %v4863_v50  ;;  %1107 = vmatpush1.msra.mxu0 %v1096_v22  ;;  %v1064_v50 = vld [vmem:[#allocation3 + $0xc0] sm:$0xff] }
 0x2cb   :  { %1108 = vmatprep.subr.mxu0 %v1093_v24  ;;  %1200 = vmatpush1.msra.mxu1 %v1090_v29 }
 0x2cc   :  { %1109 = vmatpush1.msra.mxu0 %v1092_v26  ;;  %1201 = vmatprep.subr.mxu1 %v1087_v9  ;;  %v1058_v9 = vld [vmem:[#allocation3 + $0x90] sm:$0xff] }
 0x2cd   :  { %1110 = vmatprep.subr.mxu0 %v1089_v28  ;;  %1202 = vmatpush1.msra.mxu1 %v1086_v32  ;;  %v956_v28 = vld [vmem:[%s7305_s6] sm:$0xff] }
 0x2ce   :  { %1111 = vmatpush1.msra.mxu0 %v1088_v2  ;;  %1203 = vmatprep.subr.mxu1 %v1083_v33  ;;  %v1059_v2 = vld [vmem:[#allocation3 + $0x98] sm:$0xff]  ;;  %v1052_v33 = vld [vmem:[#allocation3 + $0x60] sm:$0xff] }
 0x2cf   :  { %1112 = vmatprep.subr.mxu0 %v1085_v30  ;;  %1204 = vmatpush1.msra.mxu1 %v1082_v35  ;;  %v1056_v30 = vld [vmem:[#allocation3 + $0x80] sm:$0xff] }
 0x2d0   :  { %1113 = vmatpush1.msra.mxu0 %v1084_v31  ;;  %1205 = vmatprep.subr.mxu1 %v1079_v37  ;;  %v1053_v31 = vld [vmem:[#allocation3 + $0x68] sm:$0xff] }
 0x2d1   :  { %1114 = vmatprep.subr.mxu0 %v1081_v0  ;;  %1206 = vmatpush1.msra.mxu1 %v1078_v39  ;;  %v1055_v0 = vld [vmem:[#allocation3 + $0x78] sm:$0xff]  ;;  %v1049_v37 = vld [vmem:[#allocation3 + $0x48] sm:$0xff] }
 0x2d2   :  { %1115 = vmatpush1.msra.mxu0 %v1080_v34  ;;  %1207 = vmatprep.subr.mxu1 %v1075_v41  ;;  %v1054_v34 = vld [vmem:[#allocation3 + $0x70] sm:$0xff] }
 0x2d3   :  { %1116 = vmatprep.subr.mxu0 %v1077_v36  ;;  %1208 = vmatpush1.msra.mxu1 %v1074_v43  ;;  %v972_v36 = vld [vmem:[%s7306_s7] sm:$0xff]  ;;  %v1050_v41 = vld [vmem:[#allocation3 + $0x50] sm:$0xff]  ;;  %v1045_v43 = vld [vmem:[#allocation3 + $0x28] sm:$0xff] }
 0x2d4   :  { %1117 = vmatpush1.msra.mxu0 %v1076_v38  ;;  %1209 = vmatprep.subr.mxu1 %v1071_v45  ;;  %v1051_v38 = vld [vmem:[#allocation3 + $0x58] sm:$0xff] }
 0x2d5   :  { %1118 = vmatprep.subr.mxu0 %v1073_v40  ;;  %1210 = vmatpush1.msra.mxu1 %v1070_v47  ;;  %v1048_v40 = vld [vmem:[#allocation3 + $0x40] sm:$0xff]  ;;  %v1046_v47 = vld [vmem:[#allocation3 + $0x30] sm:$0xff] }
 0x2d6   :  { %1119 = vmatpush1.msra.mxu0 %v1072_v42  ;;  %1211 = vmatprep.subr.mxu1 %v1067_v49  ;;  %v957_v42 = vld [vmem:[%s7305_s6 + $0x8] sm:$0xff] }
 0x2d7   :  { %1120 = vmatprep.subr.mxu0 %v1069_v44  ;;  %v1047_v44 = vld [vmem:[#allocation3 + $0x38] sm:$0xff]  ;;  %v1041_v49 = vld [vmem:[#allocation3 + $0x8] sm:$0xff] }
 0x2d8   :  { %1121 = vmatpush1.msra.mxu0 %v1068_v46  ;;  %v1044_v46 = vld [vmem:[#allocation3 + $0x20] sm:$0xff] }
 0x2d9   :  { %1122 = vmatprep.subr.mxu0 %v1065_v48 }
 0x2da   :  { %1123 = vmatpush1.msra.mxu0 %v1064_v50  ;;  %v1043_v50 = vld [vmem:[#allocation3 + $0x18] sm:$0xff] }
 0x382   :  { %v4784_v51 = vpop.f32.mrf.mxu1 }
 0x384   :  { %v4785_v52 = vpop.f32.mrf.mxu1 }
 0x385   :  { %v4786_v55 = vadd.f32 %v4785_v52, %v4784_v51  ;;  %v1066_v51 = vld [vmem:[#allocation3 + $0xd0] sm:$0xff]  ;;  %v1061_v52 = vld [vmem:[#allocation3 + $0xa8] sm:$0xff] }
 0x386   :  { %v4787_v53 = vpop.f32.mrf.mxu1  ;;  %1212 = vmatpush1.msra.mxu1 %v1066_v51  ;;  %1124 = vmatprep.subr.mxu0 %v1061_v52  ;;  %v1040_v52 = vld [vmem:[#allocation3] sm:$0xff] }
 0x387   :  { %v4820_v54 = vpop.f32.mrf.mxu0 }
 0x388   :  { %v4788_v56 = vpop.f32.mrf.mxu1 }
 0x389   :  { %v905_v57 = vpop.f32.mrf.mxu0  ;;  %v4789_v61 = vadd.f32 %v4788_v56, %v4787_v53  ;;  %v1063_v53 = vld [vmem:[#allocation3 + $0xb8] sm:$0xff] }
 0x38a   :  { %v5296_v58 = vadd.f32 %v4786_v55, %v905_v57  ;;  %v4790_v59 = vpop.f32.mrf.mxu1  ;;  %v1062_v55 = vld [vmem:[#allocation3 + $0xb0] sm:$0xff]  ;;  %1213 = vmatprep.subr.mxu1 %v1063_v53 }
 0x38b   :  { %v4821_v60 = vpop.f32.mrf.mxu0  ;;  %1214 = vmatpush1.msra.mxu1 %v1062_v55  ;;  %v1042_v53 = vld [vmem:[#allocation3 + $0x10] sm:$0xff]  ;;  %v973_v55 = vld [vmem:[%s7306_s7 + $0x8] sm:$0xff] }
 0x38c   :  { %v4791_v62 = vpop.f32.mrf.mxu1  ;;  %920 = vadd.xlane.f32.xlu1 %v5296_v58  ;;  %v932_v63 = vmul.f32 %v5296_v58, %v5296_v58  ;;  %1215 = vmatprep.subr.mxu1 %v1059_v2 }
 0x38d   :  { %v4792_v3 = vadd.f32 %v4791_v62, %v4790_v59  ;;  %v908_v4 = vpop.f32.mrf.mxu0  ;;  %1216 = vmatpush1.msra.mxu1 %v1058_v9 }
 0x38e   :  { %v5301_v5 = vadd.f32 %v4789_v61, %v908_v4  ;;  %v4793_v6 = vpop.f32.mrf.mxu1  ;;  %936 = vadd.xlane.f32.xlu0 %v932_v63  ;;  %1217 = vmatprep.subr.mxu1 %v1055_v0  ;;  %v1323_v0 = vlaneseq }
 0x38f   :  { %v5303_v7 = vadd.f32 %v4820_v54, %v4792_v3  ;;  %v1060_v54 = vld [vmem:[#allocation3 + $0xa0] sm:$0xff]  ;;  %1218 = vmatpush1.msra.mxu1 %v1054_v34 }
 0x390   :  { %v4794_v8 = vpop.f32.mrf.mxu1  ;;  %v933_v10 = vmul.f32 %v5301_v5, %v5301_v5  ;;  %1125 = vmatpush1.msra.mxu0 %v1060_v54  ;;  %1219 = vmatprep.subr.mxu1 %v1051_v38  ;;  %v958_v54 = vld [vmem:[%s7305_s6 + $0x10] sm:$0xff] }
 0x391   :  { %v4795_v11 = vadd.f32 %v4794_v8, %v4793_v6  ;;  %v934_v14 = vmul.f32 %v5303_v7, %v5303_v7  ;;  %1126 = vmatprep.subr.mxu0 %v1057_v1  ;;  %1220 = vmatpush1.msra.mxu1 %v1050_v41 }
 0x392   :  { %938 = vadd.xlane.f32.xlu1 %v933_v10  ;;  %922 = vadd.xlane.f32.xlu0 %v5301_v5 }
 0x393   :  { %v5308_v12 = vadd.f32 %v4821_v60, %v4795_v11  ;;  %1127 = vmatpush1.msra.mxu0 %v1056_v30  ;;  %1221 = vmatprep.subr.mxu1 %v1047_v44 }
 0x394   :  { %1128 = vmatprep.subr.mxu0 %v1053_v31  ;;  %1222 = vmatpush1.msra.mxu1 %v1046_v47 }
 0x395   :  { %v935_v13 = vmul.f32 %v5308_v12, %v5308_v12  ;;  %1129 = vmatpush1.msra.mxu0 %v1052_v33  ;;  %1223 = vmatprep.subr.mxu1 %v1043_v50  ;;  %v1344_v33 = vshrl.u32 %v1323_v0, 7 }
 0x396   :  { %940 = vadd.xlane.f32.xlu1 %v934_v14  ;;  %924 = vadd.xlane.f32.xlu0 %v5303_v7 }
 0x397   :  { %1130 = vmatprep.subr.mxu0 %v1049_v37  ;;  %1224 = vmatpush1.msra.mxu1 %v1042_v53  ;;  %v5360_v34 = vsub.s32 0, %v1344_v33  ;;  %v1286_v37 = vld [vmem:[%s7308_s9 + $0x10] sm:$0xf] }
 0x398   :  { %1131 = vmatpush1.msra.mxu0 %v1048_v40 }
 0x399   :  { %1132 = vmatprep.subr.mxu0 %v1045_v43  ;;  %7421 = vst [vmem:[#allocation6_spill] sm:$0xff] %v5360_v34  ;;  %v1865_v38 = vrot.slane %v1286_v37, %v5360_v34 }
 0x39a   :  { %942 = vadd.xlane.f32.xlu1 %v935_v13  ;;  %926 = vadd.xlane.f32.xlu0 %v5308_v12 }
 0x39b   :  { %1133 = vmatpush1.msra.mxu0 %v1044_v46 }
 0x39c   :  { %1134 = vmatprep.subr.mxu0 %v1041_v49 }
 0x39d   :  { %1135 = vmatpush1.msra.mxu0 %v1040_v52 }
 0x415   :  { %v921_v56 = vpop.xlane.xlu1 %920 }
 0x416   :  { %v928_v57 = vmul.f32 0.0078125, %v921_v56 }
 0x417   :  { %v937_v59 = vpop.xlane.xlu0 %936 }
 0x418   :  { %v948_v60 = vmul.f32 %v928_v57, %v928_v57  ;;  %v944_v61 = vmul.f32 0.0078125, %v937_v59 }
 0x41a   :  { %v952_v62 = vsub.f32 %v944_v61, %v948_v60 }
 0x41b   :  { %v939_v63 = vpop.xlane.xlu1 %938  ;;  %v923_v3 = vpop.xlane.xlu0 %922 }
 0x41c   :  { %v960_v4 = vadd.f32 1e-05, %v952_v62  ;;  %v5316_v6 = vmul.f32 0.0078125, %v923_v3  ;;  %v945_v8 = vmul.f32 0.0078125, %v939_v63  ;;  %v959_v62 = vld [vmem:[%s7305_s6 + $0x18] sm:$0xff]  ;;  %v974_v63 = vld [vmem:[%s7306_s7 + $0x10] sm:$0xff] }
 0x41e   :  { %4881 = vrsqrt.f32 %v960_v4  ;;  %v949_v10 = vmul.f32 %v5316_v6, %v5316_v6 }
 0x41f   :  { %v941_v11 = vpop.xlane.xlu1 %940  ;;  %v925_v14 = vpop.xlane.xlu0 %924 }
 0x420   :  { %v953_v13 = vsub.f32 %v945_v8, %v949_v10  ;;  %v5320_v15 = vmul.f32 0.0078125, %v925_v14  ;;  %v946_v18 = vmul.f32 0.0078125, %v941_v11  ;;  %v975_v10 = vld [vmem:[%s7306_s7 + $0x18] sm:$0xff] }
 0x422   :  { %v961_v17 = vadd.f32 1e-05, %v953_v13  ;;  %v950_v19 = vmul.f32 %v5320_v15, %v5320_v15 }
 0x423   :  { %v943_v20 = vpop.xlane.xlu1 %942  ;;  %v927_v21 = vpop.xlane.xlu0 %926 }
 0x424   :  { %4883 = vrsqrt.f32 %v961_v17  ;;  %v954_v22 = vsub.f32 %v946_v18, %v950_v19  ;;  %v5324_v23 = vmul.f32 0.0078125, %v927_v21  ;;  %v947_v25 = vmul.f32 0.0078125, %v943_v20 }
 0x426   :  { %v962_v24 = vadd.f32 1e-05, %v954_v22  ;;  %v951_v26 = vmul.f32 %v5324_v23, %v5324_v23 }
 0x428   :  { %4885 = vrsqrt.f32 %v962_v24  ;;  %v955_v27 = vsub.f32 %v947_v25, %v951_v26 }
 0x42a   :  { %v963_v29 = vadd.f32 1e-05, %v955_v27 }
 0x42b   :  { %v4882_v32 = vpop.eup %4881 }
 0x42c   :  { %4887 = vrsqrt.f32 %v963_v29  ;;  %v968_v35 = vmul.f32 %v4882_v32, %v956_v28 }
 0x42e   :  { %986 = vperm.xlu0 %4841, %v968_v35   ;;  %v976_v39 = vmul.f32 %v968_v35, %v928_v57  ;;  %v5043_v57 = vmov 0.0   ;;  %v5364_v35 = vsub.s32 1, %v1344_v33 }
 0x42f   :  { %1168 = vmatprep.mubr.f32.mxu0 %v5043_v57  ;;  %1257 = vmatprep.mubr.f32.mxu1 %v5043_v57 }
 0x430   :  { %v980_v45 = vsub.f32 %v972_v36, %v976_v39  ;;  %7423 = vst [vmem:[#allocation8_spill] sm:$0xff] %v5364_v35  ;;  %v5366_v36 = vsub.s32 3, %v1344_v33  ;;  %v1869_v40 = vrot.slane %v1286_v37, %v5364_v35 }
 0x431   :  { %v4884_v48 = vpop.eup %4883 }
 0x432   :  { %v969_v51 = vmul.f32 %v4884_v48, %v957_v42  ;;  %1010 = vperm.xlu1 %4842, %v980_v45   ;;  %7424 = vst [vmem:[#allocation9_spill] sm:$0xff] %v5366_v36  ;;  %v1877_v41 = vrot.slane %v1286_v37, %v5366_v36 }
 0x434   :  { %v977_v56 = vmul.f32 %v969_v51, %v5316_v6 }
 0x435   :  { %v4886_v59 = vpop.eup %4885 }
 0x436   :  { %v970_v60 = vmul.f32 %v4886_v59, %v958_v54  ;;  %991 = vperm.xlu1 %4842, %v969_v51   ;;  %v981_v61 = vsub.f32 %v973_v55, %v977_v56 }
 0x438   :  { %v978_v3 = vmul.f32 %v970_v60, %v5320_v15  ;;  %1015 = vperm.xlu0 %4841, %v981_v61  }
 0x439   :  { %v4888_v4 = vpop.eup %4887 }
 0x43a   :  { %v971_v6 = vmul.f32 %v4888_v4, %v959_v62  ;;  %996 = vperm.xlu1 %4842, %v970_v60   ;;  %v982_v8 = vsub.f32 %v974_v63, %v978_v3 }
 0x43c   :  { %v979_v11 = vmul.f32 %v971_v6, %v5324_v23  ;;  %1020 = vperm.xlu0 %4841, %v982_v8  }
 0x43e   :  { %1001 = vperm.xlu1 %4842, %v971_v6   ;;  %v983_v14 = vsub.f32 %v975_v10, %v979_v11 }
 0x440   :  { %1025 = vperm.xlu0 %4841, %v983_v14  }
 0x4a9   :  { %v987_v13 = vpop.permute.xlu0 %986 }
 0x4aa   :  { %v1004_v17 = vmul.f32 %v987_v13, %v5296_v58 }
 0x4ad   :  { %v1011_v18 = vpop.permute.xlu1 %1010 }
 0x4ae   :  { %v1028_v15 = vadd.f32 %v1011_v18, %v1004_v17 }
 0x4b0   :  { %v1032_v19 = vmul.f32 0.2, %v1028_v15 }
 0x4b1   :  { %v992_v20 = vpop.permute.xlu1 %991 }
 0x4b2   :  { %v1036_v21 = vmax.f32 %v1028_v15, %v1032_v19  ;;  %v1005_v22 = vmul.f32 %v992_v20, %v5301_v5 }
 0x4b3   :  { %v1016_v24 = vpop.permute.xlu0 %1015 }
 0x4b4   :  { %v1029_v25 = vadd.f32 %v1016_v24, %v1005_v22  ;;  %1169 = vmatmul.mubr.f32.vlgmr.msra.gmra.mxu0 %v1036_v21  ;;  %1258 = vmatmul.mubr.f32.vlgmr.msra.gmra.mxu1 %v1036_v21 }
 0x4b5   :  { %v997_v26 = vpop.permute.xlu1 %996  ;;  %1174 = vmatprep.mubr.f32.mxu0 %v5043_v57  ;;  %1263 = vmatprep.mubr.f32.mxu1 %v5043_v57 }
 0x4b6   :  { %v1033_v23 = vmul.f32 0.2, %v1029_v25  ;;  %v1006_v27 = vmul.f32 %v997_v26, %v5303_v7 }
 0x4b7   :  { %v1021_v28 = vpop.permute.xlu0 %1020 }
 0x4b8   :  { %v1037_v1 = vmax.f32 %v1029_v25, %v1033_v23  ;;  %v1030_v58 = vadd.f32 %v1021_v28, %v1006_v27 }
 0x4b9   :  { %v1002_v2 = vpop.permute.xlu1 %1001 }
 0x4ba   :  { %v1034_v29 = vmul.f32 0.2, %v1030_v58  ;;  %v1007_v30 = vmul.f32 %v1002_v2, %v5308_v12  ;;  %1175 = vmatmul.mubr.f32.gmra.mxu0 %v1037_v1  ;;  %1264 = vmatmul.mubr.f32.gmra.mxu1 %v1037_v1  ;;  %v5362_v12 = vsub.s32 2, %v1344_v33 }
 0x4bb   :  { %v1026_v5 = vpop.permute.xlu0 %1025  ;;  %1180 = vmatprep.mubr.f32.mxu0 %v5043_v57  ;;  %1269 = vmatprep.mubr.f32.mxu1 %v5043_v57 }
 0x4bc   :  { %v1038_v9 = vmax.f32 %v1030_v58, %v1034_v29  ;;  %v1031_v31 = vadd.f32 %v1026_v5, %v1007_v30  ;;  %7422 = vst [vmem:[#allocation7_spill] sm:$0xff] %v5362_v12  ;;  %v1873_v39 = vrot.slane %v1286_v37, %v5362_v12 }
 0x4be   :  { %v1035_v32 = vmul.f32 0.2, %v1031_v31  ;;  %1181 = vmatmul.mubr.f32.gmra.mxu0 %v1038_v9  ;;  %1270 = vmatmul.mubr.f32.gmra.mxu1 %v1038_v9 }
 0x4bf   :  { %1186 = vmatprep.mubr.f32.mxu0 %v5043_v57  ;;  %1275 = vmatprep.mubr.f32.mxu1 %v5043_v57 }
 0x4c0   :  { %v1039_v7 = vmax.f32 %v1031_v31, %v1035_v32 }
 0x4c2   :  { %1187 = vmatmul.mubr.f32.gmra.mxu0 %v1039_v7  ;;  %1276 = vmatmul.mubr.f32.gmra.mxu1 %v1039_v7 }
 0x574   :  { %v5375_v42 = vpop.f32.mrf.mxu0  ;;  %v5377_v43 = vpop.f32.mrf.mxu1 }
 0x575   :  { %1719 = vrot.lane.b32.xlu1 %v5375_v42, %s5036_s23  ;;  %v1882_v46 = vmul.f32 %v1865_v38, %v5375_v42  ;;  %v1884_v47 = vmul.f32 %v1873_v39, %v5377_v43 }
 0x576   :  { %v5381_v44 = vpop.f32.mrf.mxu0  ;;  %v5383_v45 = vpop.f32.mrf.mxu1 }
 0x577   :  { %v1883_v48 = vmul.f32 %v1869_v40, %v5381_v44  ;;  %v1885_v49 = vmul.f32 %v1877_v41, %v5383_v45 }
 0x579   :  { %v4684_v50 = vpack.c.bf16 %v1883_v48, %v1882_v46  ;;  %v4685_v51 = vpack.c.bf16 %v1885_v49, %v1884_v47  ;;  %1577 = vrot.lane.b32.xlu1 %v5375_v42, %s5044_s17 }
 0x57a   :  { %v5391_v52 = vpop.f32.mrf.mxu0  ;;  %v5393_v53 = vpop.f32.mrf.mxu1 }
 0x57b   :  { %1946 = vst [vmem:[#allocation2 + $0xc8] sm:$0xff] %v4684_v50  ;;  %1947 = vst [vmem:[#allocation2 + $0x178] sm:$0xff] %v4685_v51  ;;  %1721 = vrot.lane.b32.xlu0 %v5391_v52, %s5036_s23  ;;  %v1886_v56 = vmul.f32 %v1865_v38, %v5391_v52  ;;  %v1888_v57 = vmul.f32 %v1873_v39, %v5393_v53 }
 0x57c   :  { %v5397_v54 = vpop.f32.mrf.mxu0  ;;  %v5399_v55 = vpop.f32.mrf.mxu1 }
 0x57d   :  { %v1887_v59 = vmul.f32 %v1869_v40, %v5397_v54  ;;  %v1889_v60 = vmul.f32 %v1877_v41, %v5399_v55  ;;  %1435 = vrot.lane.b32.xlu1 %v5375_v42, %s5045_s18 }
 0x57e   :  { %v5407_v61 = vpop.f32.mrf.mxu0  ;;  %v5409_v62 = vpop.f32.mrf.mxu1 }
 0x57f   :  { %v4686_v63 = vpack.c.bf16 %v1887_v59, %v1886_v56  ;;  %v4687_v3 = vpack.c.bf16 %v1889_v60, %v1888_v57  ;;  %1579 = vrot.lane.b32.xlu0 %v5391_v52, %s5044_s17  ;;  %v1890_v8 = vmul.f32 %v1865_v38, %v5407_v61  ;;  %v1892_v10 = vmul.f32 %v1873_v39, %v5409_v62 }
 0x580   :  { %v5413_v4 = vpop.f32.mrf.mxu0  ;;  %v5415_v6 = vpop.f32.mrf.mxu1 }
 0x581   :  { %1948 = vst [vmem:[#allocation2 + $0xe8] sm:$0xff] %v4686_v63  ;;  %1949 = vst [vmem:[#allocation2 + $0x218] sm:$0xff] %v4687_v3  ;;  %v1891_v11 = vmul.f32 %v1869_v40, %v5413_v4  ;;  %v1893_v14 = vmul.f32 %v1877_v41, %v5415_v6  ;;  %1735 = vrot.lane.b32.xlu1 %v5377_v43, %s5036_s23 }
 0x582   :  { %v5423_v13 = vpop.f32.mrf.mxu0  ;;  %v5425_v17 = vpop.f32.mrf.mxu1 }
 0x583   :  { %v4688_v18 = vpack.c.bf16 %v1891_v11, %v1890_v8  ;;  %v4689_v15 = vpack.c.bf16 %v1893_v14, %v1892_v10  ;;  %1437 = vrot.lane.b32.xlu0 %v5391_v52, %s5045_s18  ;;  %v1894_v21 = vmul.f32 %v1865_v38, %v5423_v13  ;;  %v1896_v22 = vmul.f32 %v1873_v39, %v5425_v17 }
 0x584   :  { %v5429_v19 = vpop.f32.mrf.mxu0  ;;  %v5431_v20 = vpop.f32.mrf.mxu1 }
 0x585   :  { %1950 = vst [vmem:[#allocation2 + $0x48] sm:$0xff] %v4688_v18  ;;  %1951 = vst [vmem:[#allocation2 + $0x1f8] sm:$0xff] %v4689_v15  ;;  %v1895_v24 = vmul.f32 %v1869_v40, %v5429_v19  ;;  %v1897_v25 = vmul.f32 %v1877_v41, %v5431_v20  ;;  %1291 = vrot.lane.b32.xlu1 %v5375_v42, %s5046_s19 }
 0x587   :  { %v4690_v26 = vpack.c.bf16 %v1895_v24, %v1894_v21  ;;  %v4691_v23 = vpack.c.bf16 %v1897_v25, %v1896_v22  ;;  %1737 = vrot.lane.b32.xlu0 %v5393_v53, %s5036_s23  ;;  %v1289_v22 = vld [vmem:[%s7308_s9 + $0x1c] sm:$0xf]  ;;  %v5705_v24 = vand.u32 127, %v1323_v0  ;;  %v1288_v0 = vld [vmem:[%s7308_s9 + $0x18] sm:$0xf] }
 0x588   :  { %v5720_v16 = vrot.slane %v1289_v22, %v5364_v35 }
 0x589   :  { %1952 = vst [vmem:[#allocation2 + $0x148] sm:$0xff] %v4690_v26  ;;  %1953 = vst [vmem:[#allocation2 + $0x1c8] sm:$0xff] %v4691_v23  ;;  %1593 = vrot.lane.b32.xlu1 %v5377_v43, %s5044_s17  ;;  %vm2270_vm1 = vcmp.lt.s32.totalorder %v5705_v24, 112  ;;  %v5717_v23 = vrot.slane %v1289_v22, %v5360_v34  ;;  %vm2128_vm2 = vcmp.lt.s32.totalorder %v5705_v24, 113  ;;  %vm1986_vm3 = vcmp.lt.s32.totalorder %v5705_v24, 127 }
 0x58a   :  { %7448 = vst [vmem:[#allocation33_spill] sm:$0xff] %v5720_v16  ;;  %vm1751_vm4 = vcmp.lt.s32.totalorder %v5705_v24, 1  ;;  %vm1609_vm5 = vcmp.lt.s32.totalorder %v5705_v24, 15  ;;  %vm1467_vm6 = vcmp.lt.s32.totalorder %v5705_v24, 16  ;;  %vm1325_vm7 = vcmp.lt.s32.totalorder %v5705_v24, 17 }
 0x58b   :  { %1293 = vrot.lane.b32.xlu0 %v5391_v52, %s5046_s19  ;;  %7447 = vst [vmem:[#allocation32_spill] sm:$0xff] %v5717_v23  ;;  %vm2412_vm8 = vcmp.lt.s32.totalorder %v5705_v24, 111 }
 0x58d   :  { %1451 = vrot.lane.b32.xlu1 %v5377_v43, %s5045_s18 }
 0x58f   :  { %1595 = vrot.lane.b32.xlu0 %v5393_v53, %s5044_s17 }
 0x591   :  { %2238 = vrot.lane.b32.xlu1 %v5375_v42, %s5047_s20 }
 0x593   :  { %1453 = vrot.lane.b32.xlu0 %v5393_v53, %s5045_s18 }
 0x595   :  { %2254 = vrot.lane.b32.xlu1 %v5377_v43, %s5047_s20 }
 0x597   :  { %2240 = vrot.lane.b32.xlu0 %v5391_v52, %s5047_s20 }
 0x599   :  { %1307 = vrot.lane.b32.xlu1 %v5377_v43, %s5046_s19 }
 0x59b   :  { %2256 = vrot.lane.b32.xlu0 %v5393_v53, %s5047_s20 }
 0x59d   :  { %2096 = vrot.lane.b32.xlu1 %v5375_v42, %s5048_s5 }
 0x59f   :  { %1309 = vrot.lane.b32.xlu0 %v5393_v53, %s5046_s19 }
 0x5a1   :  { %2112 = vrot.lane.b32.xlu1 %v5377_v43, %s5048_s5 }
 0x5a3   :  { %2098 = vrot.lane.b32.xlu0 %v5391_v52, %s5048_s5 }
 0x5a5   :  { %1954 = vrot.lane.b32.xlu1 %v5375_v42, %s5039_s26 }
 0x5a7   :  { %2114 = vrot.lane.b32.xlu0 %v5393_v53, %s5048_s5 }
 0x5a9   :  { %1970 = vrot.lane.b32.xlu1 %v5377_v43, %s5039_s26 }
 0x5ab   :  { %1956 = vrot.lane.b32.xlu0 %v5391_v52, %s5039_s26 }
 0x5ad   :  { %1727 = vrot.lane.b32.xlu1 %v5381_v44, %s5036_s23 }
 0x5af   :  { %1972 = vrot.lane.b32.xlu0 %v5393_v53, %s5039_s26 }
 0x5b1   :  { %1743 = vrot.lane.b32.xlu1 %v5383_v45, %s5036_s23 }
 0x5b3   :  { %1729 = vrot.lane.b32.xlu0 %v5397_v54, %s5036_s23 }
 0x5b5   :  { %1585 = vrot.lane.b32.xlu1 %v5381_v44, %s5044_s17 }
 0x5b7   :  { %1745 = vrot.lane.b32.xlu0 %v5399_v55, %s5036_s23 }
 0x5b9   :  { %1601 = vrot.lane.b32.xlu1 %v5383_v45, %s5044_s17 }
 0x5bb   :  { %1587 = vrot.lane.b32.xlu0 %v5397_v54, %s5044_s17 }
 0x5bd   :  { %1443 = vrot.lane.b32.xlu1 %v5381_v44, %s5045_s18 }
 0x5bf   :  { %1603 = vrot.lane.b32.xlu0 %v5399_v55, %s5044_s17 }
 0x5c1   :  { %1459 = vrot.lane.b32.xlu1 %v5383_v45, %s5045_s18 }
 0x5c3   :  { %1445 = vrot.lane.b32.xlu0 %v5397_v54, %s5045_s18 }
 0x5c5   :  { %1299 = vrot.lane.b32.xlu1 %v5381_v44, %s5046_s19 }
 0x5c7   :  { %1461 = vrot.lane.b32.xlu0 %v5399_v55, %s5045_s18 }
 0x5c9   :  { %1315 = vrot.lane.b32.xlu1 %v5383_v45, %s5046_s19 }
 0x5cb   :  { %1301 = vrot.lane.b32.xlu0 %v5397_v54, %s5046_s19 }
 0x5cd   :  { %2246 = vrot.lane.b32.xlu1 %v5381_v44, %s5047_s20 }
 0x5cf   :  { %1317 = vrot.lane.b32.xlu0 %v5399_v55, %s5046_s19 }
 0x5d1   :  { %2104 = vrot.lane.b32.xlu1 %v5381_v44, %s5048_s5 }
 0x5d3   :  { %2248 = vrot.lane.b32.xlu0 %v5397_v54, %s5047_s20 }
 0x5d5   :  { %1962 = vrot.lane.b32.xlu1 %v5381_v44, %s5039_s26 }
 0x5d7   :  { %2106 = vrot.lane.b32.xlu0 %v5397_v54, %s5048_s5 }
 0x5d9   :  { %2262 = vrot.lane.b32.xlu1 %v5383_v45, %s5047_s20 }
 0x5db   :  { %1964 = vrot.lane.b32.xlu0 %v5397_v54, %s5039_s26 }
 0x5dd   :  { %2120 = vrot.lane.b32.xlu1 %v5383_v45, %s5048_s5 }
 0x5df   :  { %2264 = vrot.lane.b32.xlu0 %v5399_v55, %s5047_s20 }
 0x5e1   :  { %1723 = vrot.lane.b32.xlu1 %v5407_v61, %s5036_s23 }
 0x5e3   :  { %2122 = vrot.lane.b32.xlu0 %v5399_v55, %s5048_s5 }
 0x5e5   :  { %1581 = vrot.lane.b32.xlu1 %v5407_v61, %s5044_s17 }
 0x5e7   :  { %v5535_v27 = vpop.permute.xlu1 %1719  ;;  %1725 = vrot.lane.b32.xlu0 %v5423_v13, %s5036_s23 }
 0x5e9   :  { %1439 = vrot.lane.b32.xlu1 %v5407_v61, %s5045_s18 }
 0x5eb   :  { %v5541_v28 = vpop.permute.xlu1 %1577  ;;  %1583 = vrot.lane.b32.xlu0 %v5423_v13, %s5044_s17 }
 0x5ed   :  { %1739 = vrot.lane.b32.xlu1 %v5409_v62, %s5036_s23  ;;  %v5547_v1 = vpop.permute.xlu0 %1721 }
 0x5ef   :  { %v5549_v58 = vpop.permute.xlu1 %1435  ;;  %1441 = vrot.lane.b32.xlu0 %v5423_v13, %s5045_s18 }
 0x5f0   :  { %7425 = vst [vmem:[#allocation10_spill] sm:$0xff] %v5549_v58 }
 0x5f1   :  { %1295 = vrot.lane.b32.xlu1 %v5407_v61, %s5046_s19  ;;  %v5555_v2 = vpop.permute.xlu0 %1579 }
 0x5f2   :  { %7426 = vst [vmem:[#allocation11_spill] sm:$0xff] %v5555_v2  ;;  %v5805_v2 = vrot.slane %v1289_v22, %v5362_v12 }
 0x5f3   :  { %v5557_v29 = vpop.permute.xlu1 %1735  ;;  %1741 = vrot.lane.b32.xlu0 %v5425_v17, %s5036_s23 }
 0x5f4   :  { %7461 = vst [vmem:[#allocation46_spill] sm:$0xff] %v5805_v2 }
 0x5f5   :  { %1597 = vrot.lane.b32.xlu1 %v5409_v62, %s5044_s17  ;;  %v5563_v30 = vpop.permute.xlu0 %1437 }
 0x5f6   :  { %7427 = vst [vmem:[#allocation12_spill] sm:$0xff] %v5563_v30 }
 0x5f7   :  { %v5565_v5 = vpop.permute.xlu1 %1291  ;;  %1297 = vrot.lane.b32.xlu0 %v5423_v13, %s5046_s19 }
 0x5f8   :  { %7428 = vst [vmem:[#allocation13_spill] sm:$0xff] %v5565_v5 }
 0x5f9   :  { %1455 = vrot.lane.b32.xlu1 %v5409_v62, %s5045_s18  ;;  %v5571_v9 = vpop.permute.xlu0 %1737 }
 0x5fb   :  { %v5573_v31 = vpop.permute.xlu1 %1593  ;;  %1599 = vrot.lane.b32.xlu0 %v5425_v17, %s5044_s17 }
 0x5fd   :  { %2242 = vrot.lane.b32.xlu1 %v5407_v61, %s5047_s20  ;;  %v5579_v32 = vpop.permute.xlu0 %1293 }
 0x5fe   :  { %7429 = vst [vmem:[#allocation14_spill] sm:$0xff] %v5579_v32 }
 0x5ff   :  { %v5581_v7 = vpop.permute.xlu1 %1451  ;;  %1457 = vrot.lane.b32.xlu0 %v5425_v17, %s5045_s18 }
 0x600   :  { %7430 = vst [vmem:[#allocation15_spill] sm:$0xff] %v5581_v7 }
 0x601   :  { %2258 = vrot.lane.b32.xlu1 %v5409_v62, %s5047_s20  ;;  %v5587_v33 = vpop.permute.xlu0 %1595 }
 0x602   :  { %7431 = vst [vmem:[#allocation16_spill] sm:$0xff] %v5587_v33 }
 0x603   :  { %v5589_v37 = vpop.permute.xlu1 %2238  ;;  %2244 = vrot.lane.b32.xlu0 %v5423_v13, %s5047_s20 }
 0x605   :  { %1311 = vrot.lane.b32.xlu1 %v5409_v62, %s5046_s19  ;;  %v5595_v38 = vpop.permute.xlu0 %1453 }
 0x606   :  { %7432 = vst [vmem:[#allocation17_spill] sm:$0xff] %v5595_v38 }
 0x607   :  { %v5597_v39 = vpop.permute.xlu1 %2254  ;;  %2260 = vrot.lane.b32.xlu0 %v5425_v17, %s5047_s20 }
 0x609   :  { %2100 = vrot.lane.b32.xlu1 %v5407_v61, %s5048_s5  ;;  %v5603_v40 = vpop.permute.xlu0 %2240 }
 0x60b   :  { %v5605_v41 = vpop.permute.xlu1 %1307  ;;  %1313 = vrot.lane.b32.xlu0 %v5425_v17, %s5046_s19 }
 0x60c   :  { %7433 = vst [vmem:[#allocation18_spill] sm:$0xff] %v5605_v41 }
 0x60d   :  { %2116 = vrot.lane.b32.xlu1 %v5409_v62, %s5048_s5  ;;  %v5611_v46 = vpop.permute.xlu0 %2256 }
 0x60f   :  { %v5613_v47 = vpop.permute.xlu1 %2096  ;;  %2102 = vrot.lane.b32.xlu0 %v5423_v13, %s5048_s5 }
 0x611   :  { %1958 = vrot.lane.b32.xlu1 %v5407_v61, %s5039_s26  ;;  %v5619_v48 = vpop.permute.xlu0 %1309 }
 0x612   :  { %7434 = vst [vmem:[#allocation19_spill] sm:$0xff] %v5619_v48 }
 0x613   :  { %v5621_v49 = vpop.permute.xlu1 %2112  ;;  %2118 = vrot.lane.b32.xlu0 %v5425_v17, %s5048_s5 }
 0x615   :  { %1974 = vrot.lane.b32.xlu1 %v5409_v62, %s5039_s26  ;;  %v5627_v50 = vpop.permute.xlu0 %2098 }
 0x617   :  { %v5629_v51 = vpop.permute.xlu1 %1954  ;;  %1960 = vrot.lane.b32.xlu0 %v5423_v13, %s5039_s26 }
 0x618   :  { %7435 = vst [vmem:[#allocation20_spill] sm:$0xff] %v5629_v51 }
 0x619   :  { %2384 = vrot.lane.b32.xlu1 %v5407_v61, %s5049_s21  ;;  %v5635_v56 = vpop.permute.xlu0 %2114 }
 0x61b   :  { %v5637_v57 = vpop.permute.xlu1 %1970  ;;  %1976 = vrot.lane.b32.xlu0 %v5425_v17, %s5039_s26 }
 0x61c   :  { %7436 = vst [vmem:[#allocation21_spill] sm:$0xff] %v5637_v57 }
 0x61d   :  { %2400 = vrot.lane.b32.xlu1 %v5409_v62, %s5049_s21  ;;  %v5643_v59 = vpop.permute.xlu0 %1956 }
 0x61e   :  { %7437 = vst [vmem:[#allocation22_spill] sm:$0xff] %v5643_v59 }
 0x61f   :  { %v5645_v60 = vpop.permute.xlu1 %1727  ;;  %2386 = vrot.lane.b32.xlu0 %v5423_v13, %s5049_s21 }
 0x621   :  { %1731 = vrot.lane.b32.xlu1 %v5413_v4, %s5036_s23  ;;  %v5651_v61 = vpop.permute.xlu0 %1972 }
 0x622   :  { %7438 = vst [vmem:[#allocation23_spill] sm:$0xff] %v5651_v61 }
 0x623   :  { %v5653_v63 = vpop.permute.xlu1 %1743  ;;  %2402 = vrot.lane.b32.xlu0 %v5425_v17, %s5049_s21 }
 0x625   :  { %1747 = vrot.lane.b32.xlu1 %v5415_v6, %s5036_s23  ;;  %v5659_v62 = vpop.permute.xlu0 %1729 }
 0x627   :  { %v5661_v3 = vpop.permute.xlu1 %1585  ;;  %1733 = vrot.lane.b32.xlu0 %v5429_v19, %s5036_s23 }
 0x629   :  { %1589 = vrot.lane.b32.xlu1 %v5413_v4, %s5044_s17  ;;  %v5667_v8 = vpop.permute.xlu0 %1745 }
 0x62b   :  { %v5669_v10 = vpop.permute.xlu1 %1601  ;;  %1749 = vrot.lane.b32.xlu0 %v5431_v20, %s5036_s23 }
 0x62d   :  { %1605 = vrot.lane.b32.xlu1 %v5415_v6, %s5044_s17  ;;  %v5675_v11 = vpop.permute.xlu0 %1587 }
 0x62e   :  { %7439 = vst [vmem:[#allocation24_spill] sm:$0xff] %v5675_v11 }
 0x62f   :  { %v5677_v14 = vpop.permute.xlu1 %1443  ;;  %1591 = vrot.lane.b32.xlu0 %v5429_v19, %s5044_s17 }
 0x630   :  { %7440 = vst [vmem:[#allocation25_spill] sm:$0xff] %v5677_v14 }
 0x631   :  { %1447 = vrot.lane.b32.xlu1 %v5413_v4, %s5045_s18  ;;  %v5683_v13 = vpop.permute.xlu0 %1603 }
 0x633   :  { %v5685_v17 = vpop.permute.xlu1 %1459  ;;  %1607 = vrot.lane.b32.xlu0 %v5431_v20, %s5044_s17 }
 0x634   :  { %7441 = vst [vmem:[#allocation26_spill] sm:$0xff] %v5685_v17 }
 0x635   :  { %1463 = vrot.lane.b32.xlu1 %v5415_v6, %s5045_s18  ;;  %v5691_v18 = vpop.permute.xlu0 %1445 }
 0x636   :  { %7442 = vst [vmem:[#allocation27_spill] sm:$0xff] %v5691_v18  ;;  %v5748_v18 = vrot.slane %v1288_v0, %v5364_v35 }
 0x637   :  { %v5693_v15 = vpop.permute.xlu1 %1299  ;;  %1449 = vrot.lane.b32.xlu0 %v5429_v19, %s5045_s18 }
 0x638   :  { %7443 = vst [vmem:[#allocation28_spill] sm:$0xff] %v5693_v15  ;;  %7453 = vst [vmem:[#allocation38_spill] sm:$0xff] %v5748_v18 }
 0x639   :  { %1303 = vrot.lane.b32.xlu1 %v5413_v4, %s5046_s19  ;;  %v5699_v21 = vpop.permute.xlu0 %1461 }
 0x63a   :  { %7444 = vst [vmem:[#allocation29_spill] sm:$0xff] %v5699_v21 }
 0x63b   :  { %v5707_v25 = vpop.permute.xlu1 %1315  ;;  %1465 = vrot.lane.b32.xlu0 %v5431_v20, %s5045_s18 }
 0x63c   :  { %7445 = vst [vmem:[#allocation30_spill] sm:$0xff] %v5707_v25  ;;  %v5745_v25 = vrot.slane %v1288_v0, %v5360_v34 }
 0x63d   :  { %1319 = vrot.lane.b32.xlu1 %v5415_v6, %s5046_s19  ;;  %v5713_v26 = vpop.permute.xlu0 %1301 }
 0x63e   :  { %7446 = vst [vmem:[#allocation31_spill] sm:$0xff] %v5713_v26  ;;  %7452 = vst [vmem:[#allocation37_spill] sm:$0xff] %v5745_v25 }
 0x63f   :  { %v2247_v32 = vpop.permute.xlu1 %2246  ;;  %1305 = vrot.lane.b32.xlu0 %v5429_v19, %s5046_s19 }
 0x640   :  { %v2275_v26 = vsel %vm2270_vm1, %v2247_v32, %v5597_v39  ;;  %v2279_v48 = vsel %vm2270_vm1, %v5589_v37, %v2247_v32  ;;  %v5753_v32 = vld [vmem:[%s7308_s9 + $0x14] sm:$0xf] }
 0x641   :  { %v5735_v15 = vmul.f32 %v5717_v23, %v2279_v48  ;;  %v5738_v5 = vmul.f32 %v5720_v16, %v2275_v26  ;;  %1978 = vrot.lane.b32.xlu1 %v5383_v45, %s5039_s26  ;;  %v5742_v41 = vpop.permute.xlu0 %1317  ;;  %7454 = vst [vmem:[#allocation39_spill] sm:$0xff] %v5753_v32  ;;  %v5776_v58 = vrot.slane %v5753_v32, %v5360_v34 }
 0x642   :  { %7451 = vst [vmem:[#allocation36_spill] sm:$0xff] %v5742_v41 }
 0x643   :  { %7449 = vst [vmem:[#allocation34_spill] sm:$0xff] %v5735_v15  ;;  %7450 = vst [vmem:[#allocation35_spill] sm:$0xff] %v5738_v5  ;;  %v4708_v48 = vpack.c.bf16 %v5738_v5, %v5735_v15  ;;  %v2105_v26 = vpop.permute.xlu1 %2104  ;;  %1321 = vrot.lane.b32.xlu0 %v5431_v20, %s5046_s19 }
 0x644   :  { %v2133_v41 = vsel %vm2128_vm2, %v2105_v26, %v5621_v49  ;;  %v2137_v30 = vsel %vm2128_vm2, %v5613_v47, %v2105_v26  ;;  %7457 = vst [vmem:[#allocation42_spill] sm:$0xff] %v5776_v58  ;;  %v5780_v26 = vrot.slane %v5753_v32, %v5364_v35 }
 0x645   :  { %2372 = vst [vmem:[#allocation2 + $0x118] sm:$0xff] %v4708_v48  ;;  %v5767_v38 = vmul.f32 %v5745_v25, %v2137_v30  ;;  %v5770_v21 = vmul.f32 %v5748_v18, %v2133_v41  ;;  %2250 = vrot.lane.b32.xlu1 %v5413_v4, %s5047_s20  ;;  %v2249_v17 = vpop.permute.xlu0 %2248 }
 0x646   :  { %7458 = vst [vmem:[#allocation43_spill] sm:$0xff] %v5780_v26  ;;  %v2276_v30 = vsel %vm2270_vm1, %v2249_v17, %v5611_v46  ;;  %v2280_v41 = vsel %vm2270_vm1, %v5603_v40, %v2249_v17 }
 0x647   :  { %7455 = vst [vmem:[#allocation40_spill] sm:$0xff] %v5767_v38  ;;  %7456 = vst [vmem:[#allocation41_spill] sm:$0xff] %v5770_v21  ;;  %v4700_v48 = vpack.c.bf16 %v5770_v21, %v5767_v38  ;;  %v5791_v14 = vmul.f32 %v5717_v23, %v2280_v41  ;;  %v5794_v7 = vmul.f32 %v5720_v16, %v2276_v30  ;;  %v1963_v11 = vpop.permute.xlu1 %1962  ;;  %1980 = vrot.lane.b32.xlu0 %v5399_v55, %s5039_s26 }
 0x648   :  { %v1991_v32 = vsel %vm1986_vm3, %v1963_v11, %v5637_v57  ;;  %v1995_v17 = vsel %vm1986_vm3, %v5629_v51, %v1963_v11  ;;  %v5818_v57 = vrot.slane %v1289_v22, %v5366_v36 }
 0x649   :  { %7459 = vst [vmem:[#allocation44_spill] sm:$0xff] %v5791_v14  ;;  %7460 = vst [vmem:[#allocation45_spill] sm:$0xff] %v5794_v7  ;;  %v4710_v30 = vpack.c.bf16 %v5794_v7, %v5791_v14  ;;  %v5810_v41 = vmul.f32 %v5776_v58, %v1995_v17  ;;  %v5813_v16 = vmul.f32 %v5780_v26, %v1991_v32  ;;  %2108 = vrot.lane.b32.xlu1 %v5413_v4, %s5048_s5  ;;  %v2107_v23 = vpop.permute.xlu0 %2106 }
 0x64a   :  { %2230 = vst [vmem:[#allocation2 + $0x110] sm:$0xff] %v4700_v48  ;;  %7464 = vst [vmem:[#allocation49_spill] sm:$0xff] %v5818_v57  ;;  %v2134_v11 = vsel %vm2128_vm2, %v2107_v23, %v5635_v56  ;;  %v2138_v48 = vsel %vm2128_vm2, %v5627_v50, %v2107_v23 }
 0x64b   :  { %7462 = vst [vmem:[#allocation47_spill] sm:$0xff] %v5810_v41  ;;  %7463 = vst [vmem:[#allocation48_spill] sm:$0xff] %v5813_v16  ;;  %v4692_v32 = vpack.c.bf16 %v5813_v16, %v5810_v41  ;;  %v5829_v17 = vmul.f32 %v5745_v25, %v2138_v48  ;;  %v5832_v51 = vmul.f32 %v5748_v18, %v2134_v11  ;;  %v2263_v22 = vpop.permute.xlu1 %2262  ;;  %2252 = vrot.lane.b32.xlu0 %v5429_v19, %s5047_s20  ;;  %v1283_v16 = vld [vmem:[%s7308_s9 + $0x4] sm:$0xf]  ;;  %v7507_v25 = vld [vmem:[#allocation25_spill] sm:$0xff] }
 0x64c   :  { %2374 = vst [vmem:[#allocation2 + $0x208] sm:$0xff] %v4710_v30  ;;  %v2271_v23 = vsel %vm2270_vm1, %v5597_v39, %v2263_v22  ;;  %v2283_v30 = vsel %vm2270_vm1, %v2263_v22, %v5589_v37  ;;  %v5845_v48 = vrot.slane %v1288_v0, %v5362_v12  ;;  %v5860_v39 = vrot.slane %v1288_v0, %v5366_v36 }
 0x64d   :  { %7465 = vst [vmem:[#allocation50_spill] sm:$0xff] %v5829_v17  ;;  %7466 = vst [vmem:[#allocation51_spill] sm:$0xff] %v5832_v51  ;;  %v4702_v18 = vpack.c.bf16 %v5832_v51, %v5829_v17  ;;  %v5852_v33 = vmul.f32 %v5805_v2, %v2271_v23  ;;  %v5855_v15 = vmul.f32 %v5818_v57, %v2283_v30  ;;  %1966 = vrot.lane.b32.xlu1 %v5413_v4, %s5039_s26  ;;  %v1965_v37 = vpop.permute.xlu0 %1964  ;;  %v1282_v17 = vld [vmem:[%s7308_s9] sm:$0xf] }
 0x64e   :  { %7467 = vst [vmem:[#allocation52_spill] sm:$0xff] %v5845_v48  ;;  %2088 = vst [vmem:[#allocation2 + $0x1a0] sm:$0xff] %v4692_v32  ;;  %v1992_v32 = vsel %vm1986_vm3, %v1965_v37, %v5651_v61  ;;  %v1996_v22 = vsel %vm1986_vm3, %v5643_v59, %v1965_v37  ;;  %v6064_v5 = vrot.slane %v1283_v16, %v5362_v12  ;;  %v7511_v61 = vld [vmem:[#allocation26_spill] sm:$0xff] }
 0x64f   :  { %7468 = vst [vmem:[#allocation53_spill] sm:$0xff] %v5852_v33  ;;  %7469 = vst [vmem:[#allocation54_spill] sm:$0xff] %v5855_v15  ;;  %v5869_v23 = vmul.f32 %v5776_v58, %v1996_v22  ;;  %v5872_v30 = vmul.f32 %v5780_v26, %v1992_v32  ;;  %v2121_v11 = vpop.permute.xlu1 %2120  ;;  %2382 = vrot.lane.b32.xlu0 %v5391_v52, %s5049_s21  ;;  %v6067_v7 = vrot.slane %v1283_v16, %v5360_v34 }
 0x650   :  { %7470 = vst [vmem:[#allocation55_spill] sm:$0xff] %v5860_v39  ;;  %2232 = vst [vmem:[#allocation2] sm:$0xff] %v4702_v18  ;;  %v2129_v14 = vsel %vm2128_vm2, %v5621_v49, %v2121_v11  ;;  %v2141_v18 = vsel %vm2128_vm2, %v2121_v11, %v5613_v47  ;;  %v1760_v58 = vsel %vm1751_vm4, %v5535_v27, %v5645_v60 }
 0x651   :  { %7471 = vst [vmem:[#allocation56_spill] sm:$0xff] %v5869_v23  ;;  %7472 = vst [vmem:[#allocation57_spill] sm:$0xff] %v5872_v30  ;;  %v4694_v32 = vpack.c.bf16 %v5872_v30, %v5869_v23  ;;  %v5889_v22 = vmul.f32 %v5845_v48, %v2129_v14  ;;  %v5892_v52 = vmul.f32 %v5860_v39, %v2141_v18  ;;  %2266 = vrot.lane.b32.xlu1 %v5415_v6, %s5047_s20  ;;  %v2265_v49 = vpop.permute.xlu0 %2264 }
 0x652   :  { %v2272_v47 = vsel %vm2270_vm1, %v5611_v46, %v2265_v49  ;;  %v2284_v11 = vsel %vm2270_vm1, %v2265_v49, %v5603_v40 }
 0x653   :  { %7473 = vst [vmem:[#allocation58_spill] sm:$0xff] %v5889_v22  ;;  %7474 = vst [vmem:[#allocation59_spill] sm:$0xff] %v5892_v52  ;;  %v5903_v0 = vmul.f32 %v5805_v2, %v2272_v47  ;;  %v5906_v14 = vmul.f32 %v5818_v57, %v2284_v11  ;;  %v5908_v18 = vpop.permute.xlu1 %1723  ;;  %2110 = vrot.lane.b32.xlu0 %v5429_v19, %s5048_s5  ;;  %v6081_v57 = vrot.slane %v1282_v17, %v5364_v35 }
 0x654   :  { %2090 = vst [vmem:[#allocation2 + $0x38] sm:$0xff] %v4694_v32  ;;  %v6084_v2 = vrot.slane %v1282_v17, %v5362_v12 }
 0x655   :  { %7475 = vst [vmem:[#allocation60_spill] sm:$0xff] %v5903_v0  ;;  %7476 = vst [vmem:[#allocation61_spill] sm:$0xff] %v5906_v14  ;;  %2124 = vrot.lane.b32.xlu1 %v5415_v6, %s5048_s5  ;;  %v2123_v40 = vpop.permute.xlu0 %2122 }
 0x656   :  { %v2130_v32 = vsel %vm2128_vm2, %v5635_v56, %v2123_v40  ;;  %v2142_v49 = vsel %vm2128_vm2, %v2123_v40, %v5627_v50 }
 0x657   :  { %v5925_v47 = vmul.f32 %v5845_v48, %v2130_v32  ;;  %v5928_v11 = vmul.f32 %v5860_v39, %v2142_v49  ;;  %v5930_v37 = vpop.permute.xlu1 %1581  ;;  %1968 = vrot.lane.b32.xlu0 %v5429_v19, %s5039_s26  ;;  %v6061_v48 = vrot.slane %v1283_v16, %v5364_v35 }
 0x659   :  { %7477 = vst [vmem:[#allocation62_spill] sm:$0xff] %v5925_v47  ;;  %7478 = vst [vmem:[#allocation63_spill] sm:$0xff] %v5928_v11  ;;  %1982 = vrot.lane.b32.xlu1 %v5415_v6, %s5039_s26  ;;  %v5940_v50 = vpop.permute.xlu0 %1725  ;;  %v1285_v11 = vld [vmem:[%s7308_s9 + $0xc] sm:$0xf] }
 0x65a   :  { %v6028_v0 = vrot.slane %v1285_v11, %v5362_v12  ;;  %v6036_v15 = vrot.slane %v1285_v11, %v5360_v34  ;;  %v6039_v14 = vrot.slane %v1285_v11, %v5366_v36 }
 0x65b   :  { %v5942_v40 = vpop.permute.xlu1 %1439  ;;  %2268 = vrot.lane.b32.xlu0 %v5431_v20, %s5047_s20 }
 0x65d   :  { %2392 = vrot.lane.b32.xlu1 %v5413_v4, %s5049_s21  ;;  %v5952_v46 = vpop.permute.xlu0 %1583  ;;  %v4866_v4 = vld [vmem:[%s7309_s10 + $0x4] ss:$12 sps:$4 sm:$0xff]  }
 0x65e   :  { %3008 = vmatprep.mubr.bf16.mxu0 %v4866_v4  ;;  %3094 = vmatprep.mubr.bf16.mxu1 %v4866_v4 }
 0x65f   :  { %v5954_v56 = vpop.permute.xlu1 %1739  ;;  %2390 = vrot.lane.b32.xlu0 %v5397_v54, %s5049_s21 }
 0x661   :  { %2380 = vrot.lane.b32.xlu1 %v5375_v42, %s5049_s21  ;;  %v5960_v41 = vpop.permute.xlu0 %1441 }
 0x663   :  { %v5962_v23 = vpop.permute.xlu1 %1295  ;;  %2126 = vrot.lane.b32.xlu0 %v5431_v20, %s5048_s5 }
 0x664   :  { %7479 = vst [vmem:[#allocation64_spill] sm:$0xff] %v5962_v23  ;;  %v7520_v23 = vld [vmem:[#allocation18_spill] sm:$0xff] }
 0x665   :  { %2388 = vrot.lane.b32.xlu1 %v5381_v44, %s5049_s21  ;;  %v5971_v32 = vpop.permute.xlu0 %1741 }
 0x667   :  { %v5973_v54 = vpop.permute.xlu1 %1597  ;;  %1984 = vrot.lane.b32.xlu0 %v5431_v20, %s5039_s26 }
 0x669   :  { %2396 = vrot.lane.b32.xlu1 %v5377_v43, %s5049_s21  ;;  %v5979_v42 = vpop.permute.xlu0 %1297 }
 0x66a   :  { %7480 = vst [vmem:[#allocation65_spill] sm:$0xff] %v5979_v42 }
 0x66b   :  { %v5981_v49 = vpop.permute.xlu1 %1455  ;;  %2394 = vrot.lane.b32.xlu0 %v5429_v19, %s5049_s21 }
 0x66d   :  { %2408 = vrot.lane.b32.xlu1 %v5415_v6, %s5049_s21  ;;  %v5987_v44 = vpop.permute.xlu0 %1599 }
 0x66f   :  { %v5989_v4 = vpop.permute.xlu1 %2242  ;;  %2398 = vrot.lane.b32.xlu0 %v5393_v53, %s5049_s21 }
 0x670   :  { %7481 = vst [vmem:[#allocation66_spill] sm:$0xff] %v5989_v4  ;;  %v7514_v4 = vld [vmem:[#allocation29_spill] sm:$0xff] }
 0x671   :  { %2404 = vrot.lane.b32.xlu1 %v5383_v45, %s5049_s21  ;;  %v5995_v43 = vpop.permute.xlu0 %1457 }
 0x673   :  { %v5997_v22 = vpop.permute.xlu1 %2258  ;;  %2410 = vrot.lane.b32.xlu0 %v5431_v20, %s5049_s21  ;;  %v1284_v20 = vld [vmem:[%s7308_s9 + $0x8] sm:$0xf] }
 0x674   :  { %7482 = vst [vmem:[#allocation67_spill] sm:$0xff] %v5997_v22  ;;  %v6043_v38 = vrot.slane %v1284_v20, %v5364_v35  ;;  %v6049_v21 = vrot.slane %v1284_v20, %v5362_v12  ;;  %v6052_v51 = vrot.slane %v1284_v20, %v5360_v34  ;;  %v6055_v39 = vrot.slane %v1284_v20, %v5366_v36 }
 0x675   :  { %v6001_v19 = vpop.permute.xlu0 %2244  ;;  %v1753_v20 = vsel %vm1751_vm4, %v5571_v9, %v5667_v8 }
 0x676   :  { %7483 = vst [vmem:[#allocation68_spill] sm:$0xff] %v6001_v19  ;;  %v6143_v19 = vrot.slane %v1282_v17, %v5360_v34 }
 0x677   :  { %v6003_v6 = vpop.permute.xlu1 %1311  ;;  %2406 = vrot.lane.b32.xlu0 %v5399_v55, %s5049_s21  ;;  %v6025_v55 = vrot.slane %v1285_v11, %v5364_v35  ;;  %v1764_v35 = vsel %vm1751_vm4, %v5653_v63, %v5535_v27  ;;  %v1622_v27 = vsel %vm1609_vm5, %v5669_v10, %v5541_v28 }
 0x678   :  { %7484 = vst [vmem:[#allocation69_spill] sm:$0xff] %v6003_v6 }
 0x679   :  { %v6007_v47 = vpop.permute.xlu0 %2260 }
 0x67a   :  { %7485 = vst [vmem:[#allocation70_spill] sm:$0xff] %v6007_v47 }
 0x67b   :  { %v6009_v53 = vpop.permute.xlu1 %2100 }
 0x67c   :  { %7486 = vst [vmem:[#allocation71_spill] sm:$0xff] %v6009_v53 }
 0x67d   :  { %v6011_v52 = vpop.permute.xlu0 %1313 }
 0x67e   :  { %7487 = vst [vmem:[#allocation72_spill] sm:$0xff] %v6011_v52  ;;  %v7519_v52 = vld [vmem:[#allocation30_spill] sm:$0xff] }
 0x67f   :  { %v6013_v45 = vpop.permute.xlu1 %2116  ;;  %v1326_v6 = vsel %vm1325_vm7, %v7520_v23, %v7519_v52 }
 0x680   :  { %7488 = vst [vmem:[#allocation73_spill] sm:$0xff] %v6013_v45  ;;  %v7508_v45 = vld [vmem:[#allocation10_spill] sm:$0xff] }
 0x681   :  { %v6021_v33 = vpop.permute.xlu0 %2102 }
 0x682   :  { %7489 = vst [vmem:[#allocation74_spill] sm:$0xff] %v6021_v33  ;;  %v6070_v33 = vrot.slane %v1283_v16, %v5366_v36  ;;  %v1756_v16 = vsel %vm1751_vm4, %v5645_v60, %v5557_v29  ;;  %v1761_v60 = vsel %vm1751_vm4, %v5547_v1, %v5659_v62 }
 0x683   :  { %v6033_v30 = vpop.permute.xlu1 %1958 }
 0x684   :  { %7490 = vst [vmem:[#allocation75_spill] sm:$0xff] %v6033_v30  ;;  %v1757_v30 = vsel %vm1751_vm4, %v5659_v62, %v5571_v9  ;;  %v1614_v9 = vsel %vm1609_vm5, %v5661_v3, %v5573_v31 }
 0x685   :  { %v6058_v11 = vpop.permute.xlu0 %2118 }
 0x686   :  { %7491 = vst [vmem:[#allocation76_spill] sm:$0xff] %v6058_v11  ;;  %v1765_v11 = vsel %vm1751_vm4, %v5667_v8, %v5547_v1  ;;  %v1752_v8 = vsel %vm1751_vm4, %v5557_v29, %v5653_v63  ;;  %v1610_v29 = vsel %vm1609_vm5, %v5573_v31, %v5669_v10  ;;  %v1618_v1 = vsel %vm1609_vm5, %v5541_v28, %v5661_v3 }
 0x687   :  { %v6086_v26 = vpop.permute.xlu1 %1974  ;;  %v6131_v62 = vmul.f32 %v6036_v15, %v1765_v11  ;;  %v6137_v10 = vmul.f32 %v6036_v15, %v1764_v35  ;;  %v6146_v31 = vrot.slane %v1282_v17, %v5366_v36  ;;  %v6151_v28 = vmul.f32 %v6025_v55, %v1761_v60 }
 0x688   :  { %7492 = vst [vmem:[#allocation77_spill] sm:$0xff] %v6086_v26  ;;  %v6134_v26 = vmul.f32 %v6039_v14, %v1753_v20  ;;  %v6154_v3 = vmul.f32 %v6028_v0, %v1757_v30  ;;  %v6157_v35 = vmul.f32 %v6052_v51, %v1622_v27  ;;  %v6160_v11 = vmul.f32 %v6055_v39, %v1610_v29  ;;  %v7502_v27 = vld [vmem:[#allocation16_spill] sm:$0xff] }
 0x689   :  { %v6120_v63 = vpop.permute.xlu0 %1960  ;;  %7494 = vst [vmem:[#allocation79_spill] sm:$0xff] %v6137_v10  ;;  %v6164_v20 = vmul.f32 %v6025_v55, %v1760_v58  ;;  %v6167_v17 = vmul.f32 %v6028_v0, %v1756_v16  ;;  %v6173_v30 = vmul.f32 %v6049_v21, %v1614_v9  ;;  %v1611_v29 = vsel %vm1609_vm5, %v7502_v27, %v5683_v13  ;;  %v7504_v16 = vld [vmem:[#allocation24_spill] sm:$0xff] }
 0x68a   :  { %7493 = vst [vmem:[#allocation78_spill] sm:$0xff] %v6120_v63  ;;  %v6140_v63 = vmul.f32 %v6039_v14, %v1752_v8  ;;  %7496 = vst [vmem:[#allocation81_spill] sm:$0xff] %v6154_v3  ;;  %v6170_v8 = vmul.f32 %v6043_v38, %v1618_v1  ;;  %v1615_v1 = vsel %vm1609_vm5, %v7504_v16, %v7502_v27  ;;  %v7522_v3 = vld [vmem:[#allocation39_spill] sm:$0xff] }
 0x68b   :  { %v6148_v47 = vpop.permute.xlu1 %2384  ;;  %7497 = vst [vmem:[#allocation82_spill] sm:$0xff] %v6157_v35  ;;  %7498 = vst [vmem:[#allocation83_spill] sm:$0xff] %v6160_v11  ;;  %v6207_v27 = vmul.f32 %v6055_v39, %v1611_v29  ;;  %v6277_v10 = vrot.slane %v7522_v3, %v5366_v36 }
 0x68c   :  { %7495 = vst [vmem:[#allocation80_spill] sm:$0xff] %v6148_v47  ;;  %7499 = vst [vmem:[#allocation84_spill] sm:$0xff] %v6167_v17  ;;  %v7503_v47 = vld [vmem:[#allocation11_spill] sm:$0xff]  ;;  %v7521_v17 = vld [vmem:[#allocation13_spill] sm:$0xff] }
 0x68d   :  { %7500 = vst [vmem:[#allocation85_spill] sm:$0xff] %v6173_v30  ;;  %v6175_v60 = vpop.permute.xlu0 %1976  ;;  %v1623_v58 = vsel %vm1609_vm5, %v5683_v13, %v7503_v47  ;;  %v1619_v9 = vsel %vm1609_vm5, %v7503_v47, %v7504_v16  ;;  %v1476_v13 = vsel %vm1467_vm6, %v7508_v45, %v7507_v25  ;;  %7510 = vst [vmem:[#allocation24_spill] sm:$0xff] %v6207_v27 }
 0x68e   :  { %7501 = vst [vmem:[#allocation86_spill] sm:$0xff] %v6175_v60  ;;  %v7506_v60 = vld [vmem:[#allocation15_spill] sm:$0xff]  ;;  %v6204_v59 = vmul.f32 %v6052_v51, %v1623_v58  ;;  %v1480_v16 = vsel %vm1467_vm6, %v7511_v61, %v7508_v45  ;;  %v6223_v58 = vmul.f32 %v6049_v21, %v1615_v1  ;;  %7524 = vst [vmem:[#allocation29_spill] sm:$0xff] %v6277_v10 }
 0x68f   :  { %v6193_v34 = vpop.permute.xlu1 %2400  ;;  %v1472_v53 = vsel %vm1467_vm6, %v7507_v25, %v7506_v60  ;;  %v1468_v47 = vsel %vm1467_vm6, %v7506_v60, %v7511_v61  ;;  %v6220_v25 = vmul.f32 %v6043_v38, %v1619_v9  ;;  %v6230_v60 = vmul.f32 %v6061_v48, %v1476_v13  ;;  %v7517_v45 = vld [vmem:[#allocation27_spill] sm:$0xff] }
 0x690   :  { %7505 = vst [vmem:[#allocation16_spill] sm:$0xff] %v6193_v34  ;;  %7509 = vst [vmem:[#allocation11_spill] sm:$0xff] %v6204_v59  ;;  %v6233_v22 = vmul.f32 %v6064_v5, %v1472_v53  ;;  %v6240_v9 = vmul.f32 %v6067_v7, %v1480_v16  ;;  %v6243_v29 = vmul.f32 %v6070_v33, %v1468_v47  ;;  %v7516_v53 = vld [vmem:[#allocation12_spill] sm:$0xff] }
 0x691   :  { %v6217_v34 = vpop.permute.xlu0 %2386  ;;  %7513 = vst [vmem:[#allocation25_spill] sm:$0xff] %v6223_v58  ;;  %v1481_v42 = vsel %vm1467_vm6, %v7514_v4, %v7516_v53  ;;  %v1477_v47 = vsel %vm1467_vm6, %v7516_v53, %v7517_v45  ;;  %v6303_v10 = vmul.f32 %v6146_v31, %v1326_v6 }
 0x692   :  { %7512 = vst [vmem:[#allocation15_spill] sm:$0xff] %v6217_v34  ;;  %v7515_v34 = vld [vmem:[#allocation17_spill] sm:$0xff] }
 0x693   :  { %v1732_v61 = vpop.permute.xlu1 %1731  ;;  %v1469_v13 = vsel %vm1467_vm6, %v7515_v34, %v7514_v4  ;;  %v1473_v1 = vsel %vm1467_vm6, %v7517_v45, %v7515_v34  ;;  %v1338_v4 = vsel %vm1325_vm7, %v7519_v52, %v7521_v17  ;;  %v6273_v34 = vrot.slane %v7522_v3, %v5362_v12  ;;  %v7525_v45 = vld [vmem:[#allocation28_spill] sm:$0xff]  ;;  %7527 = vst [vmem:[#allocation12_spill] sm:$0xff] %v6303_v10 }
 0x694   :  { %v1330_v53 = vsel %vm1325_vm7, %v7525_v45, %v7520_v23  ;;  %v6288_v52 = vmul.f32 %v6067_v7, %v1481_v42  ;;  %v6291_v12 = vmul.f32 %v6070_v33, %v1469_v13  ;;  %v6294_v3 = vmul.f32 %v6061_v48, %v1477_v47 }
 0x695   :  { %v6261_v16 = vpop.permute.xlu0 %2402  ;;  %7523 = vst [vmem:[#allocation26_spill] sm:$0xff] %v6273_v34  ;;  %v6297_v36 = vmul.f32 %v6064_v5, %v1473_v1  ;;  %v6300_v23 = vmul.f32 %v6143_v19, %v1338_v4  ;;  %v6313_v47 = vmul.f32 %v6084_v2, %v1330_v53 }
 0x696   :  { %7518 = vst [vmem:[#allocation10_spill] sm:$0xff] %v6261_v16  ;;  %v1334_v16 = vsel %vm1325_vm7, %v7521_v17, %v7525_v45 }
 0x697   :  { %v1748_v34 = vpop.permute.xlu1 %1747  ;;  %7526 = vst [vmem:[#allocation17_spill] sm:$0xff] %v6300_v23  ;;  %v6310_v45 = vmul.f32 %v6081_v57, %v1334_v16  ;;  %7529 = vst [vmem:[#allocation30_spill] sm:$0xff] %v6313_v47  ;;  %v7530_v16 = vld [vmem:[#allocation19_spill] sm:$0xff]  ;;  %v7532_v47 = vld [vmem:[#allocation14_spill] sm:$0xff] }
 0x698   :  { %v1754_v4 = vsel %vm1751_vm4, %v5954_v56, %v1748_v34  ;;  %v1766_v13 = vsel %vm1751_vm4, %v1748_v34, %v5908_v18  ;;  %v7531_v23 = vld [vmem:[#allocation31_spill] sm:$0xff]  ;;  %v1758_v34 = vsel %vm1751_vm4, %v1732_v61, %v5954_v56 }
 0x699   :  { %v1734_v17 = vpop.permute.xlu0 %1733  ;;  %7528 = vst [vmem:[#allocation27_spill] sm:$0xff] %v6310_v45  ;;  %v1331_v53 = vsel %vm1325_vm7, %v7531_v23, %v7530_v16  ;;  %v1335_v1 = vsel %vm1325_vm7, %v7532_v47, %v7531_v23  ;;  %v1762_v45 = vsel %vm1751_vm4, %v5908_v18, %v1732_v61  ;;  %v1797_v58 = vmul.f32 %v6036_v15, %v1766_v13 }
 0x69a   :  { %v1759_v6 = vsel %vm1751_vm4, %v1734_v17, %v5971_v32  ;;  %v1763_v10 = vsel %vm1751_vm4, %v5940_v50, %v1734_v17  ;;  %v1800_v23 = vmul.f32 %v6039_v14, %v1754_v4  ;;  %v6358_v13 = vmul.f32 %v6081_v57, %v1335_v1 }
 0x69b   :  { %v1590_v42 = vpop.permute.xlu1 %1589  ;;  %v1802_v59 = vmul.f32 %v6025_v55, %v1763_v10  ;;  %v1803_v56 = vmul.f32 %v6028_v0, %v1759_v6  ;;  %v6361_v4 = vmul.f32 %v6084_v2, %v1331_v53  ;;  %v1799_v27 = vmul.f32 %v6028_v0, %v1758_v34 }
 0x69c   :  { %v1620_v6 = vsel %vm1609_vm5, %v5930_v37, %v1590_v42 }
 0x69d   :  { %v1750_v30 = vpop.permute.xlu0 %1749  ;;  %7533 = vst [vmem:[#allocation18_spill] sm:$0xff] %v6361_v4 }
 0x69e   :  { %v1755_v35 = vsel %vm1751_vm4, %v5971_v32, %v1750_v30  ;;  %v1767_v17 = vsel %vm1751_vm4, %v1750_v30, %v5940_v50  ;;  %v1798_v32 = vmul.f32 %v6025_v55, %v1762_v45  ;;  %v1616_v55 = vsel %vm1609_vm5, %v1590_v42, %v5973_v54 }
 0x69f   :  { %v1801_v11 = vmul.f32 %v6036_v15, %v1767_v17  ;;  %v1804_v18 = vmul.f32 %v6039_v14, %v1755_v35  ;;  %v1606_v61 = vpop.permute.xlu1 %1605  ;;  %v4934_v45 = vpack.c.bf16 %v1803_v56, %v1799_v27  ;;  %v7534_v27 = vld [vmem:[#allocation36_spill] sm:$0xff]  ;;  %v7535_v56 = vpack.c.bf16 %v6151_v28, %v6164_v20 }
 0x6a0   :  { %v1612_v14 = vsel %vm1609_vm5, %v5973_v54, %v1606_v61  ;;  %v1624_v35 = vsel %vm1609_vm5, %v1606_v61, %v5930_v37  ;;  %v4931_v54 = vpack.c.bf16 %v1802_v59, %v1798_v32  ;;  %v7537_v32 = vld [vmem:[#allocation79_spill] sm:$0xff] }
 0x6a1   :  { %v1592_v50 = vpop.permute.xlu0 %1591  ;;  %v4932_v34 = vpack.c.bf16 %v1804_v18, %v1800_v23  ;;  %v1655_v17 = vmul.f32 %v6052_v51, %v1624_v35  ;;  %v1658_v61 = vmul.f32 %v6055_v39, %v1612_v14  ;;  %v4933_v10 = vpack.c.bf16 %v1801_v11, %v1797_v58  ;;  %v7540_v14 = vld [vmem:[#allocation84_spill] sm:$0xff] }
 0x6a2   :  { %v1621_v0 = vsel %vm1609_vm5, %v5952_v46, %v1592_v50  ;;  %v1617_v53 = vsel %vm1609_vm5, %v1592_v50, %v5987_v44  ;;  %2976 = vmatprep.subr.bf16.mxu0 %v4931_v54  ;;  %v1656_v58 = vmul.f32 %v6043_v38, %v1620_v6  ;;  %v7538_v50 = vpack.c.bf16 %v6131_v62, %v7537_v32  ;;  %v7555_v32 = vld [vmem:[#allocation25_spill] sm:$0xff] }
 0x6a3   :  { %v1448_v30 = vpop.permute.xlu1 %1447  ;;  %v1660_v4 = vmul.f32 %v6043_v38, %v1621_v0  ;;  %3062 = vmatprep.subr.bf16.mxu1 %v4932_v34  ;;  %v1661_v59 = vmul.f32 %v6049_v21, %v1617_v53  ;;  %2977 = vmatpush1.bf16.msra.mxu0 %v4933_v10 }
 0x6a4   :  { %3063 = vmatpush1.bf16.msra.mxu1 %v4934_v45  ;;  %2978 = vmatprep.subr.bf16.mxu0 %v7535_v56 }
 0x6a5   :  { %v1608_v15 = vpop.permute.xlu0 %1607 }
 0x6a6   :  { %v1613_v1 = vsel %vm1609_vm5, %v5987_v44, %v1608_v15  ;;  %v1625_v37 = vsel %vm1609_vm5, %v1608_v15, %v5952_v46  ;;  %v1339_v44 = vsel %vm1325_vm7, %v7534_v27, %v7532_v47  ;;  %v1657_v46 = vmul.f32 %v6049_v21, %v1616_v55  ;;  %v7539_v15 = vld [vmem:[#allocation81_spill] sm:$0xff] }
 0x6a7   :  { %v1659_v42 = vmul.f32 %v6052_v51, %v1625_v37  ;;  %v1662_v23 = vmul.f32 %v6055_v39, %v1613_v1  ;;  %v1464_v11 = vpop.permute.xlu1 %1463  ;;  %v7536_v51 = vpack.c.bf16 %v6134_v26, %v6140_v63  ;;  %v1478_v39 = vsel %vm1467_vm6, %v5942_v40, %v1448_v30  ;;  %2979 = vmatpush1.bf16.msra.mxu0 %v7538_v50  ;;  %v7556_v50 = vld [vmem:[#allocation85_spill] sm:$0xff] }
 0x6a8   :  { %v1482_v47 = vsel %vm1467_vm6, %v1464_v11, %v5942_v40  ;;  %v1470_v38 = vsel %vm1467_vm6, %v5981_v49, %v1464_v11  ;;  %v1327_v26 = vsel %vm1325_vm7, %v7530_v16, %v7534_v27  ;;  %v6432_v63 = vmul.f32 %v6143_v19, %v1339_v44  ;;  %v7545_v11 = vld [vmem:[#allocation24_spill] sm:$0xff]  ;;  %v7546_v27 = vld [vmem:[#allocation83_spill] sm:$0xff] }
 0x6a9   :  { %3064 = vmatprep.subr.bf16.mxu1 %v7536_v51  ;;  %v1450_v18 = vpop.permute.xlu0 %1449  ;;  %v1474_v40 = vsel %vm1467_vm6, %v1448_v30, %v5981_v49  ;;  %v1514_v10 = vmul.f32 %v6061_v48, %v1478_v39  ;;  %v1513_v16 = vmul.f32 %v6067_v7, %v1482_v47  ;;  %v7541_v35 = vpack.c.bf16 %v7539_v15, %v7540_v14  ;;  %v7548_v51 = vld [vmem:[#allocation72_spill] sm:$0xff] }
 0x6aa   :  { %v1479_v21 = vsel %vm1467_vm6, %v5960_v41, %v1450_v18  ;;  %v1475_v28 = vsel %vm1467_vm6, %v1450_v18, %v5995_v43  ;;  %v4935_v55 = vpack.c.bf16 %v1660_v4, %v1656_v58  ;;  %v4936_v0 = vpack.c.bf16 %v1662_v23, %v1658_v61  ;;  %v7542_v4 = vld [vmem:[#allocation69_spill] sm:$0xff]  ;;  %v7550_v18 = vld [vmem:[#allocation11_spill] sm:$0xff] }
 0x6ab   :  { %v1304_v20 = vpop.permute.xlu1 %1303  ;;  %3065 = vmatpush1.bf16.msra.mxu1 %v7541_v35  ;;  %v1516_v49 = vmul.f32 %v6070_v33, %v1470_v38  ;;  %v1518_v30 = vmul.f32 %v6061_v48, %v1479_v21  ;;  %v4937_v1 = vpack.c.bf16 %v1659_v42, %v1655_v17  ;;  %v4938_v6 = vpack.c.bf16 %v1661_v59, %v1657_v46  ;;  %v7543_v48 = vld [vmem:[#allocation64_spill] sm:$0xff]  ;;  %v7551_v38 = vld [vmem:[#allocation82_spill] sm:$0xff] }
 0x6ac   :  { %v1519_v62 = vmul.f32 %v6064_v5, %v1475_v28  ;;  %2980 = vmatprep.subr.bf16.mxu0 %v4935_v55  ;;  %3066 = vmatprep.subr.bf16.mxu1 %v4936_v0  ;;  %v1332_v34 = vsel %vm1325_vm7, %v1304_v20, %v7542_v4  ;;  %v1336_v17 = vsel %vm1325_vm7, %v7543_v48, %v1304_v20  ;;  %v7554_v28 = vld [vmem:[#allocation20_spill] sm:$0xff]  ;;  %v7558_v55 = vld [vmem:[#allocation26_spill] sm:$0xff] }
 0x6ad   :  { %v1466_v45 = vpop.permute.xlu0 %1465  ;;  %2981 = vmatpush1.bf16.msra.mxu0 %v4937_v1  ;;  %v7544_v23 = vpack.c.bf16 %v6220_v25, %v6170_v8  ;;  %v1372_v44 = vmul.f32 %v6081_v57, %v1336_v17  ;;  %v6483_v58 = vmul.f32 %v6084_v2, %v1332_v34  ;;  %v7549_v25 = vld [vmem:[#allocation65_spill] sm:$0xff]  ;;  %v7552_v21 = vpack.c.bf16 %v7550_v18, %v7551_v38  ;;  %v7561_v17 = vld [vmem:[#allocation66_spill] sm:$0xff] }
 0x6ae   :  { %v1471_v53 = vsel %vm1467_vm6, %v5995_v43, %v1466_v45  ;;  %v1483_v54 = vsel %vm1467_vm6, %v1466_v45, %v5960_v41  ;;  %v1515_v43 = vmul.f32 %v6064_v5, %v1474_v40  ;;  %v7547_v5 = vpack.c.bf16 %v7545_v11, %v7546_v27  ;;  %v7559_v45 = vld [vmem:[#allocation29_spill] sm:$0xff] }
 0x6af   :  { %v1517_v61 = vmul.f32 %v6067_v7, %v1483_v54  ;;  %v1520_v37 = vmul.f32 %v6070_v33, %v1471_v53  ;;  %v1320_v59 = vpop.permute.xlu1 %1319  ;;  %3067 = vmatpush1.bf16.msra.mxu1 %v4938_v6  ;;  %2982 = vmatprep.subr.bf16.mxu0 %v7544_v23  ;;  %v6476_v7 = vmul.f32 %v6146_v31, %v1327_v26  ;;  %v7553_v26 = vld [vmem:[#allocation21_spill] sm:$0xff] }
 0x6b0   :  { %v1328_v41 = vsel %vm1325_vm7, %v7542_v4, %v1320_v59  ;;  %v1340_v42 = vsel %vm1325_vm7, %v1320_v59, %v7543_v48  ;;  %3068 = vmatprep.subr.bf16.mxu1 %v7547_v5  ;;  %v7557_v15 = vpack.c.bf16 %v7555_v32, %v7556_v50  ;;  %v4939_v14 = vpack.c.bf16 %v1518_v30, %v1514_v10  ;;  %v7575_v32 = vld [vmem:[#allocation68_spill] sm:$0xff] }
 0x6b1   :  { %v1306_v33 = vpop.permute.xlu0 %1305  ;;  %v1371_v46 = vmul.f32 %v6143_v19, %v1340_v42  ;;  %v1374_v56 = vmul.f32 %v6146_v31, %v1328_v41  ;;  %2983 = vmatpush1.bf16.msra.mxu0 %v7552_v21  ;;  %v4940_v35 = vpack.c.bf16 %v1520_v37, %v1516_v49  ;;  %v4941_v53 = vpack.c.bf16 %v1517_v61, %v1513_v16  ;;  %v7566_v42 = vld [vmem:[#allocation23_spill] sm:$0xff]  ;;  %v7572_v21 = vld [vmem:[#allocation37_spill] sm:$0xff] }
 0x6b2   :  { %v1333_v8 = vsel %vm1325_vm7, %v1306_v33, %v7548_v51  ;;  %v1337_v39 = vsel %vm1325_vm7, %v7549_v25, %v1306_v33  ;;  %v4942_v54 = vpack.c.bf16 %v1519_v62, %v1515_v43  ;;  %2984 = vmatprep.subr.bf16.mxu0 %v4939_v14  ;;  %v7560_v62 = vld [vmem:[#allocation67_spill] sm:$0xff]  ;;  %v7562_v37 = vpack.c.bf16 %v6294_v3, %v6230_v60  ;;  %v7567_v33 = vld [vmem:[#allocation22_spill] sm:$0xff]  ;;  %v7577_v14 = vld [vmem:[#allocation12_spill] sm:$0xff] }
 0x6b3   :  { %v1979_v47 = vpop.permute.xlu1 %1978  ;;  %3069 = vmatpush1.bf16.msra.mxu1 %v7557_v15  ;;  %v1376_v4 = vmul.f32 %v6081_v57, %v1337_v39  ;;  %v1377_v49 = vmul.f32 %v6084_v2, %v1333_v8  ;;  %v7563_v2 = vld [vmem:[#allocation32_spill] sm:$0xff]  ;;  %v7565_v41 = vpack.c.bf16 %v6291_v12, %v6243_v29  ;;  %v7568_v12 = vpack.c.bf16 %v6288_v52, %v6240_v9  ;;  %v7573_v9 = vld [vmem:[#allocation38_spill] sm:$0xff] }
 0x6b4   :  { %v1987_v40 = vsel %vm1986_vm3, %v7553_v26, %v1979_v47  ;;  %v1999_v20 = vsel %vm1986_vm3, %v1979_v47, %v7554_v28  ;;  %3070 = vmatprep.subr.bf16.mxu1 %v4940_v35  ;;  %v7571_v47 = vpack.c.bf16 %v6297_v36, %v6233_v22  ;;  %v7574_v28 = vld [vmem:[#allocation70_spill] sm:$0xff]  ;;  %v7576_v22 = vld [vmem:[#allocation27_spill] sm:$0xff]  ;;  %v4948_v35 = vpack.c.bf16 %v6476_v7, %v7577_v14  ;;  %v7582_v7 = vld [vmem:[#allocation17_spill] sm:$0xff] }
 0x6b5   :  { %v6506_v0 = vmul.f32 %v7558_v55, %v1987_v40  ;;  %v6509_v1 = vmul.f32 %v7559_v45, %v1999_v20  ;;  %v1322_v6 = vpop.permute.xlu0 %1321  ;;  %2985 = vmatpush1.bf16.msra.mxu0 %v4941_v53  ;;  %v4943_v29 = vpack.c.bf16 %v1376_v4, %v1372_v44  ;;  %v4946_v40 = vpack.c.bf16 %v1377_v49, %v6483_v58  ;;  %v7581_v49 = vld [vmem:[#allocation43_spill] sm:$0xff] }
 0x6b6   :  { %v1329_v34 = vsel %vm1325_vm7, %v7548_v51, %v1322_v6  ;;  %v1341_v10 = vsel %vm1325_vm7, %v1322_v6, %v7549_v25  ;;  %2986 = vmatprep.subr.bf16.mxu0 %v7562_v37  ;;  %v7569_v51 = vld [vmem:[#allocation73_spill] sm:$0xff]  ;;  %v7570_v25 = vld [vmem:[#allocation71_spill] sm:$0xff] }
 0x6b7   :  { %v1375_v30 = vmul.f32 %v6143_v19, %v1341_v10  ;;  %v1378_v48 = vmul.f32 %v6146_v31, %v1329_v34  ;;  %v2251_v16 = vpop.permute.xlu1 %2250  ;;  %3071 = vmatpush1.bf16.msra.mxu1 %v4942_v54  ;;  %v7564_v19 = vld [vmem:[#allocation33_spill] sm:$0xff]  ;;  %v7579_v54 = vld [vmem:[#allocation75_spill] sm:$0xff]  ;;  %v7580_v34 = vld [vmem:[#allocation42_spill] sm:$0xff] }
 0x6b8   :  { %v2277_v57 = vsel %vm2270_vm1, %v2251_v16, %v7560_v62  ;;  %v2281_v61 = vsel %vm2270_vm1, %v7561_v17, %v2251_v16  ;;  %3072 = vmatprep.subr.bf16.mxu1 %v7565_v41  ;;  %v7578_v6 = vld [vmem:[#allocation77_spill] sm:$0xff]  ;;  %v4949_v16 = vpack.c.bf16 %v6432_v63, %v7582_v7 }
 0x6b9   :  { %v6531_v59 = vmul.f32 %v7563_v2, %v2281_v61  ;;  %v2317_v31 = vmul.f32 %v7564_v19, %v2277_v57  ;;  %v1981_v43 = vpop.permute.xlu0 %1980  ;;  %2987 = vmatpush1.bf16.msra.mxu0 %v7568_v12  ;;  %v4944_v18 = vpack.c.bf16 %v1378_v48, %v1374_v56  ;;  %v4945_v38 = vpack.c.bf16 %v1375_v30, %v1371_v46  ;;  %v7583_v57 = vld [vmem:[#allocation30_spill] sm:$0xff]  ;;  %v7587_v12 = vld [vmem:[#allocation76_spill] sm:$0xff] }
 0x6ba   :  { %v1988_v23 = vsel %vm1986_vm3, %v7566_v42, %v1981_v43  ;;  %v2000_v11 = vsel %vm1986_vm3, %v1981_v43, %v7567_v33  ;;  %2988 = vmatprep.subr.bf16.mxu0 %v4943_v29  ;;  %v4947_v46 = vpack.c.bf16 %v6358_v13, %v7576_v22  ;;  %v7584_v61 = vld [vmem:[#allocation18_spill] sm:$0xff] }
 0x6bb   :  { %v4712_v60 = vpack.c.bf16 %v2317_v31, %v6531_v59  ;;  %v6545_v3 = vmul.f32 %v7558_v55, %v1988_v23  ;;  %v6548_v27 = vmul.f32 %v7559_v45, %v2000_v11  ;;  %v2109_v5 = vpop.permute.xlu1 %2108  ;;  %3073 = vmatpush1.bf16.msra.mxu1 %v7571_v47  ;;  %v4950_v37 = vpack.c.bf16 %v7584_v61, %v7583_v57  ;;  %v7585_v23 = vld [vmem:[#allocation46_spill] sm:$0xff]  ;;  %v7586_v11 = vld [vmem:[#allocation49_spill] sm:$0xff] }
 0x6bc   :  { %v2135_v8 = vsel %vm2128_vm2, %v2109_v5, %v7569_v51  ;;  %v2139_v39 = vsel %vm2128_vm2, %v7570_v25, %v2109_v5  ;;  %3074 = vmatprep.subr.bf16.mxu1 %v4944_v18  ;;  %v7589_v18 = vld [vmem:[#allocation45_spill] sm:$0xff]  ;;  %v7599_v57 = vld [vmem:[#allocation6_spill] sm:$0xff] }
 0x6bd   :  { %2376 = vst [vmem:[#allocation2 + $0x198] sm:$0xff] %v4712_v60  ;;  %v6563_v26 = vmul.f32 %v7572_v21, %v2139_v39  ;;  %v6566_v52 = vmul.f32 %v7573_v9, %v2135_v8  ;;  %v2253_v44 = vpop.permute.xlu0 %2252  ;;  %2989 = vmatpush1.bf16.msra.mxu0 %v4945_v38  ;;  %v7590_v38 = vld [vmem:[#allocation35_spill] sm:$0xff] }
 0x6be   :  { %v2278_v20 = vsel %vm2270_vm1, %v2253_v44, %v7574_v28  ;;  %v2282_v36 = vsel %vm2270_vm1, %v7575_v32, %v2253_v44  ;;  %2990 = vmatprep.subr.bf16.mxu0 %v4947_v46  ;;  %v7591_v44 = vpack.c.bf16 %v7589_v18, %v7590_v38  ;;  %v7594_v46 = vld [vmem:[#allocation86_spill] sm:$0xff]  ;;  %v7607_v38 = vld [vmem:[#allocation40_spill] sm:$0xff] }
 0x6bf   :  { %v4704_v56 = vpack.c.bf16 %v6566_v52, %v6563_v26  ;;  %v2320_v50 = vmul.f32 %v7563_v2, %v2282_v36  ;;  %v2321_v15 = vmul.f32 %v7564_v19, %v2278_v20  ;;  %v1967_v58 = vpop.permute.xlu1 %1966  ;;  %3075 = vmatpush1.bf16.msra.mxu1 %v4946_v40  ;;  %v7592_v20 = vld [vmem:[#allocation52_spill] sm:$0xff]  ;;  %v7606_v18 = vld [vmem:[#allocation50_spill] sm:$0xff] }
 0x6c0   :  { %v1993_v53 = vsel %vm1986_vm3, %v1967_v58, %v7578_v6  ;;  %v1997_v13 = vsel %vm1986_vm3, %v7579_v54, %v1967_v58  ;;  %3076 = vmatprep.subr.bf16.mxu1 %v4948_v35  ;;  %v7596_v35 = vld [vmem:[#allocation44_spill] sm:$0xff] }
 0x6c1   :  { %2234 = vst [vmem:[#allocation2 + $0xd8] sm:$0xff] %v4704_v56  ;;  %v4714_v4 = vpack.c.bf16 %v2321_v15, %v2320_v50  ;;  %v6590_v10 = vmul.f32 %v7580_v34, %v1997_v13  ;;  %v6593_v30 = vmul.f32 %v7581_v49, %v1993_v53  ;;  %v6595_v48 = vpop.permute.xlu0 %2382  ;;  %2991 = vmatpush1.bf16.msra.mxu0 %v4949_v16  ;;  %v7595_v56 = vld [vmem:[#allocation78_spill] sm:$0xff] }
 0x6c2   :  { %v4951_v43 = vpack.c.bf16 %v2320_v50, %v6531_v59  ;;  %v4952_v41 = vpack.c.bf16 %v2321_v15, %v2317_v31  ;;  %v7588_v31 = vld [vmem:[#allocation74_spill] sm:$0xff] }
 0x6c3   :  { %2378 = vst [vmem:[#allocation2 + $0x158] sm:$0xff] %v4714_v4  ;;  %v4696_v2 = vpack.c.bf16 %v6593_v30, %v6590_v10  ;;  %v2267_v19 = vpop.permute.xlu1 %2266  ;;  %3077 = vmatpush1.bf16.msra.mxu1 %v4950_v37  ;;  %v7597_v53 = vld [vmem:[#allocation34_spill] sm:$0xff] }
 0x6c4   :  { %v2273_v42 = vsel %vm2270_vm1, %v7560_v62, %v2267_v19  ;;  %v2285_v63 = vsel %vm2270_vm1, %v2267_v19, %v7561_v17  ;;  %2992 = vmatprep.subr.bf16.mxu0 %v4952_v41  ;;  %v7598_v13 = vpack.c.bf16 %v7596_v35, %v7597_v53  ;;  %v7600_v19 = vld [vmem:[#allocation8_spill] sm:$0xff]  ;;  %v7609_v35 = vld [vmem:[#allocation61_spill] sm:$0xff]  ;;  %v7610_v53 = vld [vmem:[#allocation54_spill] sm:$0xff] }
 0x6c5   :  { %2092 = vst [vmem:[#allocation2 + $0xc0] sm:$0xff] %v4696_v2  ;;  %v6611_v33 = vmul.f32 %v7585_v23, %v2273_v42  ;;  %v2319_v60 = vmul.f32 %v7586_v11, %v2285_v63  ;;  %v2111_v5 = vpop.permute.xlu0 %2110  ;;  %2993 = vmatpush2.bf16.msra.mxu0 %v4951_v43  ;;  %v7601_v63 = vld [vmem:[#allocation16_spill] sm:$0xff] }
 0x6c6   :  { %v2136_v59 = vsel %vm2128_vm2, %v2111_v5, %v7587_v12  ;;  %v2140_v62 = vsel %vm2128_vm2, %v7588_v31, %v2111_v5  ;;  %2994 = vmatprep.subr.bf16.mxu0 %v7591_v44  ;;  %v7608_v44 = vpack.c.bf16 %v7606_v18, %v7607_v38  ;;  %v2554_v38 = vld [vmem:[#allocation2 + $0xc8] sm:$0xff] }
 0x6c7   :  { %v2178_v29 = vmul.f32 %v7572_v21, %v2140_v62  ;;  %v2179_v17 = vmul.f32 %v7573_v9, %v2136_v59  ;;  %v2125_v8 = vpop.permute.xlu1 %2124  ;;  %v7593_v21 = vld [vmem:[#allocation55_spill] sm:$0xff]  ;;  %v7602_v59 = vld [vmem:[#allocation80_spill] sm:$0xff] }
 0x6c8   :  { %v2131_v39 = vsel %vm2128_vm2, %v7569_v51, %v2125_v8  ;;  %v2143_v47 = vsel %vm2128_vm2, %v2125_v8, %v7570_v25  ;;  %v6640_v51 = vld [vmem:[%s7308_s9 + $0x20] sm:$0xf]  ;;  %v7603_v62 = vld [vmem:[#allocation51_spill] sm:$0xff] }
 0x6c9   :  { %v4706_v40 = vpack.c.bf16 %v2179_v17, %v2178_v29  ;;  %v6632_v36 = vmul.f32 %v7592_v20, %v2131_v39  ;;  %v6635_v9 = vmul.f32 %v7593_v21, %v2143_v47  ;;  %v1969_v22 = vpop.permute.xlu0 %1968  ;;  %2995 = vmatpush2.bf16.msra.mxu0 %v7598_v13  ;;  %v4953_v4 = vpack.c.bf16 %v2178_v29, %v6563_v26  ;;  %v7604_v29 = vld [vmem:[#allocation41_spill] sm:$0xff] }
 0x6ca   :  { %v1994_v25 = vsel %vm1986_vm3, %v1969_v22, %v7594_v46  ;;  %v1998_v50 = vsel %vm1986_vm3, %v7595_v56, %v1969_v22  ;;  %v7611_v13 = vpack.c.bf16 %v7609_v35, %v7610_v53  ;;  %v7626_v35 = vld [vmem:[#allocation59_spill] sm:$0xff] }
 0x6cb   :  { %2236 = vst [vmem:[#allocation2 + $0x70] sm:$0xff] %v4706_v40  ;;  %v2036_v15 = vmul.f32 %v7580_v34, %v1998_v50  ;;  %v2037_v58 = vmul.f32 %v7581_v49, %v1994_v25  ;;  %v1983_v14 = vpop.permute.xlu1 %1982  ;;  %v6663_v34 = vrot.slane %v6640_v51, %v7599_v57  ;;  %v4954_v49 = vpack.c.bf16 %v2179_v17, %v6566_v52 }
 0x6cc   :  { %v1989_v7 = vsel %vm1986_vm3, %v7578_v6, %v1983_v14  ;;  %v2001_v16 = vsel %vm1986_vm3, %v1983_v14, %v7579_v54  ;;  %v6674_v6 = vrot.slane %v6640_v51, %v7600_v19  ;;  %v7605_v17 = vpack.c.bf16 %v7603_v62, %v7604_v29 }
 0x6cd   :  { %v4698_v61 = vpack.c.bf16 %v2037_v58, %v2036_v15  ;;  %v6667_v37 = vmul.f32 %v7558_v55, %v1989_v7  ;;  %v6670_v26 = vmul.f32 %v7559_v45, %v2001_v16  ;;  %v2269_v2 = vpop.permute.xlu0 %2268  ;;  %2996 = vmatprep.subr.bf16.mxu0 %v4954_v49  ;;  %v4955_v8 = vpack.c.bf16 %v2037_v58, %v6593_v30  ;;  %v2558_v16 = vld [vmem:[#allocation2 + $0x48] sm:$0xff]  ;;  %v7615_v49 = vld [vmem:[#allocation60_spill] sm:$0xff] }
 0x6ce   :  { %v2274_v54 = vsel %vm2270_vm1, %v7574_v28, %v2269_v2  ;;  %v2286_v52 = vsel %vm2270_vm1, %v2269_v2, %v7575_v32  ;;  %2997 = vmatpush2.bf16.msra.mxu0 %v4953_v4  ;;  %v4958_v50 = vpack.c.bf16 %v2036_v15, %v6590_v10  ;;  %v2560_v10 = vld [vmem:[#allocation2 + $0x148] sm:$0xff]  ;;  %v7612_v15 = vld [vmem:[#allocation57_spill] sm:$0xff]  ;;  %v7613_v4 = vld [vmem:[#allocation48_spill] sm:$0xff] }
 0x6cf   :  { %2094 = vst [vmem:[#allocation2 + $0x138] sm:$0xff] %v4698_v61  ;;  %v2322_v43 = vmul.f32 %v7585_v23, %v2274_v54  ;;  %v2323_v41 = vmul.f32 %v7586_v11, %v2286_v52  ;;  %v2393_v42 = vpop.permute.xlu1 %2392  ;;  %2998 = vmatprep.subr.bf16.mxu0 %v7605_v17  ;;  %v7614_v7 = vpack.c.bf16 %v7612_v15, %v7613_v4  ;;  %v7616_v61 = vld [vmem:[#allocation53_spill] sm:$0xff]  ;;  %v7621_v17 = vld [vmem:[#allocation7_spill] sm:$0xff] }
 0x6d0   :  { %v2419_v5 = vsel %vm2412_vm8, %v2393_v42, %v7601_v63  ;;  %v2423_v28 = vsel %vm2412_vm8, %v7602_v59, %v2393_v42  ;;  %v7617_v2 = vpack.c.bf16 %v7615_v49, %v7616_v61  ;;  %v4499_v54 = vcombine.high %v2558_v16, %v2560_v10  ;;  %v7618_v42 = vld [vmem:[#allocation56_spill] sm:$0xff]  ;;  %v7629_v49 = vld [vmem:[#allocation58_spill] sm:$0xff] }
 0x6d1   :  { %v6694_v32 = vmul.f32 %v6663_v34, %v2423_v28  ;;  %v6697_v23 = vmul.f32 %v6674_v6, %v2419_v5  ;;  %v6699_v11 = vpop.permute.xlu0 %2390  ;;  %v4956_v40 = vpack.c.bf16 %v2322_v43, %v6611_v33  ;;  %v4957_v22 = vpack.c.bf16 %v2323_v41, %v2319_v60  ;;  %v7619_v5 = vld [vmem:[#allocation47_spill] sm:$0xff] }
 0x6d2   :  { %2999 = vmatpush2.bf16.msra.mxu0 %v7608_v44  ;;  %v7620_v28 = vpack.c.bf16 %v7618_v42, %v7619_v5  ;;  %v2422_v44 = vsel %vm2412_vm8, %v6595_v48, %v6699_v11  ;;  %v4864_v61 = vld [vmem:[%s7309_s10] ss:$12 sps:$4 sm:$0xff]  }
 0x6d3   :  { %v4720_v39 = vpack.c.bf16 %v6697_v23, %v6694_v32  ;;  %v6704_v47 = vpop.permute.xlu1 %2380  ;;  %3000 = vmatprep.subr.bf16.mxu0 %v4955_v8  ;;  %3078 = vmatprep.subr.bf16.mxu1 %v4957_v22  ;;  %v6750_v8 = vrot.slane %v6640_v51, %v7621_v17 }
 0x6d4   :  { %3079 = vmatpush2.bf16.msra.mxu1 %v4956_v40  ;;  %v7623_v40 = vld [vmem:[#allocation10_spill] sm:$0xff] }
 0x6d5   :  { %2518 = vst [vmem:[#allocation2 + $0xf0] sm:$0xff] %v4720_v39  ;;  %v2127_v25 = vpop.permute.xlu0 %2126  ;;  %3080 = vmatprep.subr.bf16.mxu1 %v7611_v13 }
 0x6d6   :  { %v2132_v30 = vsel %vm2128_vm2, %v7587_v12, %v2127_v25  ;;  %v2144_v58 = vsel %vm2128_vm2, %v2127_v25, %v7588_v31  ;;  %3001 = vmatpush2.bf16.msra.mxu0 %v4958_v50  ;;  %v7624_v25 = vld [vmem:[#allocation15_spill] sm:$0xff] }
 0x6d7   :  { %v2180_v14 = vmul.f32 %v7592_v20, %v2132_v30  ;;  %v2181_v33 = vmul.f32 %v7593_v21, %v2144_v58  ;;  %v2389_v60 = vpop.permute.xlu1 %2388  ;;  %3002 = vmatprep.subr.bf16.mxu0 %v7614_v7 }
 0x6d8   :  { %v2421_v31 = vsel %vm2412_vm8, %v6704_v47, %v2389_v60  ;;  %3081 = vmatpush2.bf16.msra.mxu1 %v7617_v2 }
 0x6d9   :  { %v1985_v12 = vpop.permute.xlu0 %1984  ;;  %v4960_v62 = vpack.c.bf16 %v2181_v33, %v6635_v9 }
 0x6da   :  { %v1990_v20 = vsel %vm1986_vm3, %v7594_v46, %v1985_v12  ;;  %v2002_v21 = vsel %vm1986_vm3, %v1985_v12, %v7595_v56  ;;  %3003 = vmatpush2.bf16.msra.mxu0 %v7620_v28  ;;  %v4959_v46 = vpack.c.bf16 %v2180_v14, %v6632_v36  ;;  %v2556_v56 = vld [vmem:[#allocation2 + $0xe8] sm:$0xff]  ;;  %v7622_v36 = vld [vmem:[#allocation9_spill] sm:$0xff] }
 0x6db   :  { %v6738_v52 = vmul.f32 %v7558_v55, %v1990_v20  ;;  %v2039_v43 = vmul.f32 %v7559_v45, %v2002_v21  ;;  %v2397_v41 = vpop.permute.xlu1 %2396  ;;  %v4498_v55 = vcombine.low %v2558_v16, %v2560_v10  ;;  %3004 = vmatprep.subr.bf16.mxu0 %v4499_v54  ;;  %v6753_v45 = vmul.f32 %v6663_v34, %v2421_v31  ;;  %v7628_v21 = vld [vmem:[#allocation62_spill] sm:$0xff] }
 0x6dc   :  { %v2417_v29 = vsel %vm2412_vm8, %v2389_v60, %v2397_v41  ;;  %v6760_v9 = vrot.slane %v6640_v51, %v7622_v36  ;;  %3082 = vmatprep.subr.bf16.mxu1 %v4960_v62  ;;  %v4495_v30 = vcombine.high %v2554_v38, %v2556_v56  ;;  %v7625_v60 = vld [vmem:[#allocation63_spill] sm:$0xff]  ;;  %v4494_v15 = vcombine.low %v2554_v38, %v2556_v56 }
 0x6dd   :  { %v6756_v39 = vmul.f32 %v6674_v6, %v2417_v29  ;;  %v2395_v18 = vpop.permute.xlu0 %2394  ;;  %3083 = vmatpush2.bf16.msra.mxu1 %v4959_v46  ;;  %v7627_v53 = vpack.c.bf16 %v7625_v60, %v7626_v35  ;;  %v4961_v31 = vpack.c.bf16 %v2039_v43, %v6670_v26  ;;  %v2454_v20 = vmul.f32 %v6663_v34, %v2422_v44 }
 0x6de   :  { %v2420_v22 = vsel %vm2412_vm8, %v2395_v18, %v7623_v40  ;;  %v2424_v50 = vsel %vm2412_vm8, %v7624_v25, %v2395_v18  ;;  %3005 = vmatpush2.bf16.msra.mxu0 %v4498_v55  ;;  %v4964_v46 = vpack.c.bf16 %v6738_v52, %v6667_v37  ;;  %v7631_v56 = vmov 0   ;;  %v4869_v18 = vld [vmem:[#allocation2 + $0x1fc] ss:$-48 sps:$4 sm:$0xff]  }
 0x6df   :  { %v4716_v51 = vpack.c.bf16 %v6756_v39, %v6753_v45  ;;  %v2462_v58 = vmul.f32 %v6663_v34, %v2424_v50  ;;  %v2463_v14 = vmul.f32 %v6674_v6, %v2420_v22  ;;  %v2409_v33 = vpop.permute.xlu1 %2408  ;;  %3084 = vmatprep.subr.bf16.mxu1 %v7627_v53  ;;  %3006 = vmatprep.subr.bf16.mxu0 %v4495_v30  ;;  %v2555_v22 = vld [vmem:[#allocation2 + $0x178] sm:$0xff] }
 0x6e0   :  { %v2415_v13 = vsel %vm2412_vm8, %v7601_v63, %v2409_v33  ;;  %v2427_v10 = vsel %vm2412_vm8, %v2409_v33, %v7602_v59  ;;  %v7630_v59 = vpack.c.bf16 %v7628_v21, %v7629_v49  ;;  %v4966_v37 = vpack.c.bf16 %v2454_v20, %v6753_v45  ;;  %v4870_v45 = vld [vmem:[%s7309_s10 + $0x8] ss:$12 sps:$4 sm:$0xff]  }
 0x6e1   :  { %2514 = vst [vmem:[#allocation2 + $0x100] sm:$0xff] %v4716_v51  ;;  %v4722_v4 = vpack.c.bf16 %v2463_v14, %v2462_v58  ;;  %v2460_v7 = vmul.f32 %v6750_v8, %v2415_v13  ;;  %v2461_v12 = vmul.f32 %v6760_v9, %v2427_v10  ;;  %v2399_v16 = vpop.permute.xlu0 %2398  ;;  %v4962_v34 = vpack.c.bf16 %v2462_v58, %v6694_v32 }
 0x6e2   :  { %v2418_v63 = vsel %vm2412_vm8, %v6699_v11, %v2399_v16  ;;  %3085 = vmatpush2.bf16.msra.mxu1 %v7630_v59  ;;  %3007 = vmatpush2.bf16.msra.mxu0 %v4494_v15  ;;  %v4963_v43 = vpack.c.bf16 %v2463_v14, %v6697_v23  ;;  %v4965_v23 = vpack.c.bf16 %v6548_v27, %v6509_v1 }
 0x6e3   :  { %2520 = vst [vmem:[#allocation2 + $0xa8] sm:$0xff] %v4722_v4  ;;  %v2455_v2 = vmul.f32 %v6674_v6, %v2418_v63  ;;  %v2405_v54 = vpop.permute.xlu1 %2404  ;;  %3086 = vmatprep.subr.bf16.mxu1 %v4961_v31  ;;  %v4968_v55 = vpack.c.bf16 %v6545_v3, %v6506_v0  ;;  %v2557_v3 = vld [vmem:[#allocation2 + $0x218] sm:$0xff] }
 0x6e4   :  { %v2413_v26 = vsel %vm2412_vm8, %v2397_v41, %v2405_v54  ;;  %v2425_v11 = vsel %vm2412_vm8, %v2405_v54, %v6704_v47  ;;  %3031 = vmatprep.subr.bf16.mxu0 %v4963_v43 }
 0x6e5   :  { %v4718_v42 = vpack.c.bf16 %v2455_v2, %v2454_v20  ;;  %v2452_v5 = vmul.f32 %v6750_v8, %v2413_v26  ;;  %v2453_v28 = vmul.f32 %v6760_v9, %v2425_v11  ;;  %v2411_v6 = vpop.permute.xlu0 %2410  ;;  %3009 = vmatmul.mubr.bf16.vlgmr.msra.gmra.mxu0 %v4864_v61  ;;  %v4967_v52 = vpack.c.bf16 %v2455_v2, %v6756_v39 }
 0x6e6   :  { %v2416_v32 = vsel %vm2412_vm8, %v7623_v40, %v2411_v6  ;;  %v2428_v41 = vsel %vm2412_vm8, %v2411_v6, %v7624_v25  ;;  %3032 = vmatpush1.bf16.msra.mxu0 %v4962_v34  ;;  %3087 = vmatpush2.bf16.msra.mxu1 %v4964_v46  ;;  %v4867_v40 = vld [vmem:[#allocation2 + $0x1f8] ss:$-48 sps:$4 sm:$0xff]  }
 0x6e7   :  { %2516 = vst [vmem:[#allocation2 + $0x1f0] sm:$0xff] %v4718_v42  ;;  %v2464_v47 = vmul.f32 %v6750_v8, %v2416_v32  ;;  %v2465_v62 = vmul.f32 %v6760_v9, %v2428_v41  ;;  %3088 = vmatprep.subr.bf16.mxu1 %v4965_v23  ;;  %3051 = vmatprep.mubr.bf16.mxu0 %v7631_v56 }
 0x6e8   :  { %3033 = vmatprep.subr.bf16.mxu0 %v4967_v52 }
 0x6e9   :  { %v2407_v29 = vpop.permute.xlu0 %2406  ;;  %v4969_v0 = vpack.c.bf16 %v2464_v47, %v2460_v7  ;;  %v4970_v44 = vpack.c.bf16 %v2465_v62, %v2461_v12 }
 0x6ea   :  { %v2414_v1 = vsel %vm2412_vm8, %v2399_v16, %v2407_v29  ;;  %v2426_v27 = vsel %vm2412_vm8, %v2407_v29, %v6595_v48  ;;  %3034 = vmatpush1.bf16.msra.mxu0 %v4966_v37  ;;  %3089 = vmatpush2.bf16.msra.mxu1 %v4968_v55  ;;  %v4497_v48 = vcombine.high %v2555_v22, %v2557_v3 }
 0x6eb   :  { %v2456_v39 = vmul.f32 %v6750_v8, %v2414_v1  ;;  %v2457_v38 = vmul.f32 %v6760_v9, %v2426_v27  ;;  %3090 = vmatprep.subr.bf16.mxu1 %v4869_v18  ;;  %3117 = vmatprep.subr.bf16.mxu0 %v4970_v44  ;;  %v4496_v8 = vcombine.low %v2555_v22, %v2557_v3 }
 0x6ed   :  { %4534 = vmatmul.mubr.msk.bf16.vlgmr.msra.gmra.mxu0 %vm69_vm0, %v4870_v45  ;;  %v4971_v25 = vpack.c.bf16 %v2456_v39, %v2452_v5  ;;  %v4972_v50 = vpack.c.bf16 %v2457_v38, %v2453_v28 }
 0x6ee   :  { %3091 = vmatpush2.bf16.msra.mxu1 %v4867_v40  ;;  %3118 = vmatpush1.bf16.msra.mxu0 %v4969_v0 }
 0x6ef   :  { %3092 = vmatprep.subr.bf16.mxu1 %v4497_v48  ;;  %3137 = vmatprep.mubr.bf16.mxu0 %v7631_v56 }
 0x6f0   :  { %3119 = vmatprep.subr.bf16.mxu0 %v4972_v50 }
 0x6f2   :  { %3093 = vmatpush2.bf16.msra.mxu1 %v4496_v8  ;;  %3120 = vmatpush1.bf16.msra.mxu0 %v4971_v25  ;;  %v3185_v8 = vld [vmem:[%s7310_s11 + $0x8] sm:$0xff] }
 0x6f5   :  { %3095 = vmatmul.mubr.bf16.vlgmr.msra.gmra.mxu1 %v4864_v61  ;;  %4535 = vmatmul.mubr.msk.bf16.vlgmr.msra.gmra.mxu0 %vm69_vm0, %v4870_v45 }
 0x7a5   :  { %v3010_v9 = vpop.f32.mrf.mxu0 }
 0x7a7   :  { %v3012_v30 = vpop.f32.mrf.mxu0 }
 0x7a9   :  { %v3014_v51 = vpop.f32.mrf.mxu0 }
 0x7ab   :  { %v3016_v58 = vpop.f32.mrf.mxu0 }
 0x7ad   :  { %v3053_v14 = vpop.f32.mrf.mxu0 }
 0x7ae   :  { %v6840_v13 = vadd.f32 %v3053_v14, %v3010_v9 }
 0x7af   :  { %v3055_v33 = vpop.f32.mrf.mxu0 }
 0x7b0   :  { %v6838_v35 = vadd.f32 %v3055_v33, %v3012_v30  ;;  %v3160_v61 = vmul.f32 %v6840_v13, %v6840_v13  ;;  %v3184_v30 = vld [vmem:[%s7310_s11] sm:$0xff] }
 0x7b1   :  { %v3057_v60 = vpop.f32.mrf.mxu0 }
 0x7b2   :  { %v6844_v15 = vadd.f32 %v3057_v60, %v3014_v51  ;;  %v3148_v12 = vadd.f32 %v6838_v35, %v6840_v13  ;;  %v3161_v31 = vmul.f32 %v6838_v35, %v6838_v35  ;;  %v3192_v60 = vld [vmem:[%s7311_s12] sm:$0xff] }
 0x7b3   :  { %v3059_v53 = vpop.f32.mrf.mxu0 }
 0x7b4   :  { %v6842_v10 = vadd.f32 %v3059_v53, %v3016_v58  ;;  %v3164_v2 = vmul.f32 %v6844_v15, %v6844_v15  ;;  %v3168_v5 = vadd.f32 %v3161_v31, %v3160_v61  ;;  %v3193_v53 = vld [vmem:[%s7311_s12 + $0x8] sm:$0xff]  ;;  %v3254_v31 = vld [vmem:[%s7308_s9 + $0x10] sm:$0xf] }
 0x7b5   :  { %v3096_v4 = vpop.f32.mrf.mxu1  ;;  %v3139_v7 = vpop.f32.mrf.mxu0 }
 0x7b6   :  { %v6848_v16 = vadd.f32 %v3139_v7, %v3096_v4  ;;  %v3165_v21 = vmul.f32 %v6842_v10, %v6842_v10  ;;  %v3153_v26 = vadd.f32 %v6842_v10, %v6844_v15 }
 0x7b7   :  { %v3098_v20 = vpop.f32.mrf.mxu1  ;;  %v3141_v63 = vpop.f32.mrf.mxu0 }
 0x7b8   :  { %v3149_v49 = vadd.f32 %v3148_v12, %v6848_v16  ;;  %v6855_v59 = vadd.f32 %v3141_v63, %v3098_v20  ;;  %v3162_v11 = vmul.f32 %v6848_v16, %v6848_v16  ;;  %v3173_v46 = vadd.f32 %v3165_v21, %v3164_v2 }
 0x7b9   :  { %v3100_v54 = vpop.f32.mrf.mxu1  ;;  %v3143_v34 = vpop.f32.mrf.mxu0  ;;  %v3587_v21 = vrot.slane %v3254_v31, %v7599_v57 }
 0x7ba   :  { %v6865_v43 = vadd.f32 %v3143_v34, %v3100_v54  ;;  %v3150_v42 = vadd.f32 %v3149_v49, %v6855_v59  ;;  %v3163_v47 = vmul.f32 %v6855_v59, %v6855_v59  ;;  %v3169_v56 = vadd.f32 %v3168_v5, %v3162_v11 }
 0x7bb   :  { %v3102_v28 = vpop.f32.mrf.mxu1  ;;  %v3145_v6 = vpop.f32.mrf.mxu0  ;;  %v3591_v49 = vrot.slane %v3254_v31, %v7600_v19 }
 0x7bc   :  { %v3154_v32 = vadd.f32 %v3153_v26, %v6865_v43  ;;  %v3166_v41 = vmul.f32 %v6865_v43, %v6865_v43  ;;  %v3146_v23 = vadd.f32 %v3145_v6, %v3102_v28  ;;  %3151 = vadd.xlane.f32.xlu1 %v3150_v42  ;;  %v3170_v55 = vadd.f32 %v3169_v56, %v3163_v47 }
 0x7be   :  { %v3167_v62 = vmul.f32 %v3146_v23, %v3146_v23  ;;  %v3155_v37 = vadd.f32 %v3154_v32, %v3146_v23  ;;  %v3174_v52 = vadd.f32 %v3173_v46, %v3166_v41 }
 0x7c0   :  { %3156 = vadd.xlane.f32.xlu0 %v3155_v37  ;;  %v3175_v29 = vadd.f32 %v3174_v52, %v3167_v62 }
 0x7c2   :  { %3176 = vadd.xlane.f32.xlu1 %v3175_v29 }
 0x7c4   :  { %3171 = vadd.xlane.f32.xlu0 %v3170_v55 }
 0x845   :  { %v3152_v1 = vpop.xlane.xlu1 %3151 }
 0x846   :  { %v3158_v18 = vmul.f32 0.001953125, %v3152_v1 }
 0x848   :  { %v3180_v44 = vmul.f32 %v3158_v18, %v3158_v18 }
 0x849   :  { %v3157_v27 = vpop.xlane.xlu0 %3156 }
 0x84a   :  { %v3159_v45 = vmul.f32 0.001953125, %v3157_v27 }
 0x84b   :  { %v3177_v39 = vpop.xlane.xlu1 %3176 }
 0x84c   :  { %v3181_v38 = vmul.f32 %v3159_v45, %v3159_v45  ;;  %v3179_v0 = vmul.f32 0.001953125, %v3177_v39 }
 0x84d   :  { %v3172_v3 = vpop.xlane.xlu0 %3171 }
 0x84e   :  { %v3183_v40 = vsub.f32 %v3179_v0, %v3181_v38  ;;  %v3178_v22 = vmul.f32 0.001953125, %v3172_v3 }
 0x850   :  { %v3187_v48 = vadd.f32 1e-05, %v3183_v40  ;;  %v3182_v25 = vsub.f32 %v3178_v22, %v3180_v44 }
 0x852   :  { %4889 = vrsqrt.f32 %v3187_v48  ;;  %v3186_v50 = vadd.f32 1e-05, %v3182_v25 }
 0x854   :  { %4891 = vrsqrt.f32 %v3186_v50 }
 0x85f   :  { %v4890_v9 = vpop.eup %4889 }
 0x860   :  { %v3191_v51 = vmul.f32 %v4890_v9, %v3185_v8 }
 0x861   :  { %v4892_v58 = vpop.eup %4891 }
 0x862   :  { %3205 = vperm.xlu1 %4842, %v3191_v51   ;;  %v3190_v14 = vmul.f32 %v4892_v58, %v3184_v30  ;;  %v3195_v33 = vmul.f32 %v3191_v51, %v3159_v45 }
 0x864   :  { %3200 = vperm.xlu0 %4841, %v3190_v14   ;;  %v3194_v4 = vmul.f32 %v3190_v14, %v3158_v18  ;;  %v3197_v12 = vsub.f32 %v3193_v53, %v3195_v33 }
 0x866   :  { %v3196_v7 = vsub.f32 %v3192_v60, %v3194_v4 }
 0x868   :  { %3218 = vperm.xlu1 %4842, %v3196_v7   ;;  %3223 = vperm.xlu0 %4841, %v3197_v12   ;;  %v3257_v7 = vld [vmem:[%s7308_s9 + $0x1c] sm:$0xf]  ;;  %v7077_v12 = vld [vmem:[%s7312_s13] sm:$0xff] }
 0x8dd   :  { %v3206_v20 = vpop.permute.xlu1 %3205 }
 0x8de   :  { %v3212_v26 = vmul.f32 %v3206_v20, %v6844_v15  ;;  %v3213_v11 = vmul.f32 %v3206_v20, %v6842_v10  ;;  %v3214_v42 = vmul.f32 %v3206_v20, %v6865_v43  ;;  %v3215_v5 = vmul.f32 %v3206_v20, %v3146_v23 }
 0x8df   :  { %v3201_v63 = vpop.permute.xlu0 %3200  ;;  %v3595_v15 = vrot.slane %v3254_v31, %v7621_v17  ;;  %v3599_v43 = vrot.slane %v3254_v31, %v7622_v36  ;;  %v4573_v20 = vcombine.high %v7077_v12, %v7077_v12 }
 0x8e0   :  { %v3208_v61 = vmul.f32 %v3201_v63, %v6840_v13  ;;  %v3209_v2 = vmul.f32 %v3201_v63, %v6838_v35  ;;  %v3210_v54 = vmul.f32 %v3201_v63, %v6848_v16  ;;  %v3211_v34 = vmul.f32 %v3201_v63, %v6855_v59 }
 0x8e1   :  { %4610 = vmatprep.mubr.msk.bf16.mxu0 %vm4193_vm9, %v4573_v20  ;;  %4611 = vmatprep.mubr.msk.bf16.mxu1 %vm4193_vm9, %v4573_v20 }
 0x8e3   :  { %v3219_v28 = vpop.permute.xlu1 %3218  ;;  %v3224_v6 = vpop.permute.xlu0 %3223 }
 0x8e4   :  { %v3226_v46 = vadd.f32 %v3219_v28, %v3208_v61  ;;  %v3227_v32 = vadd.f32 %v3219_v28, %v3209_v2  ;;  %v3228_v41 = vadd.f32 %v3219_v28, %v3210_v54  ;;  %v3229_v47 = vadd.f32 %v3219_v28, %v3211_v34 }
 0x8e5   :  { %v3230_v13 = vadd.f32 %v3224_v6, %v3212_v26  ;;  %v3231_v62 = vadd.f32 %v3224_v6, %v3213_v11  ;;  %v3232_v35 = vadd.f32 %v3224_v6, %v3214_v42  ;;  %v3233_v37 = vadd.f32 %v3224_v6, %v3215_v5 }
 0x8e6   :  { %v3234_v16 = vmul.f32 0.2, %v3226_v46  ;;  %v3235_v52 = vmul.f32 0.2, %v3227_v32  ;;  %v3236_v59 = vmul.f32 0.2, %v3228_v41  ;;  %v3838_v11 = vrot.slane %v3257_v7, %v7621_v17 }
 0x8e7   :  { %v3237_v56 = vmul.f32 0.2, %v3229_v47  ;;  %v3238_v10 = vmul.f32 0.2, %v3230_v13  ;;  %v3239_v29 = vmul.f32 0.2, %v3231_v62  ;;  %v3842_v6 = vrot.slane %v3257_v7, %v7622_v36 }
 0x8e8   :  { %v6899_v23 = vmax.f32 %v3226_v46, %v3234_v16  ;;  %v6901_v55 = vmax.f32 %v3227_v32, %v3235_v52  ;;  %v6903_v1 = vmax.f32 %v3228_v41, %v3236_v59  ;;  %v3240_v27 = vmul.f32 0.2, %v3232_v35  ;;  %v4001_v41 = vld [vmem:[%s7313_s14] sm:$0xff] }
 0x8e9   :  { %v6905_v18 = vmax.f32 %v3229_v47, %v3237_v56  ;;  %v3241_v45 = vmul.f32 0.2, %v3233_v37  ;;  %v6907_v39 = vmax.f32 %v3230_v13, %v3238_v10  ;;  %v6909_v38 = vmax.f32 %v3231_v62, %v3239_v29 }
 0x8ea   :  { %v6911_v0 = vmax.f32 %v3232_v35, %v3240_v27  ;;  %3802 = vrot.lane.b32.xlu1 %v6899_v23, %s5047_s20  ;;  %v6916_v3 = vmul.f32 %v3587_v21, %v6899_v23  ;;  %v6919_v44 = vmul.f32 %v3591_v49, %v6901_v55  ;;  %v6922_v40 = vmul.f32 %v3595_v15, %v6903_v1  ;;  %v3256_v27 = vld [vmem:[%s7308_s9 + $0x18] sm:$0xf] }
 0x8eb   :  { %v6924_v22 = vmax.f32 %v3233_v37, %v3241_v45  ;;  %3804 = vrot.lane.b32.xlu0 %v6907_v39, %s5047_s20  ;;  %v6929_v48 = vmul.f32 %v3587_v21, %v6907_v39  ;;  %v6932_v25 = vmul.f32 %v3591_v49, %v6909_v38  ;;  %v6937_v8 = vmul.f32 %v3599_v43, %v6905_v18 }
 0x8ec   :  { %v4740_v50 = vpack.c.bf16 %v6919_v44, %v6916_v3  ;;  %v6940_v9 = vmul.f32 %v3595_v15, %v6911_v0  ;;  %v3830_v21 = vrot.slane %v3257_v7, %v7599_v57  ;;  %v3834_v49 = vrot.slane %v3257_v7, %v7600_v19 }
 0x8ed   :  { %v6943_v30 = vmul.f32 %v3599_v43, %v6924_v22  ;;  %v4742_v51 = vpack.c.bf16 %v6932_v25, %v6929_v48  ;;  %v4973_v58 = vpack.c.bf16 %v6929_v48, %v6916_v3  ;;  %v4974_v14 = vpack.c.bf16 %v6932_v25, %v6919_v44 }
 0x8ee   :  { %3806 = vrot.lane.b32.xlu1 %v6901_v55, %s5047_s20  ;;  %3636 = vst [vmem:[#allocation2 + $0x1b0] sm:$0xff] %v4740_v50  ;;  %v4975_v33 = vpack.c.bf16 %v6940_v9, %v6922_v40 }
 0x8ef   :  { %3808 = vrot.lane.b32.xlu0 %v6909_v38, %s5047_s20  ;;  %3638 = vst [vmem:[#allocation2 + $0x30] sm:$0xff] %v4742_v51  ;;  %v4976_v60 = vpack.c.bf16 %v6943_v30, %v6937_v8 }
 0x8f2   :  { %3810 = vrot.lane.b32.xlu1 %v6903_v1, %s5047_s20 }
 0x8f3   :  { %3812 = vrot.lane.b32.xlu0 %v6911_v0, %s5047_s20 }
 0x8f6   :  { %3814 = vrot.lane.b32.xlu1 %v6905_v18, %s5047_s20 }
 0x8f7   :  { %3816 = vrot.lane.b32.xlu0 %v6924_v22, %s5047_s20 }
 0x8fa   :  { %3721 = vrot.lane.b32.xlu1 %v6899_v23, %s5048_s5 }
 0x8fb   :  { %3723 = vrot.lane.b32.xlu0 %v6907_v39, %s5048_s5 }
 0x8fe   :  { %3725 = vrot.lane.b32.xlu1 %v6901_v55, %s5048_s5 }
 0x8ff   :  { %3727 = vrot.lane.b32.xlu0 %v6909_v38, %s5048_s5 }
 0x902   :  { %3729 = vrot.lane.b32.xlu1 %v6903_v1, %s5048_s5 }
 0x903   :  { %3731 = vrot.lane.b32.xlu0 %v6911_v0, %s5048_s5 }
 0x906   :  { %3733 = vrot.lane.b32.xlu1 %v6905_v18, %s5048_s5 }
 0x907   :  { %3735 = vrot.lane.b32.xlu0 %v6924_v22, %s5048_s5 }
 0x90a   :  { %3640 = vrot.lane.b32.xlu1 %v6899_v23, %s5039_s26 }
 0x90b   :  { %3642 = vrot.lane.b32.xlu0 %v6907_v39, %s5039_s26 }
 0x90e   :  { %3644 = vrot.lane.b32.xlu1 %v6901_v55, %s5039_s26 }
 0x90f   :  { %3646 = vrot.lane.b32.xlu0 %v6909_v38, %s5039_s26 }
 0x912   :  { %3648 = vrot.lane.b32.xlu1 %v6903_v1, %s5039_s26 }
 0x913   :  { %3650 = vrot.lane.b32.xlu0 %v6911_v0, %s5039_s26 }
 0x916   :  { %3652 = vrot.lane.b32.xlu1 %v6905_v18, %s5039_s26 }
 0x917   :  { %3654 = vrot.lane.b32.xlu0 %v6924_v22, %s5039_s26 }
 0x91a   :  { %3502 = vrot.lane.b32.xlu1 %v6899_v23, %s5036_s23 }
 0x91b   :  { %3504 = vrot.lane.b32.xlu0 %v6907_v39, %s5036_s23 }
 0x91e   :  { %3506 = vrot.lane.b32.xlu1 %v6901_v55, %s5036_s23 }
 0x91f   :  { %3508 = vrot.lane.b32.xlu0 %v6909_v38, %s5036_s23 }
 0x922   :  { %3510 = vrot.lane.b32.xlu1 %v6903_v1, %s5036_s23 }
 0x923   :  { %3512 = vrot.lane.b32.xlu0 %v6911_v0, %s5036_s23 }
 0x926   :  { %3514 = vrot.lane.b32.xlu1 %v6905_v18, %s5036_s23 }
 0x927   :  { %3516 = vrot.lane.b32.xlu0 %v6924_v22, %s5036_s23 }
 0x92a   :  { %3421 = vrot.lane.b32.xlu1 %v6899_v23, %s5044_s17 }
 0x92b   :  { %3423 = vrot.lane.b32.xlu0 %v6907_v39, %s5044_s17 }
 0x92e   :  { %3425 = vrot.lane.b32.xlu1 %v6901_v55, %s5044_s17 }
 0x92f   :  { %3427 = vrot.lane.b32.xlu0 %v6909_v38, %s5044_s17 }
 0x932   :  { %3429 = vrot.lane.b32.xlu1 %v6903_v1, %s5044_s17 }
 0x933   :  { %3431 = vrot.lane.b32.xlu0 %v6911_v0, %s5044_s17 }
 0x936   :  { %3433 = vrot.lane.b32.xlu1 %v6905_v18, %s5044_s17 }
 0x937   :  { %3435 = vrot.lane.b32.xlu0 %v6924_v22, %s5044_s17 }
 0x93a   :  { %3340 = vrot.lane.b32.xlu1 %v6899_v23, %s5045_s18 }
 0x93b   :  { %3342 = vrot.lane.b32.xlu0 %v6907_v39, %s5045_s18 }
 0x93e   :  { %3344 = vrot.lane.b32.xlu1 %v6901_v55, %s5045_s18 }
 0x93f   :  { %3346 = vrot.lane.b32.xlu0 %v6909_v38, %s5045_s18 }
 0x942   :  { %3348 = vrot.lane.b32.xlu1 %v6903_v1, %s5045_s18 }
 0x943   :  { %3350 = vrot.lane.b32.xlu0 %v6911_v0, %s5045_s18 }
 0x946   :  { %3352 = vrot.lane.b32.xlu1 %v6905_v18, %s5045_s18 }
 0x947   :  { %3354 = vrot.lane.b32.xlu0 %v6924_v22, %s5045_s18 }
 0x94a   :  { %3259 = vrot.lane.b32.xlu1 %v6899_v23, %s5046_s19 }
 0x94b   :  { %3261 = vrot.lane.b32.xlu0 %v6907_v39, %s5046_s19 }
 0x94e   :  { %3263 = vrot.lane.b32.xlu1 %v6901_v55, %s5046_s19 }
 0x94f   :  { %3265 = vrot.lane.b32.xlu0 %v6909_v38, %s5046_s19 }
 0x952   :  { %3267 = vrot.lane.b32.xlu1 %v6903_v1, %s5046_s19 }
 0x953   :  { %3269 = vrot.lane.b32.xlu0 %v6911_v0, %s5046_s19 }
 0x956   :  { %3271 = vrot.lane.b32.xlu1 %v6905_v18, %s5046_s19 }
 0x957   :  { %3273 = vrot.lane.b32.xlu0 %v6924_v22, %s5046_s19 }
 0x95a   :  { %3883 = vrot.lane.b32.xlu1 %v6899_v23, %s5049_s21 }
 0x95b   :  { %3885 = vrot.lane.b32.xlu0 %v6907_v39, %s5049_s21 }
 0x95c   :  { %v3803_v53 = vpop.permute.xlu1 %3802 }
 0x95d   :  { %v3805_v4 = vpop.permute.xlu0 %3804 }
 0x95e   :  { %3887 = vrot.lane.b32.xlu1 %v6901_v55, %s5049_s21 }
 0x95f   :  { %3889 = vrot.lane.b32.xlu0 %v6909_v38, %s5049_s21 }
 0x960   :  { %v3807_v31 = vpop.permute.xlu1 %3806 }
 0x961   :  { %v3809_v63 = vpop.permute.xlu0 %3808  ;;  %v3822_v61 = vsel %vm2270_vm1, %v3803_v53, %v3807_v31 }
 0x962   :  { %3891 = vrot.lane.b32.xlu1 %v6903_v1, %s5049_s21  ;;  %v3823_v2 = vsel %vm2270_vm1, %v3805_v4, %v3809_v63  ;;  %v3847_v42 = vmul.f32 %v3830_v21, %v3822_v61 }
 0x963   :  { %3893 = vrot.lane.b32.xlu0 %v6911_v0, %s5049_s21  ;;  %v3851_v46 = vmul.f32 %v3830_v21, %v3823_v2  ;;  %v3749_v0 = vrot.slane %v3256_v27, %v7599_v57 }
 0x964   :  { %v3811_v54 = vpop.permute.xlu1 %3810 }
 0x965   :  { %v3820_v34 = vsel %vm2270_vm1, %v3807_v31, %v3811_v54  ;;  %v3813_v26 = vpop.permute.xlu0 %3812  ;;  %v4977_v43 = vpack.c.bf16 %v3851_v46, %v3847_v42  ;;  %v3757_v31 = vrot.slane %v3256_v27, %v7621_v17 }
 0x966   :  { %v3848_v5 = vmul.f32 %v3834_v49, %v3820_v34  ;;  %v3821_v28 = vsel %vm2270_vm1, %v3809_v63, %v3813_v26  ;;  %3895 = vrot.lane.b32.xlu1 %v6905_v18, %s5049_s21 }
 0x967   :  { %v3852_v32 = vmul.f32 %v3834_v49, %v3821_v28  ;;  %3897 = vrot.lane.b32.xlu0 %v6924_v22, %s5049_s21  ;;  %v3753_v22 = vrot.slane %v3256_v27, %v7600_v19  ;;  %v3761_v49 = vrot.slane %v3256_v27, %v7622_v36 }
 0x968   :  { %v4752_v47 = vpack.c.bf16 %v3848_v5, %v3847_v42  ;;  %v3815_v13 = vpop.permute.xlu1 %3814 }
 0x969   :  { %v4754_v62 = vpack.c.bf16 %v3852_v32, %v3851_v46  ;;  %v3818_v35 = vsel %vm2270_vm1, %v3811_v54, %v3815_v13  ;;  %v3824_v37 = vsel %vm2270_vm1, %v3815_v13, %v3803_v53  ;;  %v3817_v16 = vpop.permute.xlu0 %3816  ;;  %v4978_v23 = vpack.c.bf16 %v3852_v32, %v3848_v5 }
 0x96a   :  { %3879 = vst [vmem:[#allocation2 + $0x1b8] sm:$0xff] %v4752_v47  ;;  %v3849_v52 = vmul.f32 %v3838_v11, %v3818_v35  ;;  %v3850_v59 = vmul.f32 %v3842_v6, %v3824_v37  ;;  %v3819_v15 = vsel %vm2270_vm1, %v3813_v26, %v3817_v16  ;;  %v3825_v56 = vsel %vm2270_vm1, %v3817_v16, %v3805_v4  ;;  %v3255_v16 = vld [vmem:[%s7308_s9 + $0x14] sm:$0xf] }
 0x96b   :  { %4004 = vperm.xlu1 %4842, %v4001_v41   ;;  %3881 = vst [vmem:[#allocation2 + $0x170] sm:$0xff] %v4754_v62  ;;  %v3853_v10 = vmul.f32 %v3838_v11, %v3819_v15  ;;  %v3854_v29 = vmul.f32 %v3842_v6, %v3825_v56  ;;  %4197 = vmatprep.subr.bf16.mxu0 %v4978_v23 }
 0x96c   :  { %v3722_v55 = vpop.permute.xlu1 %3721  ;;  %4198 = vmatpush1.bf16.msra.mxu0 %v4977_v43 }
 0x96d   :  { %v3724_v1 = vpop.permute.xlu0 %3723  ;;  %v4979_v18 = vpack.c.bf16 %v3853_v10, %v3849_v52  ;;  %v4980_v45 = vpack.c.bf16 %v3854_v29, %v3850_v59  ;;  %v3668_v10 = vrot.slane %v3255_v16, %v7599_v57  ;;  %v3672_v29 = vrot.slane %v3255_v16, %v7600_v19 }
 0x96f   :  { %4238 = vmatprep.subr.bf16.mxu1 %v4980_v45 }
 0x970   :  { %v3726_v39 = vpop.permute.xlu1 %3725  ;;  %4239 = vmatpush1.bf16.msra.mxu1 %v4979_v18  ;;  %v3676_v18 = vrot.slane %v3255_v16, %v7621_v17 }
 0x971   :  { %v3728_v38 = vpop.permute.xlu0 %3727  ;;  %v3741_v50 = vsel %vm2128_vm2, %v3722_v55, %v3726_v39 }
 0x972   :  { %v3742_v51 = vsel %vm2128_vm2, %v3724_v1, %v3728_v38  ;;  %v3766_v20 = vmul.f32 %v3749_v0, %v3741_v50 }
 0x973   :  { %v3770_v61 = vmul.f32 %v3749_v0, %v3742_v51  ;;  %v3680_v0 = vrot.slane %v3255_v16, %v7622_v36 }
 0x974   :  { %v3730_v53 = vpop.permute.xlu1 %3729 }
 0x975   :  { %v3739_v4 = vsel %vm2128_vm2, %v3726_v39, %v3730_v53  ;;  %v3732_v7 = vpop.permute.xlu0 %3731  ;;  %v4981_v13 = vpack.c.bf16 %v3770_v61, %v3766_v20 }
 0x976   :  { %v3767_v63 = vmul.f32 %v3753_v22, %v3739_v4  ;;  %v3740_v21 = vsel %vm2128_vm2, %v3728_v38, %v3732_v7 }
 0x977   :  { %v3771_v2 = vmul.f32 %v3753_v22, %v3740_v21 }
 0x978   :  { %v4748_v54 = vpack.c.bf16 %v3767_v63, %v3766_v20  ;;  %v3734_v34 = vpop.permute.xlu1 %3733 }
 0x979   :  { %v4750_v26 = vpack.c.bf16 %v3771_v2, %v3770_v61  ;;  %v3737_v11 = vsel %vm2128_vm2, %v3730_v53, %v3734_v34  ;;  %v3743_v42 = vsel %vm2128_vm2, %v3734_v34, %v3722_v55  ;;  %v3736_v5 = vpop.permute.xlu0 %3735  ;;  %v4982_v62 = vpack.c.bf16 %v3771_v2, %v3767_v63 }
 0x97a   :  { %3798 = vst [vmem:[#allocation2 + $0x210] sm:$0xff] %v4748_v54  ;;  %v3768_v28 = vmul.f32 %v3757_v31, %v3737_v11  ;;  %v3769_v6 = vmul.f32 %v3761_v49, %v3743_v42  ;;  %v3738_v46 = vsel %vm2128_vm2, %v3732_v7, %v3736_v5  ;;  %v3744_v32 = vsel %vm2128_vm2, %v3736_v5, %v3724_v1 }
 0x97b   :  { %3800 = vst [vmem:[#allocation2 + $0x220] sm:$0xff] %v4750_v26  ;;  %v3772_v41 = vmul.f32 %v3757_v31, %v3738_v46  ;;  %v3773_v47 = vmul.f32 %v3761_v49, %v3744_v32  ;;  %4199 = vmatprep.subr.bf16.mxu0 %v4982_v62  ;;  %v3253_v32 = vld [vmem:[%s7308_s9 + $0xc] sm:$0xf] }
 0x97c   :  { %v3641_v35 = vpop.permute.xlu1 %3640  ;;  %4200 = vmatpush1.bf16.msra.mxu0 %v4981_v13  ;;  %v3534_v25 = vrot.slane %v3253_v32, %v7600_v19  ;;  %v3530_v3 = vrot.slane %v3253_v32, %v7599_v57  ;;  %v3542_v48 = vrot.slane %v3253_v32, %v7622_v36 }
 0x97d   :  { %v3643_v37 = vpop.permute.xlu0 %3642  ;;  %v4983_v52 = vpack.c.bf16 %v3772_v41, %v3768_v28  ;;  %v4984_v59 = vpack.c.bf16 %v3773_v47, %v3769_v6 }
 0x97f   :  { %4240 = vmatprep.subr.bf16.mxu1 %v4984_v59 }
 0x980   :  { %v3645_v15 = vpop.permute.xlu1 %3644  ;;  %4241 = vmatpush1.bf16.msra.mxu1 %v4983_v52 }
 0x981   :  { %v3647_v56 = vpop.permute.xlu0 %3646  ;;  %v3660_v43 = vsel %vm1986_vm3, %v3641_v35, %v3645_v15 }
 0x982   :  { %v3661_v23 = vsel %vm1986_vm3, %v3643_v37, %v3647_v56  ;;  %v3685_v45 = vmul.f32 %v3668_v10, %v3660_v43 }
 0x983   :  { %v3689_v22 = vmul.f32 %v3668_v10, %v3661_v23 }
 0x984   :  { %v3649_v55 = vpop.permute.xlu1 %3648 }
 0x985   :  { %v3658_v1 = vsel %vm1986_vm3, %v3645_v15, %v3649_v55  ;;  %v3651_v27 = vpop.permute.xlu0 %3650  ;;  %v4985_v34 = vpack.c.bf16 %v3689_v22, %v3685_v45 }
 0x986   :  { %v3686_v39 = vmul.f32 %v3672_v29, %v3658_v1  ;;  %v3659_v38 = vsel %vm1986_vm3, %v3647_v56, %v3651_v27 }
 0x987   :  { %v3690_v50 = vmul.f32 %v3672_v29, %v3659_v38 }
 0x988   :  { %v4744_v51 = vpack.c.bf16 %v3686_v39, %v3685_v45  ;;  %v3653_v53 = vpop.permute.xlu1 %3652 }
 0x989   :  { %v4746_v4 = vpack.c.bf16 %v3690_v50, %v3689_v22  ;;  %v3656_v7 = vsel %vm1986_vm3, %v3649_v55, %v3653_v53  ;;  %v3662_v31 = vsel %vm1986_vm3, %v3653_v53, %v3641_v35  ;;  %v3655_v20 = vpop.permute.xlu0 %3654  ;;  %v4986_v26 = vpack.c.bf16 %v3690_v50, %v3686_v39 }
 0x98a   :  { %3717 = vst [vmem:[#allocation2 + $0x160] sm:$0xff] %v4744_v51  ;;  %v3687_v63 = vmul.f32 %v3676_v18, %v3656_v7  ;;  %v3688_v21 = vmul.f32 %v3680_v0, %v3662_v31  ;;  %v3657_v49 = vsel %vm1986_vm3, %v3651_v27, %v3655_v20  ;;  %v3663_v61 = vsel %vm1986_vm3, %v3655_v20, %v3643_v37 }
 0x98b   :  { %3719 = vst [vmem:[#allocation2 + $0x78] sm:$0xff] %v4746_v4  ;;  %v3691_v2 = vmul.f32 %v3676_v18, %v3657_v49  ;;  %v3692_v54 = vmul.f32 %v3680_v0, %v3663_v61  ;;  %4201 = vmatprep.subr.bf16.mxu0 %v4986_v26  ;;  %v3252_v0 = vld [vmem:[%s7308_s9 + $0x8] sm:$0xf] }
 0x98c   :  { %v3503_v11 = vpop.permute.xlu1 %3502  ;;  %4202 = vmatpush1.bf16.msra.mxu0 %v4985_v34  ;;  %v3453_v50 = vrot.slane %v3252_v0, %v7600_v19  ;;  %v3457_v51 = vrot.slane %v3252_v0, %v7621_v17  ;;  %v3449_v31 = vrot.slane %v3252_v0, %v7599_v57  ;;  %v3461_v20 = vrot.slane %v3252_v0, %v7622_v36 }
 0x98d   :  { %v3505_v42 = vpop.permute.xlu0 %3504  ;;  %4203 = vmatprep.subr.bf16.mxu0 %v4974_v14  ;;  %v4987_v5 = vpack.c.bf16 %v3691_v2, %v3687_v63  ;;  %v4988_v28 = vpack.c.bf16 %v3692_v54, %v3688_v21  ;;  %v3538_v14 = vrot.slane %v3253_v32, %v7621_v17 }
 0x98f   :  { %4242 = vmatprep.subr.bf16.mxu1 %v4988_v28 }
 0x990   :  { %v3507_v6 = vpop.permute.xlu1 %3506  ;;  %4204 = vmatpush1.bf16.msra.mxu0 %v4973_v58  ;;  %4243 = vmatpush1.bf16.msra.mxu1 %v4987_v5 }
 0x991   :  { %v3509_v46 = vpop.permute.xlu0 %3508  ;;  %4244 = vmatprep.subr.bf16.mxu1 %v4976_v60  ;;  %v3522_v47 = vsel %vm1751_vm4, %v3503_v11, %v3507_v6 }
 0x992   :  { %v3523_v8 = vsel %vm1751_vm4, %v3505_v42, %v3509_v46  ;;  %v3548_v60 = vmul.f32 %v3534_v25, %v3522_v47 }
 0x994   :  { %v3511_v44 = vpop.permute.xlu1 %3510  ;;  %4245 = vmatpush1.bf16.msra.mxu1 %v4975_v33  ;;  %v3552_v33 = vmul.f32 %v3534_v25, %v3523_v8 }
 0x995   :  { %v3513_v41 = vpop.permute.xlu0 %3512  ;;  %v3520_v13 = vsel %vm1751_vm4, %v3507_v6, %v3511_v44 }
 0x996   :  { %v3521_v30 = vsel %vm1751_vm4, %v3509_v46, %v3513_v41  ;;  %v3549_v62 = vmul.f32 %v3538_v14, %v3520_v13  ;;  %v4992_v45 = vpack.c.bf16 %v3552_v33, %v3548_v60 }
 0x997   :  { %v3553_v15 = vmul.f32 %v3538_v14, %v3521_v30 }
 0x998   :  { %v3515_v58 = vpop.permute.xlu1 %3514  ;;  %4205 = vmatprep.subr.bf16.mxu0 %v4992_v45 }
 0x999   :  { %v3518_v35 = vsel %vm1751_vm4, %v3511_v44, %v3515_v58  ;;  %v3524_v37 = vsel %vm1751_vm4, %v3515_v58, %v3503_v11  ;;  %v3517_v16 = vpop.permute.xlu0 %3516  ;;  %v4989_v1 = vpack.c.bf16 %v3553_v15, %v3549_v62 }
 0x99a   :  { %v3547_v52 = vmul.f32 %v3530_v3, %v3524_v37  ;;  %v3550_v59 = vmul.f32 %v3542_v48, %v3518_v35  ;;  %v3519_v40 = vsel %vm1751_vm4, %v3513_v41, %v3517_v16  ;;  %v3525_v9 = vsel %vm1751_vm4, %v3517_v16, %v3505_v42 }
 0x99b   :  { %v3551_v56 = vmul.f32 %v3530_v3, %v3525_v9  ;;  %v3554_v10 = vmul.f32 %v3542_v48, %v3519_v40 }
 0x99c   :  { %v4736_v29 = vpack.c.bf16 %v3548_v60, %v3547_v52  ;;  %v3422_v43 = vpop.permute.xlu1 %3421  ;;  %v3251_v60 = vld [vmem:[%s7308_s9 + $0x4] sm:$0xf] }
 0x99d   :  { %v4738_v23 = vpack.c.bf16 %v3552_v33, %v3551_v56  ;;  %v3424_v55 = vpop.permute.xlu0 %3423  ;;  %v4990_v27 = vpack.c.bf16 %v3554_v10, %v3550_v59  ;;  %v4991_v18 = vpack.c.bf16 %v3551_v56, %v3547_v52  ;;  %v3372_v35 = vrot.slane %v3251_v60, %v7600_v19 }
 0x99e   :  { %3579 = vst [vmem:[#allocation2 + $0xe0] sm:$0xff] %v4736_v29  ;;  %v3376_v37 = vrot.slane %v3251_v60, %v7621_v17  ;;  %v3368_v40 = vrot.slane %v3251_v60, %v7599_v57  ;;  %v3380_v9 = vrot.slane %v3251_v60, %v7622_v36 }
 0x99f   :  { %3581 = vst [vmem:[#allocation2 + $0x8] sm:$0xff] %v4738_v23  ;;  %4246 = vmatprep.subr.bf16.mxu1 %v4990_v27  ;;  %4206 = vmatpush1.bf16.msra.mxu0 %v4991_v18 }
 0x9a0   :  { %v3426_v39 = vpop.permute.xlu1 %3425  ;;  %4247 = vmatpush1.bf16.msra.mxu1 %v4989_v1 }
 0x9a1   :  { %v3428_v38 = vpop.permute.xlu0 %3427  ;;  %v3441_v4 = vsel %vm1609_vm5, %v3422_v43, %v3426_v39 }
 0x9a2   :  { %v3442_v63 = vsel %vm1609_vm5, %v3424_v55, %v3428_v38  ;;  %v3467_v61 = vmul.f32 %v3453_v50, %v3441_v4 }
 0x9a3   :  { %v3471_v6 = vmul.f32 %v3453_v50, %v3442_v63 }
 0x9a4   :  { %v3430_v22 = vpop.permute.xlu1 %3429 }
 0x9a5   :  { %v3432_v53 = vpop.permute.xlu0 %3431  ;;  %v3439_v7 = vsel %vm1609_vm5, %v3426_v39, %v3430_v22  ;;  %v4996_v8 = vpack.c.bf16 %v3471_v6, %v3467_v61 }
 0x9a6   :  { %v3440_v21 = vsel %vm1609_vm5, %v3428_v38, %v3432_v53  ;;  %v3468_v2 = vmul.f32 %v3457_v51, %v3439_v7 }
 0x9a7   :  { %v3472_v46 = vmul.f32 %v3457_v51, %v3440_v21  ;;  %4207 = vmatprep.subr.bf16.mxu0 %v4996_v8 }
 0x9a8   :  { %v3434_v49 = vpop.permute.xlu1 %3433 }
 0x9a9   :  { %v3437_v54 = vsel %vm1609_vm5, %v3430_v22, %v3434_v49  ;;  %v3443_v34 = vsel %vm1609_vm5, %v3434_v49, %v3422_v43  ;;  %v3436_v26 = vpop.permute.xlu0 %3435  ;;  %v4993_v13 = vpack.c.bf16 %v3472_v46, %v3468_v2 }
 0x9aa   :  { %v3466_v11 = vmul.f32 %v3449_v31, %v3443_v34  ;;  %v3469_v42 = vmul.f32 %v3461_v20, %v3437_v54  ;;  %v3438_v5 = vsel %vm1609_vm5, %v3432_v53, %v3436_v26  ;;  %v3444_v28 = vsel %vm1609_vm5, %v3436_v26, %v3424_v55 }
 0x9ab   :  { %v3470_v32 = vmul.f32 %v3449_v31, %v3444_v28  ;;  %v3473_v44 = vmul.f32 %v3461_v20, %v3438_v5 }
 0x9ac   :  { %v4732_v25 = vpack.c.bf16 %v3467_v61, %v3466_v11  ;;  %v3341_v14 = vpop.permute.xlu1 %3340  ;;  %v3250_v61 = vld [vmem:[%s7308_s9] sm:$0xf] }
 0x9ad   :  { %v4734_v41 = vpack.c.bf16 %v3471_v6, %v3470_v32  ;;  %v3343_v47 = vpop.permute.xlu0 %3342  ;;  %v4994_v3 = vpack.c.bf16 %v3473_v44, %v3469_v42  ;;  %v4995_v48 = vpack.c.bf16 %v3470_v32, %v3466_v11  ;;  %v3291_v54 = vrot.slane %v3250_v61, %v7600_v19 }
 0x9ae   :  { %3498 = vst [vmem:[#allocation2 + $0x1d0] sm:$0xff] %v4732_v25  ;;  %v3295_v34 = vrot.slane %v3250_v61, %v7621_v17  ;;  %v3287_v5 = vrot.slane %v3250_v61, %v7599_v57  ;;  %v3299_v28 = vrot.slane %v3250_v61, %v7622_v36 }
 0x9af   :  { %3500 = vst [vmem:[#allocation2 + $0x1e0] sm:$0xff] %v4734_v41  ;;  %4248 = vmatprep.subr.bf16.mxu1 %v4994_v3  ;;  %4208 = vmatpush1.bf16.msra.mxu0 %v4995_v48 }
 0x9b0   :  { %v3345_v30 = vpop.permute.xlu1 %3344  ;;  %4249 = vmatpush1.bf16.msra.mxu1 %v4993_v13 }
 0x9b1   :  { %v3347_v58 = vpop.permute.xlu0 %3346  ;;  %v3360_v52 = vsel %vm1467_vm6, %v3341_v14, %v3345_v30 }
 0x9b2   :  { %v3361_v33 = vsel %vm1467_vm6, %v3343_v47, %v3347_v58  ;;  %v3386_v10 = vmul.f32 %v3372_v35, %v3360_v52 }
 0x9b3   :  { %v3390_v39 = vmul.f32 %v3372_v35, %v3361_v33 }
 0x9b4   :  { %v3349_v62 = vpop.permute.xlu1 %3348 }
 0x9b5   :  { %v3351_v16 = vpop.permute.xlu0 %3350  ;;  %v3358_v59 = vsel %vm1467_vm6, %v3345_v30, %v3349_v62  ;;  %v5000_v63 = vpack.c.bf16 %v3390_v39, %v3386_v10 }
 0x9b6   :  { %v3359_v15 = vsel %vm1467_vm6, %v3347_v58, %v3351_v16  ;;  %v3387_v29 = vmul.f32 %v3376_v37, %v3358_v59  ;;  %v3258_v59 = vld [vmem:[%s7308_s9 + $0x20] sm:$0xf] }
 0x9b7   :  { %v3391_v38 = vmul.f32 %v3376_v37, %v3359_v15  ;;  %4209 = vmatprep.subr.bf16.mxu0 %v5000_v63 }
 0x9b8   :  { %v3353_v56 = vpop.permute.xlu1 %3352 }
 0x9b9   :  { %v3356_v43 = vsel %vm1467_vm6, %v3349_v62, %v3353_v56  ;;  %v3362_v23 = vsel %vm1467_vm6, %v3353_v56, %v3341_v14  ;;  %v3355_v55 = vpop.permute.xlu0 %3354  ;;  %v4997_v7 = vpack.c.bf16 %v3391_v38, %v3387_v29  ;;  %v3911_v29 = vrot.slane %v3258_v59, %v7599_v57 }
 0x9ba   :  { %v3385_v1 = vmul.f32 %v3368_v40, %v3362_v23  ;;  %v3388_v27 = vmul.f32 %v3380_v9, %v3356_v43  ;;  %v3357_v18 = vsel %vm1467_vm6, %v3351_v16, %v3355_v55  ;;  %v3363_v45 = vsel %vm1467_vm6, %v3355_v55, %v3343_v47 }
 0x9bb   :  { %v3389_v0 = vmul.f32 %v3368_v40, %v3363_v45  ;;  %v3392_v22 = vmul.f32 %v3380_v9, %v3357_v18  ;;  %v3915_v43 = vrot.slane %v3258_v59, %v7600_v19  ;;  %v3919_v45 = vrot.slane %v3258_v59, %v7621_v17 }
 0x9bc   :  { %v4728_v50 = vpack.c.bf16 %v3386_v10, %v3385_v1  ;;  %v3260_v51 = vpop.permute.xlu1 %3259  ;;  %v3923_v19 = vrot.slane %v3258_v59, %v7622_v36 }
 0x9bd   :  { %v4730_v53 = vpack.c.bf16 %v3390_v39, %v3389_v0  ;;  %v3262_v4 = vpop.permute.xlu0 %3261  ;;  %v4998_v31 = vpack.c.bf16 %v3392_v22, %v3388_v27  ;;  %v4999_v20 = vpack.c.bf16 %v3389_v0, %v3385_v1 }
 0x9be   :  { %3417 = vst [vmem:[#allocation2 + $0x80] sm:$0xff] %v4728_v50 }
 0x9bf   :  { %3419 = vst [vmem:[#allocation2 + $0x50] sm:$0xff] %v4730_v53  ;;  %4250 = vmatprep.subr.bf16.mxu1 %v4998_v31  ;;  %4210 = vmatpush1.bf16.msra.mxu0 %v4999_v20 }
 0x9c0   :  { %v3264_v21 = vpop.permute.xlu1 %3263  ;;  %4251 = vmatpush1.bf16.msra.mxu1 %v4997_v7 }
 0x9c1   :  { %v3266_v49 = vpop.permute.xlu0 %3265  ;;  %v3279_v11 = vsel %vm1325_vm7, %v3260_v51, %v3264_v21 }
 0x9c2   :  { %v3280_v6 = vsel %vm1325_vm7, %v3262_v4, %v3266_v49  ;;  %v3305_v44 = vmul.f32 %v3291_v54, %v3279_v11 }
 0x9c3   :  { %v3309_v30 = vmul.f32 %v3291_v54, %v3280_v6 }
 0x9c4   :  { %v3268_v2 = vpop.permute.xlu1 %3267 }
 0x9c5   :  { %v3270_v26 = vpop.permute.xlu0 %3269  ;;  %v3277_v42 = vsel %vm1325_vm7, %v3264_v21, %v3268_v2  ;;  %v5004_v15 = vpack.c.bf16 %v3309_v30, %v3305_v44 }
 0x9c6   :  { %v3278_v46 = vsel %vm1325_vm7, %v3266_v49, %v3270_v26  ;;  %v3306_v25 = vmul.f32 %v3295_v34, %v3277_v42 }
 0x9c7   :  { %v3310_v58 = vmul.f32 %v3295_v34, %v3278_v46  ;;  %4211 = vmatprep.subr.bf16.mxu0 %v5004_v15 }
 0x9c8   :  { %v3272_v32 = vpop.permute.xlu1 %3271 }
 0x9c9   :  { %v3275_v14 = vsel %vm1325_vm7, %v3268_v2, %v3272_v32  ;;  %v3281_v41 = vsel %vm1325_vm7, %v3272_v32, %v3260_v51  ;;  %v3274_v47 = vpop.permute.xlu0 %3273  ;;  %v5001_v40 = vpack.c.bf16 %v3310_v58, %v3306_v25 }
 0x9ca   :  { %v3304_v13 = vmul.f32 %v3287_v5, %v3281_v41  ;;  %v3307_v3 = vmul.f32 %v3299_v28, %v3275_v14  ;;  %v3276_v48 = vsel %vm1325_vm7, %v3270_v26, %v3274_v47  ;;  %v3282_v8 = vsel %vm1325_vm7, %v3274_v47, %v3262_v4 }
 0x9cb   :  { %v3308_v60 = vmul.f32 %v3287_v5, %v3282_v8  ;;  %v3311_v62 = vmul.f32 %v3299_v28, %v3276_v48  ;;  %v4572_v26 = vcombine.low %v7077_v12, %v7077_v12 }
 0x9cc   :  { %v4724_v35 = vpack.c.bf16 %v3305_v44, %v3304_v13  ;;  %v3884_v37 = vpop.permute.xlu1 %3883 }
 0x9cd   :  { %v4726_v16 = vpack.c.bf16 %v3309_v30, %v3308_v60  ;;  %v3886_v52 = vpop.permute.xlu0 %3885  ;;  %v5002_v9 = vpack.c.bf16 %v3311_v62, %v3307_v3  ;;  %v5003_v33 = vpack.c.bf16 %v3308_v60, %v3304_v13 }
 0x9ce   :  { %3336 = vst [vmem:[#allocation2 + $0x190] sm:$0xff] %v4724_v35 }
 0x9cf   :  { %3338 = vst [vmem:[#allocation2 + $0x10] sm:$0xff] %v4726_v16  ;;  %4252 = vmatprep.subr.bf16.mxu1 %v5002_v9  ;;  %4212 = vmatpush1.bf16.msra.mxu0 %v5003_v33 }
 0x9d0   :  { %v3888_v56 = vpop.permute.xlu1 %3887  ;;  %4253 = vmatpush1.bf16.msra.mxu1 %v5001_v40 }
 0x9d1   :  { %v3890_v10 = vpop.permute.xlu0 %3889  ;;  %v3903_v23 = vsel %vm2412_vm8, %v3884_v37, %v3888_v56 }
 0x9d2   :  { %v3904_v55 = vsel %vm2412_vm8, %v3886_v52, %v3890_v10  ;;  %v3928_v39 = vmul.f32 %v3911_v29, %v3903_v23 }
 0x9d3   :  { %v3932_v0 = vmul.f32 %v3911_v29, %v3904_v55 }
 0x9d4   :  { %v3892_v1 = vpop.permute.xlu1 %3891 }
 0x9d5   :  { %v3901_v27 = vsel %vm2412_vm8, %v3888_v56, %v3892_v1  ;;  %v3894_v18 = vpop.permute.xlu0 %3893  ;;  %v5005_v61 = vpack.c.bf16 %v3932_v0, %v3928_v39 }
 0x9d6   :  { %v3929_v38 = vmul.f32 %v3915_v43, %v3901_v27  ;;  %v3902_v57 = vsel %vm2412_vm8, %v3890_v10, %v3894_v18 }
 0x9d7   :  { %v3933_v22 = vmul.f32 %v3915_v43, %v3902_v57 }
 0x9d8   :  { %v4756_v50 = vpack.c.bf16 %v3929_v38, %v3928_v39  ;;  %v3896_v51 = vpop.permute.xlu1 %3895 }
 0x9d9   :  { %v4758_v53 = vpack.c.bf16 %v3933_v22, %v3932_v0  ;;  %v3899_v4 = vsel %vm2412_vm8, %v3892_v1, %v3896_v51  ;;  %v3905_v7 = vsel %vm2412_vm8, %v3896_v51, %v3884_v37  ;;  %v3898_v31 = vpop.permute.xlu0 %3897  ;;  %v5006_v2 = vpack.c.bf16 %v3933_v22, %v3929_v38 }
 0x9da   :  { %3960 = vst [vmem:[#allocation2 + $0xc8] sm:$0xff] %v4756_v50  ;;  %v3930_v17 = vmul.f32 %v3919_v45, %v3899_v4  ;;  %v3931_v20 = vmul.f32 %v3923_v19, %v3905_v7  ;;  %v3900_v63 = vsel %vm2412_vm8, %v3894_v18, %v3898_v31  ;;  %v3906_v36 = vsel %vm2412_vm8, %v3898_v31, %v3886_v52 }
 0x9db   :  { %3962 = vst [vmem:[#allocation2 + $0xe8] sm:$0xff] %v4758_v53  ;;  %v3934_v21 = vmul.f32 %v3919_v45, %v3900_v63  ;;  %v3935_v49 = vmul.f32 %v3923_v19, %v3906_v36  ;;  %4227 = vmatprep.subr.bf16.mxu0 %v5006_v2 }
 0x9dc   :  { %v4757_v54 = vpack.c.bf16 %v3931_v20, %v3930_v17  ;;  %4228 = vmatpush2.bf16.msra.mxu0 %v5005_v61 }
 0x9dd   :  { %v4759_v34 = vpack.c.bf16 %v3935_v49, %v3934_v21  ;;  %v5007_v11 = vpack.c.bf16 %v3934_v21, %v3930_v17  ;;  %v5008_v42 = vpack.c.bf16 %v3935_v49, %v3931_v20 }
 0x9de   :  { %3961 = vst [vmem:[#allocation2 + $0x178] sm:$0xff] %v4757_v54 }
 0x9df   :  { %3963 = vst [vmem:[#allocation2 + $0x218] sm:$0xff] %v4759_v34  ;;  %4230 = vmatmul.mubr.bf16.vlgmr.msra.gmra.mxu0 %v4572_v26  ;;  %4268 = vmatprep.subr.bf16.mxu1 %v5008_v42 }
 0x9e0   :  { %4269 = vmatpush2.bf16.msra.mxu1 %v5007_v11 }
 0x9e3   :  { %4271 = vmatmul.mubr.bf16.vlgmr.msra.gmra.mxu1 %v4572_v26 }
 0x9e6   :  { %v4005_v24 = vpop.permute.xlu1 %4004 }
 0xa9f   :  { %v4231_v5 = vpop.f32.mrf.mxu0 }
 0xaa0   :  { %v4232_v28 = vadd.f32 %v4231_v5, %v4005_v24 }
 0xaa1   :  { %v4233_v6 = vpop.f32.mrf.mxu0 }
 0xaa2   :  { %v4612_v46 = vmul.f32 -1.442695, %v4232_v28  ;;  %v4234_v32 = vadd.f32 %v4233_v6, %v4005_v24 }
 0xaa3   :  { %v4235_v44 = vpop.f32.mrf.mxu0  ;;  %v4272_v25 = vpop.f32.mrf.mxu1 }
 0xaa4   :  { %4893 = vpow2.f32 %v4612_v46  ;;  %v4613_v14 = vmul.f32 -1.442695, %v4234_v32  ;;  %v4273_v12 = vadd.f32 %v4272_v25, %v4005_v24 }
 0xaa5   :  { %v4236_v41 = vpop.f32.mrf.mxu0  ;;  %v4274_v47 = vpop.f32.mrf.mxu1 }
 0xaa6   :  { %4895 = vpow2.f32 %v4613_v14  ;;  %v4614_v13 = vmul.f32 -1.442695, %v4273_v12  ;;  %v4275_v3 = vadd.f32 %v4274_v47, %v4005_v24 }
 0xaa7   :  { %v4276_v48 = vpop.f32.mrf.mxu1 }
 0xaa8   :  { %4897 = vpow2.f32 %v4614_v13  ;;  %v4615_v8 = vmul.f32 -1.442695, %v4275_v3 }
 0xaa9   :  { %v4277_v30 = vpop.f32.mrf.mxu1 }
 0xaaa   :  { %4899 = vpow2.f32 %v4615_v8 }
 0xab1   :  { %v4894_v58 = vpop.eup %4893 }
 0xab2   :  { %v4291_v60 = vadd.f32 1.0, %v4894_v58 }
 0xab3   :  { %v4896_v62 = vpop.eup %4895 }
 0xab4   :  { %4901 = vrcp.f32 %v4291_v60  ;;  %v4292_v35 = vadd.f32 1.0, %v4896_v62 }
 0xab5   :  { %v4898_v37 = vpop.eup %4897 }
 0xab6   :  { %4903 = vrcp.f32 %v4292_v35  ;;  %v4293_v16 = vadd.f32 1.0, %v4898_v37 }
 0xab7   :  { %v4900_v52 = vpop.eup %4899 }
 0xab8   :  { %4905 = vrcp.f32 %v4293_v16  ;;  %v4294_v59 = vadd.f32 1.0, %v4900_v52 }
 0xaba   :  { %4907 = vrcp.f32 %v4294_v59 }
 0xac1   :  { %v4902_v40 = vpop.eup %4901 }
 0xac2   :  { %4303 = vst [vmem:[%s7314_s15] sm:$0xff] %v4902_v40 }
 0xac3   :  { %v4904_v9 = vpop.eup %4903 }
 0xac4   :  { %4304 = vst [vmem:[%s7314_s15 + $0x8] sm:$0xff] %v4904_v9 }
 0xac5   :  { %v4906_v33 = vpop.eup %4905 }
 0xac6   :  { %4305 = vst [vmem:[%s7314_s15 + $0x10] sm:$0xff] %v4906_v33 }
 0xac7   :  { %v4908_v15 = vpop.eup %4907 }
 0xac8   :  { %4306 = vst [vmem:[%s7314_s15 + $0x18] sm:$0xff] %v4908_v15 }
 0xac9   :  { %4311 = vsyncpa [#allocation4], 1 }

</bundles_post_ra>
